<compile_context>
chip_gen: v7x
topology: tpu7x:2x2x1
jax: 0.10.0
libtpu: 0.0.40
codegen_flags: <defaults>
</compile_context>

<pallas_src>
import functools

import numpy as np
import jax
import jax.numpy as jnp
from jax import lax
from jax.experimental import pallas as pl
from jax.experimental.pallas import tpu as pltpu  # noqa: F401  (kept for TPU-specific knobs)


CFG = dict(batch=2, num_stock=4, seq_len=8, num_feature=6, embedding_dim=16,
           rnn_hidden=8, mlp_hidden=16, n_head=4, d_k=8, d_v=8, n_snapshots=2)


# ----------------------------- single fused kernel -----------------------------

def _fused_forward_kernel(
        x_ref,                         # (T*B, NS*F)  rows t-major: row = t*B + b
        ew_ref, eb_ref,                # block-diag embedding  (NS*F, NS*E), (1, NS*E)
        w1i_ref, b1_ref,               # lstm1 input projection
        wrec_ref,                      # stacked recurrent weights (H1+H2, 4H1+4H2)
        ln1g_ref, ln1b_ref,            # LayerNorm after lstm1
        w2i_ref, b2_ref,               # lstm2 input projection
        wqkv_ref, bqkv_ref,            # fused QKV projection
        wfc_ref, bfc_ref, alng_ref, alnb_ref,   # attention FC + LayerNorm
        th1_ref, th2_ref, p1_ref, p2_ref, par_ref,   # HWNN
        w1a_ref, w1b_ref, b1m_ref, w2m_ref, b2m_ref,  # MLP head (block-diag over T)
        o_ref,                         # (B, NS*T)
        *, B, T, NS, RH, H1, H2, n_head, d_k, d_v, n_snap, eps_ln1, eps_attn):
    f32 = jnp.float32

    # ---- hoisted embedding + LSTM1 input projection (whole sequence at once) ----
    e_all = jnp.dot(x_ref[...], ew_ref[...], preferred_element_type=f32) + eb_ref[...]
    ga_in = jnp.dot(e_all, w1i_ref[...], preferred_element_type=f32) + b1_ref[...]   # (T*B, 4H1)

    def lstm_cell(g, c, H):
        i = jax.nn.sigmoid(g[:, 0:H])
        f = jax.nn.sigmoid(g[:, H:2 * H])
        u = jnp.tanh(g[:, 2 * H:3 * H])
        o = jax.nn.sigmoid(g[:, 3 * H:4 * H])
        c_new = f * c + i * u
        return o * jnp.tanh(c_new), c_new

    wrec = wrec_ref[...]
    w2i = w2i_ref[...]
    ln1g = ln1g_ref[...]
    ln1b = ln1b_ref[...]
    b2 = b2_ref[...]

    h1 = jnp.zeros((B, H1), f32)
    c1 = jnp.zeros((B, H1), f32)
    h2 = jnp.zeros((B, H2), f32)
    c2 = jnp.zeros((B, H2), f32)
    h2_steps = []
    for t in range(T):                       # static unroll; the only serial recurrence
        # single MXU push for BOTH recurrent projections (block-diag stacked weight)
        rec = jnp.dot(jnp.concatenate([h1, h2], axis=1), wrec,
                      preferred_element_type=f32)                       # (B, 4H1+4H2)
        ga = ga_in[t * B:(t + 1) * B, :] + rec[:, :4 * H1]
        h1, c1 = lstm_cell(ga, c1, H1)
        mu = jnp.mean(h1, axis=-1, keepdims=True)
        var = jnp.mean((h1 - mu) ** 2, axis=-1, keepdims=True)
        ln = (h1 - mu) * lax.rsqrt(var + eps_ln1) * ln1g + ln1b
        gb = rec[:, 4 * H1:] + jnp.dot(ln, w2i, preferred_element_type=f32) + b2
        h2, c2 = lstm_cell(gb, c2, H2)
        h2_steps.append(h2)                                             # (B, H2)

    # ---- temporal multi-head attention (causal) + residual + LayerNorm ----
    # enc per batch (T, H2) and flattened (B*T, H2) so one sublane-filled matmul
    # covers the whole batch's QKV projection.
    enc_per_b = [jnp.concatenate([h2_steps[t][b:b + 1, :] for t in range(T)], axis=0)
                 for b in range(B)]
    enc_flat = jnp.concatenate(enc_per_b, axis=0)                        # (B*T, H2) b-major
    qkv_all = jnp.dot(enc_flat, wqkv_ref[...], preferred_element_type=f32) + bqkv_ref[...]

    row = lax.broadcasted_iota(jnp.int32, (T, T), 0)
    col = lax.broadcasted_iota(jnp.int32, (T, T), 1)
    causal = col <= row                                                  # subsequent mask
    inv_temp = 1.0 / (float(d_k) ** 0.5)

    wfc = wfc_ref[...]
    bfc = bfc_ref[...]
    alng = alng_ref[...]
    alnb = alnb_ref[...]
    nqk = n_head * d_k

    xh_rows = []                                                         # rows of (B*NS, Fh)
    for b in range(B):                                                   # static, B=2
        qkv_b = qkv_all[b * T:(b + 1) * T, :]                            # (T, 2*nqk + n_head*d_v)
        q = qkv_b[:, 0:nqk]
        k = qkv_b[:, nqk:2 * nqk]
        v = qkv_b[:, 2 * nqk:2 * nqk + n_head * d_v]
        # residual + FC bias; each head's output goes straight through its FC slice
        fc_acc = enc_per_b[b] + bfc                                      # (T, H2)
        for h in range(n_head):                                          # static, tiny
            qh = q[:, h * d_k:(h + 1) * d_k]
            kh = k[:, h * d_k:(h + 1) * d_k]
            vh = v[:, h * d_v:(h + 1) * d_v]
            s = jnp.dot(qh, kh.T, preferred_element_type=f32) * inv_temp
            s = jnp.where(causal, s, -1e9)
            s = s - jnp.max(s, axis=-1, keepdims=True)
            p = jnp.exp(s)
            p = p / jnp.sum(p, axis=-1, keepdims=True)                   # exact softmax
            oh = jnp.dot(p, vh, preferred_element_type=f32)              # (T, d_v)
            fc_acc = fc_acc + jnp.dot(oh, wfc[h * d_v:(h + 1) * d_v, :],
                                      preferred_element_type=f32)
        mu = jnp.mean(fc_acc, axis=-1, keepdims=True)
        var = jnp.mean((fc_acc - mu) ** 2, axis=-1, keepdims=True)
        enc2_b = (fc_acc - mu) * lax.rsqrt(var + eps_attn) * alng + alnb  # (T, H2)

        # (T, NS*RH) -> (NS, T*RH): in-VMEM permutation via static slice + concat
        for ns in range(NS):
            xh_rows.append(jnp.concatenate(
                [enc2_b[t:t + 1, ns * RH:(ns + 1) * RH] for t in range(T)], axis=1))

    x_hyper = jnp.concatenate(xh_rows, axis=0)                           # (B*NS, Fh)

    # ---- HWNN wavelet convolutions (batch folded via block-diag prop matrices) ----
    th1 = th1_ref[...]
    th2 = th2_ref[...]
    p1 = p1_ref[...]
    p2 = p2_ref[...]
    par = par_ref[...]
    xt1 = jnp.dot(x_hyper, th1, preferred_element_type=f32)              # snapshot-invariant (hoisted)
    hyper = jnp.zeros_like(x_hyper)
    for s in range(n_snap):                                              # static, tiny
        d1 = jnp.dot(p1[s], xt1, preferred_element_type=f32)
        d1 = jnp.where(d1 > 0.0, d1, 0.1 * d1)                           # leaky_relu(0.1)
        d2 = jnp.dot(p2[s], jnp.dot(d1, th2, preferred_element_type=f32),
                     preferred_element_type=f32)
        d2 = jnp.where(d2 > 0.0, d2, 0.1 * d2)
        hyper = hyper + par[:, s:s + 1] * d2

    # ---- MLP head: concat fused away via split weights, block-diag over T ----
    z = (jnp.dot(x_hyper, w1a_ref[...], preferred_element_type=f32)
         + jnp.dot(hyper, w1b_ref[...], preferred_element_type=f32)
         + b1m_ref[...])
    z = jnp.maximum(z, 0.0)
    out_bn = jnp.dot(z, w2m_ref[...], preferred_element_type=f32) + b2m_ref[...]   # (B*NS, T)

    # lane-dense output: (B, NS*T) instead of (B*NS*T, 1)
    o_rows = [jnp.concatenate([out_bn[b * NS + ns:b * NS + ns + 1, :] for ns in range(NS)],
                              axis=1) for b in range(B)]
    o_ref[...] = jnp.concatenate(o_rows, axis=0)


# ---------------------------- parameters & forward -----------------------------

def init_params(key, cfg):
    keys = iter(jax.random.split(key, 64))

    def uni(shape, scale=0.1):
        return jax.random.uniform(next(keys), shape, jnp.float32, -scale, scale)

    NS, T, F = cfg["num_stock"], cfg["seq_len"], cfg["num_feature"]
    E, RH, MH = cfg["embedding_dim"], cfg["rnn_hidden"], cfg["mlp_hidden"]
    nh, dk, dv = cfg["n_head"], cfg["d_k"], cfg["d_v"]
    H1 = RH * NS * 2
    H2 = RH * NS
    Fh = RH * T

    p = {}
    p["emb_w"], p["emb_b"] = uni((F, E)), uni((E,))
    p["lstm1_wih"], p["lstm1_whh"], p["lstm1_b"] = uni((E * NS, 4 * H1)), uni((H1, 4 * H1)), uni((4 * H1,))
    p["ln1_g"], p["ln1_b"] = jnp.ones((H1,), jnp.float32), jnp.zeros((H1,), jnp.float32)
    p["lstm2_wih"], p["lstm2_whh"], p["lstm2_b"] = uni((H1, 4 * H2)), uni((H2, 4 * H2)), uni((4 * H2,))
    p["wq"], p["bq"] = uni((H2, nh * dk)), uni((nh * dk,))
    p["wk"], p["bk"] = uni((H2, nh * dk)), uni((nh * dk,))
    p["wv"], p["bv"] = uni((H2, nh * dv)), uni((nh * dv,))
    p["wfc"], p["bfc"] = uni((nh * dv, H2)), uni((H2,))
    p["attn_ln_g"], p["attn_ln_b"] = jnp.ones((H2,), jnp.float32), jnp.zeros((H2,), jnp.float32)
    p["par"] = jax.random.uniform(next(keys), (cfg["n_snapshots"],), jnp.float32, 0.0, 0.99)
    p["conv1_theta"], p["conv1_diag"] = uni((Fh, Fh)), 1.0 + uni((NS,))
    p["conv2_theta"], p["conv2_diag"] = uni((Fh, Fh)), 1.0 + uni((NS,))
    p["mlp1_w"], p["mlp1_b"] = uni((RH * 2, MH)), uni((MH,))
    p["mlp2_w"], p["mlp2_b"] = uni((MH, 1)), uni((1,))

    # synthetic hypergraph wavelet snapshots (N x N basis + inverse)
    snaps = []
    for _ in range(cfg["n_snapshots"]):
        w = jnp.eye(NS, dtype=jnp.float32) + uni((NS, NS), 0.1)
        w_np = np.asarray(jax.device_get(w), dtype=np.float64)
        snaps.append(dict(wavelets=w,
                          wavelets_inv=jnp.asarray(np.linalg.inv(w_np), dtype=jnp.float32)))
    return p, snaps


def model_forward(p, snaps, inputs, cfg):
    NS, T, F = cfg["num_stock"], cfg["seq_len"], cfg["num_feature"]
    E, RH, MH = cfg["embedding_dim"], cfg["rnn_hidden"], cfg["mlp_hidden"]
    nh, dk, dv = cfg["n_head"], cfg["d_k"], cfg["d_v"]
    S = cfg["n_snapshots"]
    H1, H2 = RH * NS * 2, RH * NS
    Fh = RH * T
    B = inputs.shape[0]
    f32 = jnp.float32

    # ---- cheap plain-JAX parameter fusion (tiny, traced once under jit) ----
    # Block-diagonal embedding: Linear(F->E) per stock AND the torch permute/reshape
    # folded into a single matmul on (T*B, NS*F).
    emb_w_blk = jnp.kron(jnp.eye(NS, dtype=f32), p["emb_w"])             # (NS*F, NS*E)
    emb_b_blk = jnp.tile(p["emb_b"], NS).reshape(1, -1)

    # Stacked recurrent weights: one MXU push per timestep for lstm1 + lstm2.
    wrec = jnp.zeros((H1 + H2, 4 * H1 + 4 * H2), f32)
    wrec = wrec.at[:H1, :4 * H1].set(p["lstm1_whh"])
    wrec = wrec.at[H1:, 4 * H1:].set(p["lstm2_whh"])

    # Fused QKV projection.
    wqkv = jnp.concatenate([p["wq"], p["wk"], p["wv"]], axis=1)
    bqkv = jnp.concatenate([p["bq"], p["bk"], p["bv"]], axis=0).reshape(1, -1)

    # Per-snapshot propagation  W_s diag(d) W_s^-1, block-diag expanded over the batch
    # so a single matmul handles all B stock graphs at once.
    eyeB = jnp.eye(B, dtype=f32)
    prop1 = jnp.stack([jnp.kron(eyeB, (s["wavelets"] * p["conv1_diag"][None, :]) @ s["wavelets_inv"])
                       for s in snaps])                                  # (S, B*NS, B*NS)
    prop2 = jnp.stack([jnp.kron(eyeB, (s["wavelets"] * p["conv2_diag"][None, :]) @ s["wavelets_inv"])
                       for s in snaps])

    # MLP head in the (B*NS, T*RH) layout: split the concat and block-diag over T.
    eyeT = jnp.eye(T, dtype=f32)
    w1a_blk = jnp.kron(eyeT, p["mlp1_w"][:RH, :])                        # (Fh, T*MH)
    w1b_blk = jnp.kron(eyeT, p["mlp1_w"][RH:, :])                        # (Fh, T*MH)
    b1m = jnp.tile(p["mlp1_b"], T).reshape(1, -1)                        # (1, T*MH)
    w2_blk = jnp.kron(eyeT, p["mlp2_w"])                                 # (T*MH, T)
    b2m = p["mlp2_b"].reshape(1, 1)

    # (B, NS, T, F) -> (T*B, NS*F): the only layout op outside the kernel (~1.5 KB).
    x_tbf = inputs.astype(f32).transpose(2, 0, 1, 3).reshape(T * B, NS * F)

    kernel = functools.partial(
        _fused_forward_kernel, B=B, T=T, NS=NS, RH=RH, H1=H1, H2=H2,
        n_head=nh, d_k=dk, d_v=dv, n_snap=S, eps_ln1=1e-5, eps_attn=1e-6)

    out = pl.pallas_call(
        kernel,
        out_shape=jax.ShapeDtypeStruct((B, NS * T), f32),
    )(x_tbf,
      emb_w_blk, emb_b_blk,
      p["lstm1_wih"], p["lstm1_b"].reshape(1, -1),
      wrec,
      p["ln1_g"].reshape(1, -1), p["ln1_b"].reshape(1, -1),
      p["lstm2_wih"], p["lstm2_b"].reshape(1, -1),
      wqkv, bqkv,
      p["wfc"], p["bfc"].reshape(1, -1),
      p["attn_ln_g"].reshape(1, -1), p["attn_ln_b"].reshape(1, -1),
      p["conv1_theta"], p["conv2_theta"], prop1, prop2, p["par"].reshape(1, -1),
      w1a_blk, w1b_blk, b1m, w2_blk, b2m)

    return out.reshape(B, NS, T)


if __name__ == "__main__":
    cfg = CFG
    inputs = jax.random.normal(
        jax.random.PRNGKey(0),
        (cfg["batch"], cfg["num_stock"], cfg["seq_len"], cfg["num_feature"]), jnp.float32)
    params, snaps = init_params(jax.random.PRNGKey(1), cfg)

    fwd = jax.jit(functools.partial(model_forward, cfg=cfg))
    out = jax.block_until_ready(fwd(params, snaps, inputs))

    assert out.shape == (cfg["batch"], cfg["num_stock"], cfg["seq_len"])
    assert jnp.all(jnp.isfinite(out))
    print("KERNEL_OK")
</pallas_src>

<mosaic_0001>
module attributes {stable_mosaic.version = 11 : i64} {
  func.func @_fused_forward_kernel(%arg0: memref<16x24xf32, #tpu.memory_space<vmem>>, %arg1: memref<24x64xf32, #tpu.memory_space<vmem>>, %arg2: memref<1x64xf32, #tpu.memory_space<vmem>>, %arg3: memref<64x256xf32, #tpu.memory_space<vmem>>, %arg4: memref<1x256xf32, #tpu.memory_space<vmem>>, %arg5: memref<96x384xf32, #tpu.memory_space<vmem>>, %arg6: memref<1x64xf32, #tpu.memory_space<vmem>>, %arg7: memref<1x64xf32, #tpu.memory_space<vmem>>, %arg8: memref<64x128xf32, #tpu.memory_space<vmem>>, %arg9: memref<1x128xf32, #tpu.memory_space<vmem>>, %arg10: memref<32x96xf32, #tpu.memory_space<vmem>>, %arg11: memref<1x96xf32, #tpu.memory_space<vmem>>, %arg12: memref<32x32xf32, #tpu.memory_space<vmem>>, %arg13: memref<1x32xf32, #tpu.memory_space<vmem>>, %arg14: memref<1x32xf32, #tpu.memory_space<vmem>>, %arg15: memref<1x32xf32, #tpu.memory_space<vmem>>, %arg16: memref<64x64xf32, #tpu.memory_space<vmem>>, %arg17: memref<64x64xf32, #tpu.memory_space<vmem>>, %arg18: memref<2x8x8xf32, #tpu.memory_space<vmem>>, %arg19: memref<2x8x8xf32, #tpu.memory_space<vmem>>, %arg20: memref<1x2xf32, #tpu.memory_space<vmem>>, %arg21: memref<64x128xf32, #tpu.memory_space<vmem>>, %arg22: memref<64x128xf32, #tpu.memory_space<vmem>>, %arg23: memref<1x128xf32, #tpu.memory_space<vmem>>, %arg24: memref<128x8xf32, #tpu.memory_space<vmem>>, %arg25: memref<1x1xf32, #tpu.memory_space<vmem>>, %arg26: memref<2x32xf32, #tpu.memory_space<vmem>>) attributes {dimension_semantics = [], scalar_prefetch = 0 : i64, scratch_operands = 0 : i64, tpu.core_type = #tpu.core_type<tc>} {
    %c0 = arith.constant 0 : index
    %c0_0 = arith.constant 0 : index
    %0 = vector.load %arg0[%c0, %c0_0] : memref<16x24xf32, #tpu.memory_space<vmem>>, vector<16x24xf32>
    %c0_1 = arith.constant 0 : index
    %c0_2 = arith.constant 0 : index
    %1 = vector.load %arg1[%c0_1, %c0_2] : memref<24x64xf32, #tpu.memory_space<vmem>>, vector<24x64xf32>
    %cst = arith.constant dense<0.000000e+00> : vector<16x64xf32>
    %2 = tpu.matmul %0, %1, %cst {dimension_numbers = #tpu.dot_dimension_numbers<[1], [0], [0], [1], [0, 0, 1, 1], [], []>} : vector<16x24xf32>, vector<24x64xf32>, vector<16x64xf32> -> vector<16x64xf32>
    %c0_3 = arith.constant 0 : index
    %c0_4 = arith.constant 0 : index
    %3 = vector.load %arg2[%c0_3, %c0_4] : memref<1x64xf32, #tpu.memory_space<vmem>>, vector<1x64xf32>
    %4 = vector.broadcast %3 : vector<1x64xf32> to vector<16x64xf32>
    %5 = arith.addf %2, %4 : vector<16x64xf32>
    %c0_5 = arith.constant 0 : index
    %c0_6 = arith.constant 0 : index
    %6 = vector.load %arg3[%c0_5, %c0_6] : memref<64x256xf32, #tpu.memory_space<vmem>>, vector<64x256xf32>
    %cst_7 = arith.constant dense<0.000000e+00> : vector<16x256xf32>
    %7 = tpu.matmul %5, %6, %cst_7 {dimension_numbers = #tpu.dot_dimension_numbers<[1], [0], [0], [1], [0, 0, 1, 1], [], []>} : vector<16x64xf32>, vector<64x256xf32>, vector<16x256xf32> -> vector<16x256xf32>
    %c0_8 = arith.constant 0 : index
    %c0_9 = arith.constant 0 : index
    %8 = vector.load %arg4[%c0_8, %c0_9] : memref<1x256xf32, #tpu.memory_space<vmem>>, vector<1x256xf32>
    %9 = vector.broadcast %8 : vector<1x256xf32> to vector<16x256xf32>
    %10 = arith.addf %7, %9 : vector<16x256xf32>
    %c0_10 = arith.constant 0 : index
    %c0_11 = arith.constant 0 : index
    %11 = vector.load %arg5[%c0_10, %c0_11] : memref<96x384xf32, #tpu.memory_space<vmem>>, vector<96x384xf32>
    %c0_12 = arith.constant 0 : index
    %c0_13 = arith.constant 0 : index
    %12 = vector.load %arg8[%c0_12, %c0_13] : memref<64x128xf32, #tpu.memory_space<vmem>>, vector<64x128xf32>
    %c0_14 = arith.constant 0 : index
    %c0_15 = arith.constant 0 : index
    %13 = vector.load %arg6[%c0_14, %c0_15] : memref<1x64xf32, #tpu.memory_space<vmem>>, vector<1x64xf32>
    %c0_16 = arith.constant 0 : index
    %c0_17 = arith.constant 0 : index
    %14 = vector.load %arg7[%c0_16, %c0_17] : memref<1x64xf32, #tpu.memory_space<vmem>>, vector<1x64xf32>
    %c0_18 = arith.constant 0 : index
    %c0_19 = arith.constant 0 : index
    %15 = vector.load %arg9[%c0_18, %c0_19] : memref<1x128xf32, #tpu.memory_space<vmem>>, vector<1x128xf32>
    %cst_20 = arith.constant 0.000000e+00 : f32
    %16 = vector.broadcast %cst_20 : f32 to vector<2x64xf32>
    %cst_21 = arith.constant 0.000000e+00 : f32
    %17 = vector.broadcast %cst_21 : f32 to vector<2x64xf32>
    %cst_22 = arith.constant 0.000000e+00 : f32
    %18 = vector.broadcast %cst_22 : f32 to vector<2x32xf32>
    %cst_23 = arith.constant 0.000000e+00 : f32
    %19 = vector.broadcast %cst_23 : f32 to vector<2x32xf32>
    %20 = tpu.concatenate %16, %18 in 1 : vector<2x64xf32>, vector<2x32xf32> -> vector<2x96xf32>
    %cst_24 = arith.constant dense<0.000000e+00> : vector<2x384xf32>
    %21 = tpu.matmul %20, %11, %cst_24 {dimension_numbers = #tpu.dot_dimension_numbers<[1], [0], [0], [1], [0, 0, 1, 1], [], []>} : vector<2x96xf32>, vector<96x384xf32>, vector<2x384xf32> -> vector<2x384xf32>
    %22 = vector.extract_strided_slice %10 {offsets = [0, 0], sizes = [2, 256], strides = [1, 1]} : vector<16x256xf32> to vector<2x256xf32>
    %23 = vector.extract_strided_slice %21 {offsets = [0, 0], sizes = [2, 256], strides = [1, 1]} : vector<2x384xf32> to vector<2x256xf32>
    %24 = arith.addf %22, %23 : vector<2x256xf32>
    %25 = vector.extract_strided_slice %24 {offsets = [0, 0], sizes = [2, 64], strides = [1, 1]} : vector<2x256xf32> to vector<2x64xf32>
    %26 = arith.negf %25 : vector<2x64xf32>
    %27 = math.exp %26 : vector<2x64xf32>
    %cst_25 = arith.constant 1.000000e+00 : f32
    %28 = vector.broadcast %cst_25 : f32 to vector<2x64xf32>
    %29 = arith.addf %28, %27 : vector<2x64xf32>
    %30 = arith.divf %28, %29 : vector<2x64xf32>
    %31 = vector.extract_strided_slice %24 {offsets = [0, 64], sizes = [2, 64], strides = [1, 1]} : vector<2x256xf32> to vector<2x64xf32>
    %32 = arith.negf %31 : vector<2x64xf32>
    %33 = math.exp %32 : vector<2x64xf32>
    %cst_26 = arith.constant 1.000000e+00 : f32
    %34 = vector.broadcast %cst_26 : f32 to vector<2x64xf32>
    %35 = arith.addf %34, %33 : vector<2x64xf32>
    %36 = arith.divf %34, %35 : vector<2x64xf32>
    %37 = vector.extract_strided_slice %24 {offsets = [0, 128], sizes = [2, 64], strides = [1, 1]} : vector<2x256xf32> to vector<2x64xf32>
    %38 = math.tanh %37 : vector<2x64xf32>
    %39 = vector.extract_strided_slice %24 {offsets = [0, 192], sizes = [2, 64], strides = [1, 1]} : vector<2x256xf32> to vector<2x64xf32>
    %40 = arith.negf %39 : vector<2x64xf32>
    %41 = math.exp %40 : vector<2x64xf32>
    %cst_27 = arith.constant 1.000000e+00 : f32
    %42 = vector.broadcast %cst_27 : f32 to vector<2x64xf32>
    %43 = arith.addf %42, %41 : vector<2x64xf32>
    %44 = arith.divf %42, %43 : vector<2x64xf32>
    %45 = arith.mulf %36, %17 : vector<2x64xf32>
    %46 = arith.mulf %30, %38 : vector<2x64xf32>
    %47 = arith.addf %45, %46 : vector<2x64xf32>
    %48 = math.tanh %47 : vector<2x64xf32>
    %49 = arith.mulf %44, %48 : vector<2x64xf32>
    %cst_28 = arith.constant dense<0.000000e+00> : vector<2xf32>
    %50 = vector.multi_reduction <add>, %49, %cst_28 [1] : vector<2x64xf32> to vector<2xf32>
    %51 = vector.shape_cast %50 : vector<2xf32> to vector<2x1xf32>
    %cst_29 = arith.constant 6.400000e+01 : f32
    %52 = vector.broadcast %cst_29 : f32 to vector<2x1xf32>
    %53 = arith.divf %51, %52 : vector<2x1xf32>
    %54 = vector.broadcast %53 : vector<2x1xf32> to vector<2x64xf32>
    %55 = arith.subf %49, %54 : vector<2x64xf32>
    %56 = arith.mulf %55, %55 : vector<2x64xf32>
    %cst_30 = arith.constant dense<0.000000e+00> : vector<2xf32>
    %57 = vector.multi_reduction <add>, %56, %cst_30 [1] : vector<2x64xf32> to vector<2xf32>
    %58 = vector.shape_cast %57 : vector<2xf32> to vector<2x1xf32>
    %cst_31 = arith.constant 6.400000e+01 : f32
    %59 = vector.broadcast %cst_31 : f32 to vector<2x1xf32>
    %60 = arith.divf %58, %59 : vector<2x1xf32>
    %61 = vector.broadcast %53 : vector<2x1xf32> to vector<2x64xf32>
    %62 = arith.subf %49, %61 : vector<2x64xf32>
    %cst_32 = arith.constant 9.99999974E-6 : f32
    %63 = vector.broadcast %cst_32 : f32 to vector<2x1xf32>
    %64 = arith.addf %60, %63 : vector<2x1xf32>
    %65 = math.rsqrt %64 : vector<2x1xf32>
    %66 = vector.broadcast %65 : vector<2x1xf32> to vector<2x64xf32>
    %67 = arith.mulf %62, %66 : vector<2x64xf32>
    %68 = vector.broadcast %13 : vector<1x64xf32> to vector<2x64xf32>
    %69 = arith.mulf %67, %68 : vector<2x64xf32>
    %70 = vector.broadcast %14 : vector<1x64xf32> to vector<2x64xf32>
    %71 = arith.addf %69, %70 : vector<2x64xf32>
    %72 = vector.extract_strided_slice %21 {offsets = [0, 256], sizes = [2, 128], strides = [1, 1]} : vector<2x384xf32> to vector<2x128xf32>
    %cst_33 = arith.constant dense<0.000000e+00> : vector<2x128xf32>
    %73 = tpu.matmul %71, %12, %cst_33 {dimension_numbers = #tpu.dot_dimension_numbers<[1], [0], [0], [1], [0, 0, 1, 1], [], []>} : vector<2x64xf32>, vector<64x128xf32>, vector<2x128xf32> -> vector<2x128xf32>
    %74 = arith.addf %72, %73 : vector<2x128xf32>
    %75 = vector.broadcast %15 : vector<1x128xf32> to vector<2x128xf32>
    %76 = arith.addf %74, %75 : vector<2x128xf32>
    %77 = vector.extract_strided_slice %76 {offsets = [0, 0], sizes = [2, 32], strides = [1, 1]} : vector<2x128xf32> to vector<2x32xf32>
    %78 = arith.negf %77 : vector<2x32xf32>
    %79 = math.exp %78 : vector<2x32xf32>
    %cst_34 = arith.constant 1.000000e+00 : f32
    %80 = vector.broadcast %cst_34 : f32 to vector<2x32xf32>
    %81 = arith.addf %80, %79 : vector<2x32xf32>
    %82 = arith.divf %80, %81 : vector<2x32xf32>
    %83 = vector.extract_strided_slice %76 {offsets = [0, 32], sizes = [2, 32], strides = [1, 1]} : vector<2x128xf32> to vector<2x32xf32>
    %84 = arith.negf %83 : vector<2x32xf32>
    %85 = math.exp %84 : vector<2x32xf32>
    %cst_35 = arith.constant 1.000000e+00 : f32
    %86 = vector.broadcast %cst_35 : f32 to vector<2x32xf32>
    %87 = arith.addf %86, %85 : vector<2x32xf32>
    %88 = arith.divf %86, %87 : vector<2x32xf32>
    %89 = vector.extract_strided_slice %76 {offsets = [0, 64], sizes = [2, 32], strides = [1, 1]} : vector<2x128xf32> to vector<2x32xf32>
    %90 = math.tanh %89 : vector<2x32xf32>
    %91 = vector.extract_strided_slice %76 {offsets = [0, 96], sizes = [2, 32], strides = [1, 1]} : vector<2x128xf32> to vector<2x32xf32>
    %92 = arith.negf %91 : vector<2x32xf32>
    %93 = math.exp %92 : vector<2x32xf32>
    %cst_36 = arith.constant 1.000000e+00 : f32
    %94 = vector.broadcast %cst_36 : f32 to vector<2x32xf32>
    %95 = arith.addf %94, %93 : vector<2x32xf32>
    %96 = arith.divf %94, %95 : vector<2x32xf32>
    %97 = arith.mulf %88, %19 : vector<2x32xf32>
    %98 = arith.mulf %82, %90 : vector<2x32xf32>
    %99 = arith.addf %97, %98 : vector<2x32xf32>
    %100 = math.tanh %99 : vector<2x32xf32>
    %101 = arith.mulf %96, %100 : vector<2x32xf32>
    %102 = tpu.concatenate %49, %101 in 1 : vector<2x64xf32>, vector<2x32xf32> -> vector<2x96xf32>
    %cst_37 = arith.constant dense<0.000000e+00> : vector<2x384xf32>
    %103 = tpu.matmul %102, %11, %cst_37 {dimension_numbers = #tpu.dot_dimension_numbers<[1], [0], [0], [1], [0, 0, 1, 1], [], []>} : vector<2x96xf32>, vector<96x384xf32>, vector<2x384xf32> -> vector<2x384xf32>
    %104 = vector.extract_strided_slice %10 {offsets = [2, 0], sizes = [2, 256], strides = [1, 1]} : vector<16x256xf32> to vector<2x256xf32>
    %105 = vector.extract_strided_slice %103 {offsets = [0, 0], sizes = [2, 256], strides = [1, 1]} : vector<2x384xf32> to vector<2x256xf32>
    %106 = arith.addf %104, %105 : vector<2x256xf32>
    %107 = vector.extract_strided_slice %106 {offsets = [0, 0], sizes = [2, 64], strides = [1, 1]} : vector<2x256xf32> to vector<2x64xf32>
    %108 = arith.negf %107 : vector<2x64xf32>
    %109 = math.exp %108 : vector<2x64xf32>
    %cst_38 = arith.constant 1.000000e+00 : f32
    %110 = vector.broadcast %cst_38 : f32 to vector<2x64xf32>
    %111 = arith.addf %110, %109 : vector<2x64xf32>
    %112 = arith.divf %110, %111 : vector<2x64xf32>
    %113 = vector.extract_strided_slice %106 {offsets = [0, 64], sizes = [2, 64], strides = [1, 1]} : vector<2x256xf32> to vector<2x64xf32>
    %114 = arith.negf %113 : vector<2x64xf32>
    %115 = math.exp %114 : vector<2x64xf32>
    %cst_39 = arith.constant 1.000000e+00 : f32
    %116 = vector.broadcast %cst_39 : f32 to vector<2x64xf32>
    %117 = arith.addf %116, %115 : vector<2x64xf32>
    %118 = arith.divf %116, %117 : vector<2x64xf32>
    %119 = vector.extract_strided_slice %106 {offsets = [0, 128], sizes = [2, 64], strides = [1, 1]} : vector<2x256xf32> to vector<2x64xf32>
    %120 = math.tanh %119 : vector<2x64xf32>
    %121 = vector.extract_strided_slice %106 {offsets = [0, 192], sizes = [2, 64], strides = [1, 1]} : vector<2x256xf32> to vector<2x64xf32>
    %122 = arith.negf %121 : vector<2x64xf32>
    %123 = math.exp %122 : vector<2x64xf32>
    %cst_40 = arith.constant 1.000000e+00 : f32
    %124 = vector.broadcast %cst_40 : f32 to vector<2x64xf32>
    %125 = arith.addf %124, %123 : vector<2x64xf32>
    %126 = arith.divf %124, %125 : vector<2x64xf32>
    %127 = arith.mulf %118, %47 : vector<2x64xf32>
    %128 = arith.mulf %112, %120 : vector<2x64xf32>
    %129 = arith.addf %127, %128 : vector<2x64xf32>
    %130 = math.tanh %129 : vector<2x64xf32>
    %131 = arith.mulf %126, %130 : vector<2x64xf32>
    %cst_41 = arith.constant dense<0.000000e+00> : vector<2xf32>
    %132 = vector.multi_reduction <add>, %131, %cst_41 [1] : vector<2x64xf32> to vector<2xf32>
    %133 = vector.shape_cast %132 : vector<2xf32> to vector<2x1xf32>
    %cst_42 = arith.constant 6.400000e+01 : f32
    %134 = vector.broadcast %cst_42 : f32 to vector<2x1xf32>
    %135 = arith.divf %133, %134 : vector<2x1xf32>
    %136 = vector.broadcast %135 : vector<2x1xf32> to vector<2x64xf32>
    %137 = arith.subf %131, %136 : vector<2x64xf32>
    %138 = arith.mulf %137, %137 : vector<2x64xf32>
    %cst_43 = arith.constant dense<0.000000e+00> : vector<2xf32>
    %139 = vector.multi_reduction <add>, %138, %cst_43 [1] : vector<2x64xf32> to vector<2xf32>
    %140 = vector.shape_cast %139 : vector<2xf32> to vector<2x1xf32>
    %cst_44 = arith.constant 6.400000e+01 : f32
    %141 = vector.broadcast %cst_44 : f32 to vector<2x1xf32>
    %142 = arith.divf %140, %141 : vector<2x1xf32>
    %143 = vector.broadcast %135 : vector<2x1xf32> to vector<2x64xf32>
    %144 = arith.subf %131, %143 : vector<2x64xf32>
    %cst_45 = arith.constant 9.99999974E-6 : f32
    %145 = vector.broadcast %cst_45 : f32 to vector<2x1xf32>
    %146 = arith.addf %142, %145 : vector<2x1xf32>
    %147 = math.rsqrt %146 : vector<2x1xf32>
    %148 = vector.broadcast %147 : vector<2x1xf32> to vector<2x64xf32>
    %149 = arith.mulf %144, %148 : vector<2x64xf32>
    %150 = vector.broadcast %13 : vector<1x64xf32> to vector<2x64xf32>
    %151 = arith.mulf %149, %150 : vector<2x64xf32>
    %152 = vector.broadcast %14 : vector<1x64xf32> to vector<2x64xf32>
    %153 = arith.addf %151, %152 : vector<2x64xf32>
    %154 = vector.extract_strided_slice %103 {offsets = [0, 256], sizes = [2, 128], strides = [1, 1]} : vector<2x384xf32> to vector<2x128xf32>
    %cst_46 = arith.constant dense<0.000000e+00> : vector<2x128xf32>
    %155 = tpu.matmul %153, %12, %cst_46 {dimension_numbers = #tpu.dot_dimension_numbers<[1], [0], [0], [1], [0, 0, 1, 1], [], []>} : vector<2x64xf32>, vector<64x128xf32>, vector<2x128xf32> -> vector<2x128xf32>
    %156 = arith.addf %154, %155 : vector<2x128xf32>
    %157 = vector.broadcast %15 : vector<1x128xf32> to vector<2x128xf32>
    %158 = arith.addf %156, %157 : vector<2x128xf32>
    %159 = vector.extract_strided_slice %158 {offsets = [0, 0], sizes = [2, 32], strides = [1, 1]} : vector<2x128xf32> to vector<2x32xf32>
    %160 = arith.negf %159 : vector<2x32xf32>
    %161 = math.exp %160 : vector<2x32xf32>
    %cst_47 = arith.constant 1.000000e+00 : f32
    %162 = vector.broadcast %cst_47 : f32 to vector<2x32xf32>
    %163 = arith.addf %162, %161 : vector<2x32xf32>
    %164 = arith.divf %162, %163 : vector<2x32xf32>
    %165 = vector.extract_strided_slice %158 {offsets = [0, 32], sizes = [2, 32], strides = [1, 1]} : vector<2x128xf32> to vector<2x32xf32>
    %166 = arith.negf %165 : vector<2x32xf32>
    %167 = math.exp %166 : vector<2x32xf32>
    %cst_48 = arith.constant 1.000000e+00 : f32
    %168 = vector.broadcast %cst_48 : f32 to vector<2x32xf32>
    %169 = arith.addf %168, %167 : vector<2x32xf32>
    %170 = arith.divf %168, %169 : vector<2x32xf32>
    %171 = vector.extract_strided_slice %158 {offsets = [0, 64], sizes = [2, 32], strides = [1, 1]} : vector<2x128xf32> to vector<2x32xf32>
    %172 = math.tanh %171 : vector<2x32xf32>
    %173 = vector.extract_strided_slice %158 {offsets = [0, 96], sizes = [2, 32], strides = [1, 1]} : vector<2x128xf32> to vector<2x32xf32>
    %174 = arith.negf %173 : vector<2x32xf32>
    %175 = math.exp %174 : vector<2x32xf32>
    %cst_49 = arith.constant 1.000000e+00 : f32
    %176 = vector.broadcast %cst_49 : f32 to vector<2x32xf32>
    %177 = arith.addf %176, %175 : vector<2x32xf32>
    %178 = arith.divf %176, %177 : vector<2x32xf32>
    %179 = arith.mulf %170, %99 : vector<2x32xf32>
    %180 = arith.mulf %164, %172 : vector<2x32xf32>
    %181 = arith.addf %179, %180 : vector<2x32xf32>
    %182 = math.tanh %181 : vector<2x32xf32>
    %183 = arith.mulf %178, %182 : vector<2x32xf32>
    %184 = tpu.concatenate %131, %183 in 1 : vector<2x64xf32>, vector<2x32xf32> -> vector<2x96xf32>
    %cst_50 = arith.constant dense<0.000000e+00> : vector<2x384xf32>
    %185 = tpu.matmul %184, %11, %cst_50 {dimension_numbers = #tpu.dot_dimension_numbers<[1], [0], [0], [1], [0, 0, 1, 1], [], []>} : vector<2x96xf32>, vector<96x384xf32>, vector<2x384xf32> -> vector<2x384xf32>
    %186 = vector.extract_strided_slice %10 {offsets = [4, 0], sizes = [2, 256], strides = [1, 1]} : vector<16x256xf32> to vector<2x256xf32>
    %187 = vector.extract_strided_slice %185 {offsets = [0, 0], sizes = [2, 256], strides = [1, 1]} : vector<2x384xf32> to vector<2x256xf32>
    %188 = arith.addf %186, %187 : vector<2x256xf32>
    %189 = vector.extract_strided_slice %188 {offsets = [0, 0], sizes = [2, 64], strides = [1, 1]} : vector<2x256xf32> to vector<2x64xf32>
    %190 = arith.negf %189 : vector<2x64xf32>
    %191 = math.exp %190 : vector<2x64xf32>
    %cst_51 = arith.constant 1.000000e+00 : f32
    %192 = vector.broadcast %cst_51 : f32 to vector<2x64xf32>
    %193 = arith.addf %192, %191 : vector<2x64xf32>
    %194 = arith.divf %192, %193 : vector<2x64xf32>
    %195 = vector.extract_strided_slice %188 {offsets = [0, 64], sizes = [2, 64], strides = [1, 1]} : vector<2x256xf32> to vector<2x64xf32>
    %196 = arith.negf %195 : vector<2x64xf32>
    %197 = math.exp %196 : vector<2x64xf32>
    %cst_52 = arith.constant 1.000000e+00 : f32
    %198 = vector.broadcast %cst_52 : f32 to vector<2x64xf32>
    %199 = arith.addf %198, %197 : vector<2x64xf32>
    %200 = arith.divf %198, %199 : vector<2x64xf32>
    %201 = vector.extract_strided_slice %188 {offsets = [0, 128], sizes = [2, 64], strides = [1, 1]} : vector<2x256xf32> to vector<2x64xf32>
    %202 = math.tanh %201 : vector<2x64xf32>
    %203 = vector.extract_strided_slice %188 {offsets = [0, 192], sizes = [2, 64], strides = [1, 1]} : vector<2x256xf32> to vector<2x64xf32>
    %204 = arith.negf %203 : vector<2x64xf32>
    %205 = math.exp %204 : vector<2x64xf32>
    %cst_53 = arith.constant 1.000000e+00 : f32
    %206 = vector.broadcast %cst_53 : f32 to vector<2x64xf32>
    %207 = arith.addf %206, %205 : vector<2x64xf32>
    %208 = arith.divf %206, %207 : vector<2x64xf32>
    %209 = arith.mulf %200, %129 : vector<2x64xf32>
    %210 = arith.mulf %194, %202 : vector<2x64xf32>
    %211 = arith.addf %209, %210 : vector<2x64xf32>
    %212 = math.tanh %211 : vector<2x64xf32>
    %213 = arith.mulf %208, %212 : vector<2x64xf32>
    %cst_54 = arith.constant dense<0.000000e+00> : vector<2xf32>
    %214 = vector.multi_reduction <add>, %213, %cst_54 [1] : vector<2x64xf32> to vector<2xf32>
    %215 = vector.shape_cast %214 : vector<2xf32> to vector<2x1xf32>
    %cst_55 = arith.constant 6.400000e+01 : f32
    %216 = vector.broadcast %cst_55 : f32 to vector<2x1xf32>
    %217 = arith.divf %215, %216 : vector<2x1xf32>
    %218 = vector.broadcast %217 : vector<2x1xf32> to vector<2x64xf32>
    %219 = arith.subf %213, %218 : vector<2x64xf32>
    %220 = arith.mulf %219, %219 : vector<2x64xf32>
    %cst_56 = arith.constant dense<0.000000e+00> : vector<2xf32>
    %221 = vector.multi_reduction <add>, %220, %cst_56 [1] : vector<2x64xf32> to vector<2xf32>
    %222 = vector.shape_cast %221 : vector<2xf32> to vector<2x1xf32>
    %cst_57 = arith.constant 6.400000e+01 : f32
    %223 = vector.broadcast %cst_57 : f32 to vector<2x1xf32>
    %224 = arith.divf %222, %223 : vector<2x1xf32>
    %225 = vector.broadcast %217 : vector<2x1xf32> to vector<2x64xf32>
    %226 = arith.subf %213, %225 : vector<2x64xf32>
    %cst_58 = arith.constant 9.99999974E-6 : f32
    %227 = vector.broadcast %cst_58 : f32 to vector<2x1xf32>
    %228 = arith.addf %224, %227 : vector<2x1xf32>
    %229 = math.rsqrt %228 : vector<2x1xf32>
    %230 = vector.broadcast %229 : vector<2x1xf32> to vector<2x64xf32>
    %231 = arith.mulf %226, %230 : vector<2x64xf32>
    %232 = vector.broadcast %13 : vector<1x64xf32> to vector<2x64xf32>
    %233 = arith.mulf %231, %232 : vector<2x64xf32>
    %234 = vector.broadcast %14 : vector<1x64xf32> to vector<2x64xf32>
    %235 = arith.addf %233, %234 : vector<2x64xf32>
    %236 = vector.extract_strided_slice %185 {offsets = [0, 256], sizes = [2, 128], strides = [1, 1]} : vector<2x384xf32> to vector<2x128xf32>
    %cst_59 = arith.constant dense<0.000000e+00> : vector<2x128xf32>
    %237 = tpu.matmul %235, %12, %cst_59 {dimension_numbers = #tpu.dot_dimension_numbers<[1], [0], [0], [1], [0, 0, 1, 1], [], []>} : vector<2x64xf32>, vector<64x128xf32>, vector<2x128xf32> -> vector<2x128xf32>
    %238 = arith.addf %236, %237 : vector<2x128xf32>
    %239 = vector.broadcast %15 : vector<1x128xf32> to vector<2x128xf32>
    %240 = arith.addf %238, %239 : vector<2x128xf32>
    %241 = vector.extract_strided_slice %240 {offsets = [0, 0], sizes = [2, 32], strides = [1, 1]} : vector<2x128xf32> to vector<2x32xf32>
    %242 = arith.negf %241 : vector<2x32xf32>
    %243 = math.exp %242 : vector<2x32xf32>
    %cst_60 = arith.constant 1.000000e+00 : f32
    %244 = vector.broadcast %cst_60 : f32 to vector<2x32xf32>
    %245 = arith.addf %244, %243 : vector<2x32xf32>
    %246 = arith.divf %244, %245 : vector<2x32xf32>
    %247 = vector.extract_strided_slice %240 {offsets = [0, 32], sizes = [2, 32], strides = [1, 1]} : vector<2x128xf32> to vector<2x32xf32>
    %248 = arith.negf %247 : vector<2x32xf32>
    %249 = math.exp %248 : vector<2x32xf32>
    %cst_61 = arith.constant 1.000000e+00 : f32
    %250 = vector.broadcast %cst_61 : f32 to vector<2x32xf32>
    %251 = arith.addf %250, %249 : vector<2x32xf32>
    %252 = arith.divf %250, %251 : vector<2x32xf32>
    %253 = vector.extract_strided_slice %240 {offsets = [0, 64], sizes = [2, 32], strides = [1, 1]} : vector<2x128xf32> to vector<2x32xf32>
    %254 = math.tanh %253 : vector<2x32xf32>
    %255 = vector.extract_strided_slice %240 {offsets = [0, 96], sizes = [2, 32], strides = [1, 1]} : vector<2x128xf32> to vector<2x32xf32>
    %256 = arith.negf %255 : vector<2x32xf32>
    %257 = math.exp %256 : vector<2x32xf32>
    %cst_62 = arith.constant 1.000000e+00 : f32
    %258 = vector.broadcast %cst_62 : f32 to vector<2x32xf32>
    %259 = arith.addf %258, %257 : vector<2x32xf32>
    %260 = arith.divf %258, %259 : vector<2x32xf32>
    %261 = arith.mulf %252, %181 : vector<2x32xf32>
    %262 = arith.mulf %246, %254 : vector<2x32xf32>
    %263 = arith.addf %261, %262 : vector<2x32xf32>
    %264 = math.tanh %263 : vector<2x32xf32>
    %265 = arith.mulf %260, %264 : vector<2x32xf32>
    %266 = tpu.concatenate %213, %265 in 1 : vector<2x64xf32>, vector<2x32xf32> -> vector<2x96xf32>
    %cst_63 = arith.constant dense<0.000000e+00> : vector<2x384xf32>
    %267 = tpu.matmul %266, %11, %cst_63 {dimension_numbers = #tpu.dot_dimension_numbers<[1], [0], [0], [1], [0, 0, 1, 1], [], []>} : vector<2x96xf32>, vector<96x384xf32>, vector<2x384xf32> -> vector<2x384xf32>
    %268 = vector.extract_strided_slice %10 {offsets = [6, 0], sizes = [2, 256], strides = [1, 1]} : vector<16x256xf32> to vector<2x256xf32>
    %269 = vector.extract_strided_slice %267 {offsets = [0, 0], sizes = [2, 256], strides = [1, 1]} : vector<2x384xf32> to vector<2x256xf32>
    %270 = arith.addf %268, %269 : vector<2x256xf32>
    %271 = vector.extract_strided_slice %270 {offsets = [0, 0], sizes = [2, 64], strides = [1, 1]} : vector<2x256xf32> to vector<2x64xf32>
    %272 = arith.negf %271 : vector<2x64xf32>
    %273 = math.exp %272 : vector<2x64xf32>
    %cst_64 = arith.constant 1.000000e+00 : f32
    %274 = vector.broadcast %cst_64 : f32 to vector<2x64xf32>
    %275 = arith.addf %274, %273 : vector<2x64xf32>
    %276 = arith.divf %274, %275 : vector<2x64xf32>
    %277 = vector.extract_strided_slice %270 {offsets = [0, 64], sizes = [2, 64], strides = [1, 1]} : vector<2x256xf32> to vector<2x64xf32>
    %278 = arith.negf %277 : vector<2x64xf32>
    %279 = math.exp %278 : vector<2x64xf32>
    %cst_65 = arith.constant 1.000000e+00 : f32
    %280 = vector.broadcast %cst_65 : f32 to vector<2x64xf32>
    %281 = arith.addf %280, %279 : vector<2x64xf32>
    %282 = arith.divf %280, %281 : vector<2x64xf32>
    %283 = vector.extract_strided_slice %270 {offsets = [0, 128], sizes = [2, 64], strides = [1, 1]} : vector<2x256xf32> to vector<2x64xf32>
    %284 = math.tanh %283 : vector<2x64xf32>
    %285 = vector.extract_strided_slice %270 {offsets = [0, 192], sizes = [2, 64], strides = [1, 1]} : vector<2x256xf32> to vector<2x64xf32>
    %286 = arith.negf %285 : vector<2x64xf32>
    %287 = math.exp %286 : vector<2x64xf32>
    %cst_66 = arith.constant 1.000000e+00 : f32
    %288 = vector.broadcast %cst_66 : f32 to vector<2x64xf32>
    %289 = arith.addf %288, %287 : vector<2x64xf32>
    %290 = arith.divf %288, %289 : vector<2x64xf32>
    %291 = arith.mulf %282, %211 : vector<2x64xf32>
    %292 = arith.mulf %276, %284 : vector<2x64xf32>
    %293 = arith.addf %291, %292 : vector<2x64xf32>
    %294 = math.tanh %293 : vector<2x64xf32>
    %295 = arith.mulf %290, %294 : vector<2x64xf32>
    %cst_67 = arith.constant dense<0.000000e+00> : vector<2xf32>
    %296 = vector.multi_reduction <add>, %295, %cst_67 [1] : vector<2x64xf32> to vector<2xf32>
    %297 = vector.shape_cast %296 : vector<2xf32> to vector<2x1xf32>
    %cst_68 = arith.constant 6.400000e+01 : f32
    %298 = vector.broadcast %cst_68 : f32 to vector<2x1xf32>
    %299 = arith.divf %297, %298 : vector<2x1xf32>
    %300 = vector.broadcast %299 : vector<2x1xf32> to vector<2x64xf32>
    %301 = arith.subf %295, %300 : vector<2x64xf32>
    %302 = arith.mulf %301, %301 : vector<2x64xf32>
    %cst_69 = arith.constant dense<0.000000e+00> : vector<2xf32>
    %303 = vector.multi_reduction <add>, %302, %cst_69 [1] : vector<2x64xf32> to vector<2xf32>
    %304 = vector.shape_cast %303 : vector<2xf32> to vector<2x1xf32>
    %cst_70 = arith.constant 6.400000e+01 : f32
    %305 = vector.broadcast %cst_70 : f32 to vector<2x1xf32>
    %306 = arith.divf %304, %305 : vector<2x1xf32>
    %307 = vector.broadcast %299 : vector<2x1xf32> to vector<2x64xf32>
    %308 = arith.subf %295, %307 : vector<2x64xf32>
    %cst_71 = arith.constant 9.99999974E-6 : f32
    %309 = vector.broadcast %cst_71 : f32 to vector<2x1xf32>
    %310 = arith.addf %306, %309 : vector<2x1xf32>
    %311 = math.rsqrt %310 : vector<2x1xf32>
    %312 = vector.broadcast %311 : vector<2x1xf32> to vector<2x64xf32>
    %313 = arith.mulf %308, %312 : vector<2x64xf32>
    %314 = vector.broadcast %13 : vector<1x64xf32> to vector<2x64xf32>
    %315 = arith.mulf %313, %314 : vector<2x64xf32>
    %316 = vector.broadcast %14 : vector<1x64xf32> to vector<2x64xf32>
    %317 = arith.addf %315, %316 : vector<2x64xf32>
    %318 = vector.extract_strided_slice %267 {offsets = [0, 256], sizes = [2, 128], strides = [1, 1]} : vector<2x384xf32> to vector<2x128xf32>
    %cst_72 = arith.constant dense<0.000000e+00> : vector<2x128xf32>
    %319 = tpu.matmul %317, %12, %cst_72 {dimension_numbers = #tpu.dot_dimension_numbers<[1], [0], [0], [1], [0, 0, 1, 1], [], []>} : vector<2x64xf32>, vector<64x128xf32>, vector<2x128xf32> -> vector<2x128xf32>
    %320 = arith.addf %318, %319 : vector<2x128xf32>
    %321 = vector.broadcast %15 : vector<1x128xf32> to vector<2x128xf32>
    %322 = arith.addf %320, %321 : vector<2x128xf32>
    %323 = vector.extract_strided_slice %322 {offsets = [0, 0], sizes = [2, 32], strides = [1, 1]} : vector<2x128xf32> to vector<2x32xf32>
    %324 = arith.negf %323 : vector<2x32xf32>
    %325 = math.exp %324 : vector<2x32xf32>
    %cst_73 = arith.constant 1.000000e+00 : f32
    %326 = vector.broadcast %cst_73 : f32 to vector<2x32xf32>
    %327 = arith.addf %326, %325 : vector<2x32xf32>
    %328 = arith.divf %326, %327 : vector<2x32xf32>
    %329 = vector.extract_strided_slice %322 {offsets = [0, 32], sizes = [2, 32], strides = [1, 1]} : vector<2x128xf32> to vector<2x32xf32>
    %330 = arith.negf %329 : vector<2x32xf32>
    %331 = math.exp %330 : vector<2x32xf32>
    %cst_74 = arith.constant 1.000000e+00 : f32
    %332 = vector.broadcast %cst_74 : f32 to vector<2x32xf32>
    %333 = arith.addf %332, %331 : vector<2x32xf32>
    %334 = arith.divf %332, %333 : vector<2x32xf32>
    %335 = vector.extract_strided_slice %322 {offsets = [0, 64], sizes = [2, 32], strides = [1, 1]} : vector<2x128xf32> to vector<2x32xf32>
    %336 = math.tanh %335 : vector<2x32xf32>
    %337 = vector.extract_strided_slice %322 {offsets = [0, 96], sizes = [2, 32], strides = [1, 1]} : vector<2x128xf32> to vector<2x32xf32>
    %338 = arith.negf %337 : vector<2x32xf32>
    %339 = math.exp %338 : vector<2x32xf32>
    %cst_75 = arith.constant 1.000000e+00 : f32
    %340 = vector.broadcast %cst_75 : f32 to vector<2x32xf32>
    %341 = arith.addf %340, %339 : vector<2x32xf32>
    %342 = arith.divf %340, %341 : vector<2x32xf32>
    %343 = arith.mulf %334, %263 : vector<2x32xf32>
    %344 = arith.mulf %328, %336 : vector<2x32xf32>
    %345 = arith.addf %343, %344 : vector<2x32xf32>
    %346 = math.tanh %345 : vector<2x32xf32>
    %347 = arith.mulf %342, %346 : vector<2x32xf32>
    %348 = tpu.concatenate %295, %347 in 1 : vector<2x64xf32>, vector<2x32xf32> -> vector<2x96xf32>
    %cst_76 = arith.constant dense<0.000000e+00> : vector<2x384xf32>
    %349 = tpu.matmul %348, %11, %cst_76 {dimension_numbers = #tpu.dot_dimension_numbers<[1], [0], [0], [1], [0, 0, 1, 1], [], []>} : vector<2x96xf32>, vector<96x384xf32>, vector<2x384xf32> -> vector<2x384xf32>
    %350 = vector.extract_strided_slice %10 {offsets = [8, 0], sizes = [2, 256], strides = [1, 1]} : vector<16x256xf32> to vector<2x256xf32>
    %351 = vector.extract_strided_slice %349 {offsets = [0, 0], sizes = [2, 256], strides = [1, 1]} : vector<2x384xf32> to vector<2x256xf32>
    %352 = arith.addf %350, %351 : vector<2x256xf32>
    %353 = vector.extract_strided_slice %352 {offsets = [0, 0], sizes = [2, 64], strides = [1, 1]} : vector<2x256xf32> to vector<2x64xf32>
    %354 = arith.negf %353 : vector<2x64xf32>
    %355 = math.exp %354 : vector<2x64xf32>
    %cst_77 = arith.constant 1.000000e+00 : f32
    %356 = vector.broadcast %cst_77 : f32 to vector<2x64xf32>
    %357 = arith.addf %356, %355 : vector<2x64xf32>
    %358 = arith.divf %356, %357 : vector<2x64xf32>
    %359 = vector.extract_strided_slice %352 {offsets = [0, 64], sizes = [2, 64], strides = [1, 1]} : vector<2x256xf32> to vector<2x64xf32>
    %360 = arith.negf %359 : vector<2x64xf32>
    %361 = math.exp %360 : vector<2x64xf32>
    %cst_78 = arith.constant 1.000000e+00 : f32
    %362 = vector.broadcast %cst_78 : f32 to vector<2x64xf32>
    %363 = arith.addf %362, %361 : vector<2x64xf32>
    %364 = arith.divf %362, %363 : vector<2x64xf32>
    %365 = vector.extract_strided_slice %352 {offsets = [0, 128], sizes = [2, 64], strides = [1, 1]} : vector<2x256xf32> to vector<2x64xf32>
    %366 = math.tanh %365 : vector<2x64xf32>
    %367 = vector.extract_strided_slice %352 {offsets = [0, 192], sizes = [2, 64], strides = [1, 1]} : vector<2x256xf32> to vector<2x64xf32>
    %368 = arith.negf %367 : vector<2x64xf32>
    %369 = math.exp %368 : vector<2x64xf32>
    %cst_79 = arith.constant 1.000000e+00 : f32
    %370 = vector.broadcast %cst_79 : f32 to vector<2x64xf32>
    %371 = arith.addf %370, %369 : vector<2x64xf32>
    %372 = arith.divf %370, %371 : vector<2x64xf32>
    %373 = arith.mulf %364, %293 : vector<2x64xf32>
    %374 = arith.mulf %358, %366 : vector<2x64xf32>
    %375 = arith.addf %373, %374 : vector<2x64xf32>
    %376 = math.tanh %375 : vector<2x64xf32>
    %377 = arith.mulf %372, %376 : vector<2x64xf32>
    %cst_80 = arith.constant dense<0.000000e+00> : vector<2xf32>
    %378 = vector.multi_reduction <add>, %377, %cst_80 [1] : vector<2x64xf32> to vector<2xf32>
    %379 = vector.shape_cast %378 : vector<2xf32> to vector<2x1xf32>
    %cst_81 = arith.constant 6.400000e+01 : f32
    %380 = vector.broadcast %cst_81 : f32 to vector<2x1xf32>
    %381 = arith.divf %379, %380 : vector<2x1xf32>
    %382 = vector.broadcast %381 : vector<2x1xf32> to vector<2x64xf32>
    %383 = arith.subf %377, %382 : vector<2x64xf32>
    %384 = arith.mulf %383, %383 : vector<2x64xf32>
    %cst_82 = arith.constant dense<0.000000e+00> : vector<2xf32>
    %385 = vector.multi_reduction <add>, %384, %cst_82 [1] : vector<2x64xf32> to vector<2xf32>
    %386 = vector.shape_cast %385 : vector<2xf32> to vector<2x1xf32>
    %cst_83 = arith.constant 6.400000e+01 : f32
    %387 = vector.broadcast %cst_83 : f32 to vector<2x1xf32>
    %388 = arith.divf %386, %387 : vector<2x1xf32>
    %389 = vector.broadcast %381 : vector<2x1xf32> to vector<2x64xf32>
    %390 = arith.subf %377, %389 : vector<2x64xf32>
    %cst_84 = arith.constant 9.99999974E-6 : f32
    %391 = vector.broadcast %cst_84 : f32 to vector<2x1xf32>
    %392 = arith.addf %388, %391 : vector<2x1xf32>
    %393 = math.rsqrt %392 : vector<2x1xf32>
    %394 = vector.broadcast %393 : vector<2x1xf32> to vector<2x64xf32>
    %395 = arith.mulf %390, %394 : vector<2x64xf32>
    %396 = vector.broadcast %13 : vector<1x64xf32> to vector<2x64xf32>
    %397 = arith.mulf %395, %396 : vector<2x64xf32>
    %398 = vector.broadcast %14 : vector<1x64xf32> to vector<2x64xf32>
    %399 = arith.addf %397, %398 : vector<2x64xf32>
    %400 = vector.extract_strided_slice %349 {offsets = [0, 256], sizes = [2, 128], strides = [1, 1]} : vector<2x384xf32> to vector<2x128xf32>
    %cst_85 = arith.constant dense<0.000000e+00> : vector<2x128xf32>
    %401 = tpu.matmul %399, %12, %cst_85 {dimension_numbers = #tpu.dot_dimension_numbers<[1], [0], [0], [1], [0, 0, 1, 1], [], []>} : vector<2x64xf32>, vector<64x128xf32>, vector<2x128xf32> -> vector<2x128xf32>
    %402 = arith.addf %400, %401 : vector<2x128xf32>
    %403 = vector.broadcast %15 : vector<1x128xf32> to vector<2x128xf32>
    %404 = arith.addf %402, %403 : vector<2x128xf32>
    %405 = vector.extract_strided_slice %404 {offsets = [0, 0], sizes = [2, 32], strides = [1, 1]} : vector<2x128xf32> to vector<2x32xf32>
    %406 = arith.negf %405 : vector<2x32xf32>
    %407 = math.exp %406 : vector<2x32xf32>
    %cst_86 = arith.constant 1.000000e+00 : f32
    %408 = vector.broadcast %cst_86 : f32 to vector<2x32xf32>
    %409 = arith.addf %408, %407 : vector<2x32xf32>
    %410 = arith.divf %408, %409 : vector<2x32xf32>
    %411 = vector.extract_strided_slice %404 {offsets = [0, 32], sizes = [2, 32], strides = [1, 1]} : vector<2x128xf32> to vector<2x32xf32>
    %412 = arith.negf %411 : vector<2x32xf32>
    %413 = math.exp %412 : vector<2x32xf32>
    %cst_87 = arith.constant 1.000000e+00 : f32
    %414 = vector.broadcast %cst_87 : f32 to vector<2x32xf32>
    %415 = arith.addf %414, %413 : vector<2x32xf32>
    %416 = arith.divf %414, %415 : vector<2x32xf32>
    %417 = vector.extract_strided_slice %404 {offsets = [0, 64], sizes = [2, 32], strides = [1, 1]} : vector<2x128xf32> to vector<2x32xf32>
    %418 = math.tanh %417 : vector<2x32xf32>
    %419 = vector.extract_strided_slice %404 {offsets = [0, 96], sizes = [2, 32], strides = [1, 1]} : vector<2x128xf32> to vector<2x32xf32>
    %420 = arith.negf %419 : vector<2x32xf32>
    %421 = math.exp %420 : vector<2x32xf32>
    %cst_88 = arith.constant 1.000000e+00 : f32
    %422 = vector.broadcast %cst_88 : f32 to vector<2x32xf32>
    %423 = arith.addf %422, %421 : vector<2x32xf32>
    %424 = arith.divf %422, %423 : vector<2x32xf32>
    %425 = arith.mulf %416, %345 : vector<2x32xf32>
    %426 = arith.mulf %410, %418 : vector<2x32xf32>
    %427 = arith.addf %425, %426 : vector<2x32xf32>
    %428 = math.tanh %427 : vector<2x32xf32>
    %429 = arith.mulf %424, %428 : vector<2x32xf32>
    %430 = tpu.concatenate %377, %429 in 1 : vector<2x64xf32>, vector<2x32xf32> -> vector<2x96xf32>
    %cst_89 = arith.constant dense<0.000000e+00> : vector<2x384xf32>
    %431 = tpu.matmul %430, %11, %cst_89 {dimension_numbers = #tpu.dot_dimension_numbers<[1], [0], [0], [1], [0, 0, 1, 1], [], []>} : vector<2x96xf32>, vector<96x384xf32>, vector<2x384xf32> -> vector<2x384xf32>
    %432 = vector.extract_strided_slice %10 {offsets = [10, 0], sizes = [2, 256], strides = [1, 1]} : vector<16x256xf32> to vector<2x256xf32>
    %433 = vector.extract_strided_slice %431 {offsets = [0, 0], sizes = [2, 256], strides = [1, 1]} : vector<2x384xf32> to vector<2x256xf32>
    %434 = arith.addf %432, %433 : vector<2x256xf32>
    %435 = vector.extract_strided_slice %434 {offsets = [0, 0], sizes = [2, 64], strides = [1, 1]} : vector<2x256xf32> to vector<2x64xf32>
    %436 = arith.negf %435 : vector<2x64xf32>
    %437 = math.exp %436 : vector<2x64xf32>
    %cst_90 = arith.constant 1.000000e+00 : f32
    %438 = vector.broadcast %cst_90 : f32 to vector<2x64xf32>
    %439 = arith.addf %438, %437 : vector<2x64xf32>
    %440 = arith.divf %438, %439 : vector<2x64xf32>
    %441 = vector.extract_strided_slice %434 {offsets = [0, 64], sizes = [2, 64], strides = [1, 1]} : vector<2x256xf32> to vector<2x64xf32>
    %442 = arith.negf %441 : vector<2x64xf32>
    %443 = math.exp %442 : vector<2x64xf32>
    %cst_91 = arith.constant 1.000000e+00 : f32
    %444 = vector.broadcast %cst_91 : f32 to vector<2x64xf32>
    %445 = arith.addf %444, %443 : vector<2x64xf32>
    %446 = arith.divf %444, %445 : vector<2x64xf32>
    %447 = vector.extract_strided_slice %434 {offsets = [0, 128], sizes = [2, 64], strides = [1, 1]} : vector<2x256xf32> to vector<2x64xf32>
    %448 = math.tanh %447 : vector<2x64xf32>
    %449 = vector.extract_strided_slice %434 {offsets = [0, 192], sizes = [2, 64], strides = [1, 1]} : vector<2x256xf32> to vector<2x64xf32>
    %450 = arith.negf %449 : vector<2x64xf32>
    %451 = math.exp %450 : vector<2x64xf32>
    %cst_92 = arith.constant 1.000000e+00 : f32
    %452 = vector.broadcast %cst_92 : f32 to vector<2x64xf32>
    %453 = arith.addf %452, %451 : vector<2x64xf32>
    %454 = arith.divf %452, %453 : vector<2x64xf32>
    %455 = arith.mulf %446, %375 : vector<2x64xf32>
    %456 = arith.mulf %440, %448 : vector<2x64xf32>
    %457 = arith.addf %455, %456 : vector<2x64xf32>
    %458 = math.tanh %457 : vector<2x64xf32>
    %459 = arith.mulf %454, %458 : vector<2x64xf32>
    %cst_93 = arith.constant dense<0.000000e+00> : vector<2xf32>
    %460 = vector.multi_reduction <add>, %459, %cst_93 [1] : vector<2x64xf32> to vector<2xf32>
    %461 = vector.shape_cast %460 : vector<2xf32> to vector<2x1xf32>
    %cst_94 = arith.constant 6.400000e+01 : f32
    %462 = vector.broadcast %cst_94 : f32 to vector<2x1xf32>
    %463 = arith.divf %461, %462 : vector<2x1xf32>
    %464 = vector.broadcast %463 : vector<2x1xf32> to vector<2x64xf32>
    %465 = arith.subf %459, %464 : vector<2x64xf32>
    %466 = arith.mulf %465, %465 : vector<2x64xf32>
    %cst_95 = arith.constant dense<0.000000e+00> : vector<2xf32>
    %467 = vector.multi_reduction <add>, %466, %cst_95 [1] : vector<2x64xf32> to vector<2xf32>
    %468 = vector.shape_cast %467 : vector<2xf32> to vector<2x1xf32>
    %cst_96 = arith.constant 6.400000e+01 : f32
    %469 = vector.broadcast %cst_96 : f32 to vector<2x1xf32>
    %470 = arith.divf %468, %469 : vector<2x1xf32>
    %471 = vector.broadcast %463 : vector<2x1xf32> to vector<2x64xf32>
    %472 = arith.subf %459, %471 : vector<2x64xf32>
    %cst_97 = arith.constant 9.99999974E-6 : f32
    %473 = vector.broadcast %cst_97 : f32 to vector<2x1xf32>
    %474 = arith.addf %470, %473 : vector<2x1xf32>
    %475 = math.rsqrt %474 : vector<2x1xf32>
    %476 = vector.broadcast %475 : vector<2x1xf32> to vector<2x64xf32>
    %477 = arith.mulf %472, %476 : vector<2x64xf32>
    %478 = vector.broadcast %13 : vector<1x64xf32> to vector<2x64xf32>
    %479 = arith.mulf %477, %478 : vector<2x64xf32>
    %480 = vector.broadcast %14 : vector<1x64xf32> to vector<2x64xf32>
    %481 = arith.addf %479, %480 : vector<2x64xf32>
    %482 = vector.extract_strided_slice %431 {offsets = [0, 256], sizes = [2, 128], strides = [1, 1]} : vector<2x384xf32> to vector<2x128xf32>
    %cst_98 = arith.constant dense<0.000000e+00> : vector<2x128xf32>
    %483 = tpu.matmul %481, %12, %cst_98 {dimension_numbers = #tpu.dot_dimension_numbers<[1], [0], [0], [1], [0, 0, 1, 1], [], []>} : vector<2x64xf32>, vector<64x128xf32>, vector<2x128xf32> -> vector<2x128xf32>
    %484 = arith.addf %482, %483 : vector<2x128xf32>
    %485 = vector.broadcast %15 : vector<1x128xf32> to vector<2x128xf32>
    %486 = arith.addf %484, %485 : vector<2x128xf32>
    %487 = vector.extract_strided_slice %486 {offsets = [0, 0], sizes = [2, 32], strides = [1, 1]} : vector<2x128xf32> to vector<2x32xf32>
    %488 = arith.negf %487 : vector<2x32xf32>
    %489 = math.exp %488 : vector<2x32xf32>
    %cst_99 = arith.constant 1.000000e+00 : f32
    %490 = vector.broadcast %cst_99 : f32 to vector<2x32xf32>
    %491 = arith.addf %490, %489 : vector<2x32xf32>
    %492 = arith.divf %490, %491 : vector<2x32xf32>
    %493 = vector.extract_strided_slice %486 {offsets = [0, 32], sizes = [2, 32], strides = [1, 1]} : vector<2x128xf32> to vector<2x32xf32>
    %494 = arith.negf %493 : vector<2x32xf32>
    %495 = math.exp %494 : vector<2x32xf32>
    %cst_100 = arith.constant 1.000000e+00 : f32
    %496 = vector.broadcast %cst_100 : f32 to vector<2x32xf32>
    %497 = arith.addf %496, %495 : vector<2x32xf32>
    %498 = arith.divf %496, %497 : vector<2x32xf32>
    %499 = vector.extract_strided_slice %486 {offsets = [0, 64], sizes = [2, 32], strides = [1, 1]} : vector<2x128xf32> to vector<2x32xf32>
    %500 = math.tanh %499 : vector<2x32xf32>
    %501 = vector.extract_strided_slice %486 {offsets = [0, 96], sizes = [2, 32], strides = [1, 1]} : vector<2x128xf32> to vector<2x32xf32>
    %502 = arith.negf %501 : vector<2x32xf32>
    %503 = math.exp %502 : vector<2x32xf32>
    %cst_101 = arith.constant 1.000000e+00 : f32
    %504 = vector.broadcast %cst_101 : f32 to vector<2x32xf32>
    %505 = arith.addf %504, %503 : vector<2x32xf32>
    %506 = arith.divf %504, %505 : vector<2x32xf32>
    %507 = arith.mulf %498, %427 : vector<2x32xf32>
    %508 = arith.mulf %492, %500 : vector<2x32xf32>
    %509 = arith.addf %507, %508 : vector<2x32xf32>
    %510 = math.tanh %509 : vector<2x32xf32>
    %511 = arith.mulf %506, %510 : vector<2x32xf32>
    %512 = tpu.concatenate %459, %511 in 1 : vector<2x64xf32>, vector<2x32xf32> -> vector<2x96xf32>
    %cst_102 = arith.constant dense<0.000000e+00> : vector<2x384xf32>
    %513 = tpu.matmul %512, %11, %cst_102 {dimension_numbers = #tpu.dot_dimension_numbers<[1], [0], [0], [1], [0, 0, 1, 1], [], []>} : vector<2x96xf32>, vector<96x384xf32>, vector<2x384xf32> -> vector<2x384xf32>
    %514 = vector.extract_strided_slice %10 {offsets = [12, 0], sizes = [2, 256], strides = [1, 1]} : vector<16x256xf32> to vector<2x256xf32>
    %515 = vector.extract_strided_slice %513 {offsets = [0, 0], sizes = [2, 256], strides = [1, 1]} : vector<2x384xf32> to vector<2x256xf32>
    %516 = arith.addf %514, %515 : vector<2x256xf32>
    %517 = vector.extract_strided_slice %516 {offsets = [0, 0], sizes = [2, 64], strides = [1, 1]} : vector<2x256xf32> to vector<2x64xf32>
    %518 = arith.negf %517 : vector<2x64xf32>
    %519 = math.exp %518 : vector<2x64xf32>
    %cst_103 = arith.constant 1.000000e+00 : f32
    %520 = vector.broadcast %cst_103 : f32 to vector<2x64xf32>
    %521 = arith.addf %520, %519 : vector<2x64xf32>
    %522 = arith.divf %520, %521 : vector<2x64xf32>
    %523 = vector.extract_strided_slice %516 {offsets = [0, 64], sizes = [2, 64], strides = [1, 1]} : vector<2x256xf32> to vector<2x64xf32>
    %524 = arith.negf %523 : vector<2x64xf32>
    %525 = math.exp %524 : vector<2x64xf32>
    %cst_104 = arith.constant 1.000000e+00 : f32
    %526 = vector.broadcast %cst_104 : f32 to vector<2x64xf32>
    %527 = arith.addf %526, %525 : vector<2x64xf32>
    %528 = arith.divf %526, %527 : vector<2x64xf32>
    %529 = vector.extract_strided_slice %516 {offsets = [0, 128], sizes = [2, 64], strides = [1, 1]} : vector<2x256xf32> to vector<2x64xf32>
    %530 = math.tanh %529 : vector<2x64xf32>
    %531 = vector.extract_strided_slice %516 {offsets = [0, 192], sizes = [2, 64], strides = [1, 1]} : vector<2x256xf32> to vector<2x64xf32>
    %532 = arith.negf %531 : vector<2x64xf32>
    %533 = math.exp %532 : vector<2x64xf32>
    %cst_105 = arith.constant 1.000000e+00 : f32
    %534 = vector.broadcast %cst_105 : f32 to vector<2x64xf32>
    %535 = arith.addf %534, %533 : vector<2x64xf32>
    %536 = arith.divf %534, %535 : vector<2x64xf32>
    %537 = arith.mulf %528, %457 : vector<2x64xf32>
    %538 = arith.mulf %522, %530 : vector<2x64xf32>
    %539 = arith.addf %537, %538 : vector<2x64xf32>
    %540 = math.tanh %539 : vector<2x64xf32>
    %541 = arith.mulf %536, %540 : vector<2x64xf32>
    %cst_106 = arith.constant dense<0.000000e+00> : vector<2xf32>
    %542 = vector.multi_reduction <add>, %541, %cst_106 [1] : vector<2x64xf32> to vector<2xf32>
    %543 = vector.shape_cast %542 : vector<2xf32> to vector<2x1xf32>
    %cst_107 = arith.constant 6.400000e+01 : f32
    %544 = vector.broadcast %cst_107 : f32 to vector<2x1xf32>
    %545 = arith.divf %543, %544 : vector<2x1xf32>
    %546 = vector.broadcast %545 : vector<2x1xf32> to vector<2x64xf32>
    %547 = arith.subf %541, %546 : vector<2x64xf32>
    %548 = arith.mulf %547, %547 : vector<2x64xf32>
    %cst_108 = arith.constant dense<0.000000e+00> : vector<2xf32>
    %549 = vector.multi_reduction <add>, %548, %cst_108 [1] : vector<2x64xf32> to vector<2xf32>
    %550 = vector.shape_cast %549 : vector<2xf32> to vector<2x1xf32>
    %cst_109 = arith.constant 6.400000e+01 : f32
    %551 = vector.broadcast %cst_109 : f32 to vector<2x1xf32>
    %552 = arith.divf %550, %551 : vector<2x1xf32>
    %553 = vector.broadcast %545 : vector<2x1xf32> to vector<2x64xf32>
    %554 = arith.subf %541, %553 : vector<2x64xf32>
    %cst_110 = arith.constant 9.99999974E-6 : f32
    %555 = vector.broadcast %cst_110 : f32 to vector<2x1xf32>
    %556 = arith.addf %552, %555 : vector<2x1xf32>
    %557 = math.rsqrt %556 : vector<2x1xf32>
    %558 = vector.broadcast %557 : vector<2x1xf32> to vector<2x64xf32>
    %559 = arith.mulf %554, %558 : vector<2x64xf32>
    %560 = vector.broadcast %13 : vector<1x64xf32> to vector<2x64xf32>
    %561 = arith.mulf %559, %560 : vector<2x64xf32>
    %562 = vector.broadcast %14 : vector<1x64xf32> to vector<2x64xf32>
    %563 = arith.addf %561, %562 : vector<2x64xf32>
    %564 = vector.extract_strided_slice %513 {offsets = [0, 256], sizes = [2, 128], strides = [1, 1]} : vector<2x384xf32> to vector<2x128xf32>
    %cst_111 = arith.constant dense<0.000000e+00> : vector<2x128xf32>
    %565 = tpu.matmul %563, %12, %cst_111 {dimension_numbers = #tpu.dot_dimension_numbers<[1], [0], [0], [1], [0, 0, 1, 1], [], []>} : vector<2x64xf32>, vector<64x128xf32>, vector<2x128xf32> -> vector<2x128xf32>
    %566 = arith.addf %564, %565 : vector<2x128xf32>
    %567 = vector.broadcast %15 : vector<1x128xf32> to vector<2x128xf32>
    %568 = arith.addf %566, %567 : vector<2x128xf32>
    %569 = vector.extract_strided_slice %568 {offsets = [0, 0], sizes = [2, 32], strides = [1, 1]} : vector<2x128xf32> to vector<2x32xf32>
    %570 = arith.negf %569 : vector<2x32xf32>
    %571 = math.exp %570 : vector<2x32xf32>
    %cst_112 = arith.constant 1.000000e+00 : f32
    %572 = vector.broadcast %cst_112 : f32 to vector<2x32xf32>
    %573 = arith.addf %572, %571 : vector<2x32xf32>
    %574 = arith.divf %572, %573 : vector<2x32xf32>
    %575 = vector.extract_strided_slice %568 {offsets = [0, 32], sizes = [2, 32], strides = [1, 1]} : vector<2x128xf32> to vector<2x32xf32>
    %576 = arith.negf %575 : vector<2x32xf32>
    %577 = math.exp %576 : vector<2x32xf32>
    %cst_113 = arith.constant 1.000000e+00 : f32
    %578 = vector.broadcast %cst_113 : f32 to vector<2x32xf32>
    %579 = arith.addf %578, %577 : vector<2x32xf32>
    %580 = arith.divf %578, %579 : vector<2x32xf32>
    %581 = vector.extract_strided_slice %568 {offsets = [0, 64], sizes = [2, 32], strides = [1, 1]} : vector<2x128xf32> to vector<2x32xf32>
    %582 = math.tanh %581 : vector<2x32xf32>
    %583 = vector.extract_strided_slice %568 {offsets = [0, 96], sizes = [2, 32], strides = [1, 1]} : vector<2x128xf32> to vector<2x32xf32>
    %584 = arith.negf %583 : vector<2x32xf32>
    %585 = math.exp %584 : vector<2x32xf32>
    %cst_114 = arith.constant 1.000000e+00 : f32
    %586 = vector.broadcast %cst_114 : f32 to vector<2x32xf32>
    %587 = arith.addf %586, %585 : vector<2x32xf32>
    %588 = arith.divf %586, %587 : vector<2x32xf32>
    %589 = arith.mulf %580, %509 : vector<2x32xf32>
    %590 = arith.mulf %574, %582 : vector<2x32xf32>
    %591 = arith.addf %589, %590 : vector<2x32xf32>
    %592 = math.tanh %591 : vector<2x32xf32>
    %593 = arith.mulf %588, %592 : vector<2x32xf32>
    %594 = tpu.concatenate %541, %593 in 1 : vector<2x64xf32>, vector<2x32xf32> -> vector<2x96xf32>
    %cst_115 = arith.constant dense<0.000000e+00> : vector<2x384xf32>
    %595 = tpu.matmul %594, %11, %cst_115 {dimension_numbers = #tpu.dot_dimension_numbers<[1], [0], [0], [1], [0, 0, 1, 1], [], []>} : vector<2x96xf32>, vector<96x384xf32>, vector<2x384xf32> -> vector<2x384xf32>
    %596 = vector.extract_strided_slice %10 {offsets = [14, 0], sizes = [2, 256], strides = [1, 1]} : vector<16x256xf32> to vector<2x256xf32>
    %597 = vector.extract_strided_slice %595 {offsets = [0, 0], sizes = [2, 256], strides = [1, 1]} : vector<2x384xf32> to vector<2x256xf32>
    %598 = arith.addf %596, %597 : vector<2x256xf32>
    %599 = vector.extract_strided_slice %598 {offsets = [0, 0], sizes = [2, 64], strides = [1, 1]} : vector<2x256xf32> to vector<2x64xf32>
    %600 = arith.negf %599 : vector<2x64xf32>
    %601 = math.exp %600 : vector<2x64xf32>
    %cst_116 = arith.constant 1.000000e+00 : f32
    %602 = vector.broadcast %cst_116 : f32 to vector<2x64xf32>
    %603 = arith.addf %602, %601 : vector<2x64xf32>
    %604 = arith.divf %602, %603 : vector<2x64xf32>
    %605 = vector.extract_strided_slice %598 {offsets = [0, 64], sizes = [2, 64], strides = [1, 1]} : vector<2x256xf32> to vector<2x64xf32>
    %606 = arith.negf %605 : vector<2x64xf32>
    %607 = math.exp %606 : vector<2x64xf32>
    %cst_117 = arith.constant 1.000000e+00 : f32
    %608 = vector.broadcast %cst_117 : f32 to vector<2x64xf32>
    %609 = arith.addf %608, %607 : vector<2x64xf32>
    %610 = arith.divf %608, %609 : vector<2x64xf32>
    %611 = vector.extract_strided_slice %598 {offsets = [0, 128], sizes = [2, 64], strides = [1, 1]} : vector<2x256xf32> to vector<2x64xf32>
    %612 = math.tanh %611 : vector<2x64xf32>
    %613 = vector.extract_strided_slice %598 {offsets = [0, 192], sizes = [2, 64], strides = [1, 1]} : vector<2x256xf32> to vector<2x64xf32>
    %614 = arith.negf %613 : vector<2x64xf32>
    %615 = math.exp %614 : vector<2x64xf32>
    %cst_118 = arith.constant 1.000000e+00 : f32
    %616 = vector.broadcast %cst_118 : f32 to vector<2x64xf32>
    %617 = arith.addf %616, %615 : vector<2x64xf32>
    %618 = arith.divf %616, %617 : vector<2x64xf32>
    %619 = arith.mulf %610, %539 : vector<2x64xf32>
    %620 = arith.mulf %604, %612 : vector<2x64xf32>
    %621 = arith.addf %619, %620 : vector<2x64xf32>
    %622 = math.tanh %621 : vector<2x64xf32>
    %623 = arith.mulf %618, %622 : vector<2x64xf32>
    %cst_119 = arith.constant dense<0.000000e+00> : vector<2xf32>
    %624 = vector.multi_reduction <add>, %623, %cst_119 [1] : vector<2x64xf32> to vector<2xf32>
    %625 = vector.shape_cast %624 : vector<2xf32> to vector<2x1xf32>
    %cst_120 = arith.constant 6.400000e+01 : f32
    %626 = vector.broadcast %cst_120 : f32 to vector<2x1xf32>
    %627 = arith.divf %625, %626 : vector<2x1xf32>
    %628 = vector.broadcast %627 : vector<2x1xf32> to vector<2x64xf32>
    %629 = arith.subf %623, %628 : vector<2x64xf32>
    %630 = arith.mulf %629, %629 : vector<2x64xf32>
    %cst_121 = arith.constant dense<0.000000e+00> : vector<2xf32>
    %631 = vector.multi_reduction <add>, %630, %cst_121 [1] : vector<2x64xf32> to vector<2xf32>
    %632 = vector.shape_cast %631 : vector<2xf32> to vector<2x1xf32>
    %cst_122 = arith.constant 6.400000e+01 : f32
    %633 = vector.broadcast %cst_122 : f32 to vector<2x1xf32>
    %634 = arith.divf %632, %633 : vector<2x1xf32>
    %635 = vector.broadcast %627 : vector<2x1xf32> to vector<2x64xf32>
    %636 = arith.subf %623, %635 : vector<2x64xf32>
    %cst_123 = arith.constant 9.99999974E-6 : f32
    %637 = vector.broadcast %cst_123 : f32 to vector<2x1xf32>
    %638 = arith.addf %634, %637 : vector<2x1xf32>
    %639 = math.rsqrt %638 : vector<2x1xf32>
    %640 = vector.broadcast %639 : vector<2x1xf32> to vector<2x64xf32>
    %641 = arith.mulf %636, %640 : vector<2x64xf32>
    %642 = vector.broadcast %13 : vector<1x64xf32> to vector<2x64xf32>
    %643 = arith.mulf %641, %642 : vector<2x64xf32>
    %644 = vector.broadcast %14 : vector<1x64xf32> to vector<2x64xf32>
    %645 = arith.addf %643, %644 : vector<2x64xf32>
    %646 = vector.extract_strided_slice %595 {offsets = [0, 256], sizes = [2, 128], strides = [1, 1]} : vector<2x384xf32> to vector<2x128xf32>
    %cst_124 = arith.constant dense<0.000000e+00> : vector<2x128xf32>
    %647 = tpu.matmul %645, %12, %cst_124 {dimension_numbers = #tpu.dot_dimension_numbers<[1], [0], [0], [1], [0, 0, 1, 1], [], []>} : vector<2x64xf32>, vector<64x128xf32>, vector<2x128xf32> -> vector<2x128xf32>
    %648 = arith.addf %646, %647 : vector<2x128xf32>
    %649 = vector.broadcast %15 : vector<1x128xf32> to vector<2x128xf32>
    %650 = arith.addf %648, %649 : vector<2x128xf32>
    %651 = vector.extract_strided_slice %650 {offsets = [0, 0], sizes = [2, 32], strides = [1, 1]} : vector<2x128xf32> to vector<2x32xf32>
    %652 = arith.negf %651 : vector<2x32xf32>
    %653 = math.exp %652 : vector<2x32xf32>
    %cst_125 = arith.constant 1.000000e+00 : f32
    %654 = vector.broadcast %cst_125 : f32 to vector<2x32xf32>
    %655 = arith.addf %654, %653 : vector<2x32xf32>
    %656 = arith.divf %654, %655 : vector<2x32xf32>
    %657 = vector.extract_strided_slice %650 {offsets = [0, 32], sizes = [2, 32], strides = [1, 1]} : vector<2x128xf32> to vector<2x32xf32>
    %658 = arith.negf %657 : vector<2x32xf32>
    %659 = math.exp %658 : vector<2x32xf32>
    %cst_126 = arith.constant 1.000000e+00 : f32
    %660 = vector.broadcast %cst_126 : f32 to vector<2x32xf32>
    %661 = arith.addf %660, %659 : vector<2x32xf32>
    %662 = arith.divf %660, %661 : vector<2x32xf32>
    %663 = vector.extract_strided_slice %650 {offsets = [0, 64], sizes = [2, 32], strides = [1, 1]} : vector<2x128xf32> to vector<2x32xf32>
    %664 = math.tanh %663 : vector<2x32xf32>
    %665 = vector.extract_strided_slice %650 {offsets = [0, 96], sizes = [2, 32], strides = [1, 1]} : vector<2x128xf32> to vector<2x32xf32>
    %666 = arith.negf %665 : vector<2x32xf32>
    %667 = math.exp %666 : vector<2x32xf32>
    %cst_127 = arith.constant 1.000000e+00 : f32
    %668 = vector.broadcast %cst_127 : f32 to vector<2x32xf32>
    %669 = arith.addf %668, %667 : vector<2x32xf32>
    %670 = arith.divf %668, %669 : vector<2x32xf32>
    %671 = arith.mulf %662, %591 : vector<2x32xf32>
    %672 = arith.mulf %656, %664 : vector<2x32xf32>
    %673 = arith.addf %671, %672 : vector<2x32xf32>
    %674 = math.tanh %673 : vector<2x32xf32>
    %675 = arith.mulf %670, %674 : vector<2x32xf32>
    %676 = vector.extract_strided_slice %101 {offsets = [0, 0], sizes = [1, 32], strides = [1, 1]} : vector<2x32xf32> to vector<1x32xf32>
    %677 = vector.extract_strided_slice %183 {offsets = [0, 0], sizes = [1, 32], strides = [1, 1]} : vector<2x32xf32> to vector<1x32xf32>
    %678 = vector.extract_strided_slice %265 {offsets = [0, 0], sizes = [1, 32], strides = [1, 1]} : vector<2x32xf32> to vector<1x32xf32>
    %679 = vector.extract_strided_slice %347 {offsets = [0, 0], sizes = [1, 32], strides = [1, 1]} : vector<2x32xf32> to vector<1x32xf32>
    %680 = vector.extract_strided_slice %429 {offsets = [0, 0], sizes = [1, 32], strides = [1, 1]} : vector<2x32xf32> to vector<1x32xf32>
    %681 = vector.extract_strided_slice %511 {offsets = [0, 0], sizes = [1, 32], strides = [1, 1]} : vector<2x32xf32> to vector<1x32xf32>
    %682 = vector.extract_strided_slice %593 {offsets = [0, 0], sizes = [1, 32], strides = [1, 1]} : vector<2x32xf32> to vector<1x32xf32>
    %683 = vector.extract_strided_slice %675 {offsets = [0, 0], sizes = [1, 32], strides = [1, 1]} : vector<2x32xf32> to vector<1x32xf32>
    %684 = tpu.concatenate %676, %677, %678, %679, %680, %681, %682, %683 in 0 : vector<1x32xf32>, vector<1x32xf32>, vector<1x32xf32>, vector<1x32xf32>, vector<1x32xf32>, vector<1x32xf32>, vector<1x32xf32>, vector<1x32xf32> -> vector<8x32xf32>
    %685 = vector.extract_strided_slice %101 {offsets = [1, 0], sizes = [1, 32], strides = [1, 1]} : vector<2x32xf32> to vector<1x32xf32>
    %686 = vector.extract_strided_slice %183 {offsets = [1, 0], sizes = [1, 32], strides = [1, 1]} : vector<2x32xf32> to vector<1x32xf32>
    %687 = vector.extract_strided_slice %265 {offsets = [1, 0], sizes = [1, 32], strides = [1, 1]} : vector<2x32xf32> to vector<1x32xf32>
    %688 = vector.extract_strided_slice %347 {offsets = [1, 0], sizes = [1, 32], strides = [1, 1]} : vector<2x32xf32> to vector<1x32xf32>
    %689 = vector.extract_strided_slice %429 {offsets = [1, 0], sizes = [1, 32], strides = [1, 1]} : vector<2x32xf32> to vector<1x32xf32>
    %690 = vector.extract_strided_slice %511 {offsets = [1, 0], sizes = [1, 32], strides = [1, 1]} : vector<2x32xf32> to vector<1x32xf32>
    %691 = vector.extract_strided_slice %593 {offsets = [1, 0], sizes = [1, 32], strides = [1, 1]} : vector<2x32xf32> to vector<1x32xf32>
    %692 = vector.extract_strided_slice %675 {offsets = [1, 0], sizes = [1, 32], strides = [1, 1]} : vector<2x32xf32> to vector<1x32xf32>
    %693 = tpu.concatenate %685, %686, %687, %688, %689, %690, %691, %692 in 0 : vector<1x32xf32>, vector<1x32xf32>, vector<1x32xf32>, vector<1x32xf32>, vector<1x32xf32>, vector<1x32xf32>, vector<1x32xf32>, vector<1x32xf32> -> vector<8x32xf32>
    %694 = tpu.concatenate %684, %693 in 0 : vector<8x32xf32>, vector<8x32xf32> -> vector<16x32xf32>
    %c0_128 = arith.constant 0 : index
    %c0_129 = arith.constant 0 : index
    %695 = vector.load %arg10[%c0_128, %c0_129] : memref<32x96xf32, #tpu.memory_space<vmem>>, vector<32x96xf32>
    %cst_130 = arith.constant dense<0.000000e+00> : vector<16x96xf32>
    %696 = tpu.matmul %694, %695, %cst_130 {dimension_numbers = #tpu.dot_dimension_numbers<[1], [0], [0], [1], [0, 0, 1, 1], [], []>} : vector<16x32xf32>, vector<32x96xf32>, vector<16x96xf32> -> vector<16x96xf32>
    %c0_131 = arith.constant 0 : index
    %c0_132 = arith.constant 0 : index
    %697 = vector.load %arg11[%c0_131, %c0_132] : memref<1x96xf32, #tpu.memory_space<vmem>>, vector<1x96xf32>
    %698 = vector.broadcast %697 : vector<1x96xf32> to vector<16x96xf32>
    %699 = arith.addf %696, %698 : vector<16x96xf32>
    %700 = tpu.iota {dimensions = array<i32: 0>} : vector<8x8xi32>
    %701 = tpu.iota {dimensions = array<i32: 1>} : vector<8x8xi32>
    %702 = arith.cmpi sle, %701, %700 : vector<8x8xi32>
    %c0_133 = arith.constant 0 : index
    %c0_134 = arith.constant 0 : index
    %703 = vector.load %arg12[%c0_133, %c0_134] : memref<32x32xf32, #tpu.memory_space<vmem>>, vector<32x32xf32>
    %c0_135 = arith.constant 0 : index
    %c0_136 = arith.constant 0 : index
    %704 = vector.load %arg13[%c0_135, %c0_136] : memref<1x32xf32, #tpu.memory_space<vmem>>, vector<1x32xf32>
    %c0_137 = arith.constant 0 : index
    %c0_138 = arith.constant 0 : index
    %705 = vector.load %arg14[%c0_137, %c0_138] : memref<1x32xf32, #tpu.memory_space<vmem>>, vector<1x32xf32>
    %c0_139 = arith.constant 0 : index
    %c0_140 = arith.constant 0 : index
    %706 = vector.load %arg15[%c0_139, %c0_140] : memref<1x32xf32, #tpu.memory_space<vmem>>, vector<1x32xf32>
    %707 = vector.extract_strided_slice %699 {offsets = [0, 0], sizes = [8, 96], strides = [1, 1]} : vector<16x96xf32> to vector<8x96xf32>
    %708 = vector.extract_strided_slice %707 {offsets = [0, 0], sizes = [8, 32], strides = [1, 1]} : vector<8x96xf32> to vector<8x32xf32>
    %709 = vector.extract_strided_slice %707 {offsets = [0, 32], sizes = [8, 32], strides = [1, 1]} : vector<8x96xf32> to vector<8x32xf32>
    %710 = vector.extract_strided_slice %707 {offsets = [0, 64], sizes = [8, 32], strides = [1, 1]} : vector<8x96xf32> to vector<8x32xf32>
    %711 = vector.broadcast %704 : vector<1x32xf32> to vector<8x32xf32>
    %712 = arith.addf %684, %711 : vector<8x32xf32>
    %713 = vector.extract_strided_slice %708 {offsets = [0, 0], sizes = [8, 8], strides = [1, 1]} : vector<8x32xf32> to vector<8x8xf32>
    %714 = vector.extract_strided_slice %709 {offsets = [0, 0], sizes = [8, 8], strides = [1, 1]} : vector<8x32xf32> to vector<8x8xf32>
    %715 = vector.extract_strided_slice %710 {offsets = [0, 0], sizes = [8, 8], strides = [1, 1]} : vector<8x32xf32> to vector<8x8xf32>
    %716 = tpu.transpose %714, [1, 0] : vector<8x8xf32> -> vector<8x8xf32>
    %cst_141 = arith.constant dense<0.000000e+00> : vector<8x8xf32>
    %717 = tpu.matmul %713, %716, %cst_141 {dimension_numbers = #tpu.dot_dimension_numbers<[1], [0], [0], [1], [0, 0, 1, 1], [], []>} : vector<8x8xf32>, vector<8x8xf32>, vector<8x8xf32> -> vector<8x8xf32>
    %cst_142 = arith.constant 0.353553385 : f32
    %718 = vector.broadcast %cst_142 : f32 to vector<8x8xf32>
    %719 = arith.mulf %717, %718 : vector<8x8xf32>
    %cst_143 = arith.constant -1.000000e+09 : f32
    %720 = vector.broadcast %cst_143 : f32 to vector<8x8xf32>
    %721 = arith.select %702, %719, %720 : vector<8x8xi1>, vector<8x8xf32>
    %cst_144 = arith.constant dense<0xFF800000> : vector<8xf32>
    %722 = vector.multi_reduction <maximumf>, %721, %cst_144 [1] : vector<8x8xf32> to vector<8xf32>
    %723 = vector.shape_cast %722 : vector<8xf32> to vector<8x1xf32>
    %724 = vector.broadcast %723 : vector<8x1xf32> to vector<8x8xf32>
    %725 = arith.subf %721, %724 : vector<8x8xf32>
    %726 = math.exp %725 : vector<8x8xf32>
    %cst_145 = arith.constant dense<0.000000e+00> : vector<8xf32>
    %727 = vector.multi_reduction <add>, %726, %cst_145 [1] : vector<8x8xf32> to vector<8xf32>
    %728 = vector.shape_cast %727 : vector<8xf32> to vector<8x1xf32>
    %729 = vector.broadcast %728 : vector<8x1xf32> to vector<8x8xf32>
    %730 = arith.divf %726, %729 : vector<8x8xf32>
    %cst_146 = arith.constant dense<0.000000e+00> : vector<8x8xf32>
    %731 = tpu.matmul %730, %715, %cst_146 {dimension_numbers = #tpu.dot_dimension_numbers<[1], [0], [0], [1], [0, 0, 1, 1], [], []>} : vector<8x8xf32>, vector<8x8xf32>, vector<8x8xf32> -> vector<8x8xf32>
    %732 = vector.extract_strided_slice %703 {offsets = [0, 0], sizes = [8, 32], strides = [1, 1]} : vector<32x32xf32> to vector<8x32xf32>
    %cst_147 = arith.constant dense<0.000000e+00> : vector<8x32xf32>
    %733 = tpu.matmul %731, %732, %cst_147 {dimension_numbers = #tpu.dot_dimension_numbers<[1], [0], [0], [1], [0, 0, 1, 1], [], []>} : vector<8x8xf32>, vector<8x32xf32>, vector<8x32xf32> -> vector<8x32xf32>
    %734 = arith.addf %712, %733 : vector<8x32xf32>
    %735 = vector.extract_strided_slice %708 {offsets = [0, 8], sizes = [8, 8], strides = [1, 1]} : vector<8x32xf32> to vector<8x8xf32>
    %736 = vector.extract_strided_slice %709 {offsets = [0, 8], sizes = [8, 8], strides = [1, 1]} : vector<8x32xf32> to vector<8x8xf32>
    %737 = vector.extract_strided_slice %710 {offsets = [0, 8], sizes = [8, 8], strides = [1, 1]} : vector<8x32xf32> to vector<8x8xf32>
    %738 = tpu.transpose %736, [1, 0] : vector<8x8xf32> -> vector<8x8xf32>
    %cst_148 = arith.constant dense<0.000000e+00> : vector<8x8xf32>
    %739 = tpu.matmul %735, %738, %cst_148 {dimension_numbers = #tpu.dot_dimension_numbers<[1], [0], [0], [1], [0, 0, 1, 1], [], []>} : vector<8x8xf32>, vector<8x8xf32>, vector<8x8xf32> -> vector<8x8xf32>
    %cst_149 = arith.constant 0.353553385 : f32
    %740 = vector.broadcast %cst_149 : f32 to vector<8x8xf32>
    %741 = arith.mulf %739, %740 : vector<8x8xf32>
    %cst_150 = arith.constant -1.000000e+09 : f32
    %742 = vector.broadcast %cst_150 : f32 to vector<8x8xf32>
    %743 = arith.select %702, %741, %742 : vector<8x8xi1>, vector<8x8xf32>
    %cst_151 = arith.constant dense<0xFF800000> : vector<8xf32>
    %744 = vector.multi_reduction <maximumf>, %743, %cst_151 [1] : vector<8x8xf32> to vector<8xf32>
    %745 = vector.shape_cast %744 : vector<8xf32> to vector<8x1xf32>
    %746 = vector.broadcast %745 : vector<8x1xf32> to vector<8x8xf32>
    %747 = arith.subf %743, %746 : vector<8x8xf32>
    %748 = math.exp %747 : vector<8x8xf32>
    %cst_152 = arith.constant dense<0.000000e+00> : vector<8xf32>
    %749 = vector.multi_reduction <add>, %748, %cst_152 [1] : vector<8x8xf32> to vector<8xf32>
    %750 = vector.shape_cast %749 : vector<8xf32> to vector<8x1xf32>
    %751 = vector.broadcast %750 : vector<8x1xf32> to vector<8x8xf32>
    %752 = arith.divf %748, %751 : vector<8x8xf32>
    %cst_153 = arith.constant dense<0.000000e+00> : vector<8x8xf32>
    %753 = tpu.matmul %752, %737, %cst_153 {dimension_numbers = #tpu.dot_dimension_numbers<[1], [0], [0], [1], [0, 0, 1, 1], [], []>} : vector<8x8xf32>, vector<8x8xf32>, vector<8x8xf32> -> vector<8x8xf32>
    %754 = vector.extract_strided_slice %703 {offsets = [8, 0], sizes = [8, 32], strides = [1, 1]} : vector<32x32xf32> to vector<8x32xf32>
    %cst_154 = arith.constant dense<0.000000e+00> : vector<8x32xf32>
    %755 = tpu.matmul %753, %754, %cst_154 {dimension_numbers = #tpu.dot_dimension_numbers<[1], [0], [0], [1], [0, 0, 1, 1], [], []>} : vector<8x8xf32>, vector<8x32xf32>, vector<8x32xf32> -> vector<8x32xf32>
    %756 = arith.addf %734, %755 : vector<8x32xf32>
    %757 = vector.extract_strided_slice %708 {offsets = [0, 16], sizes = [8, 8], strides = [1, 1]} : vector<8x32xf32> to vector<8x8xf32>
    %758 = vector.extract_strided_slice %709 {offsets = [0, 16], sizes = [8, 8], strides = [1, 1]} : vector<8x32xf32> to vector<8x8xf32>
    %759 = vector.extract_strided_slice %710 {offsets = [0, 16], sizes = [8, 8], strides = [1, 1]} : vector<8x32xf32> to vector<8x8xf32>
    %760 = tpu.transpose %758, [1, 0] : vector<8x8xf32> -> vector<8x8xf32>
    %cst_155 = arith.constant dense<0.000000e+00> : vector<8x8xf32>
    %761 = tpu.matmul %757, %760, %cst_155 {dimension_numbers = #tpu.dot_dimension_numbers<[1], [0], [0], [1], [0, 0, 1, 1], [], []>} : vector<8x8xf32>, vector<8x8xf32>, vector<8x8xf32> -> vector<8x8xf32>
    %cst_156 = arith.constant 0.353553385 : f32
    %762 = vector.broadcast %cst_156 : f32 to vector<8x8xf32>
    %763 = arith.mulf %761, %762 : vector<8x8xf32>
    %cst_157 = arith.constant -1.000000e+09 : f32
    %764 = vector.broadcast %cst_157 : f32 to vector<8x8xf32>
    %765 = arith.select %702, %763, %764 : vector<8x8xi1>, vector<8x8xf32>
    %cst_158 = arith.constant dense<0xFF800000> : vector<8xf32>
    %766 = vector.multi_reduction <maximumf>, %765, %cst_158 [1] : vector<8x8xf32> to vector<8xf32>
    %767 = vector.shape_cast %766 : vector<8xf32> to vector<8x1xf32>
    %768 = vector.broadcast %767 : vector<8x1xf32> to vector<8x8xf32>
    %769 = arith.subf %765, %768 : vector<8x8xf32>
    %770 = math.exp %769 : vector<8x8xf32>
    %cst_159 = arith.constant dense<0.000000e+00> : vector<8xf32>
    %771 = vector.multi_reduction <add>, %770, %cst_159 [1] : vector<8x8xf32> to vector<8xf32>
    %772 = vector.shape_cast %771 : vector<8xf32> to vector<8x1xf32>
    %773 = vector.broadcast %772 : vector<8x1xf32> to vector<8x8xf32>
    %774 = arith.divf %770, %773 : vector<8x8xf32>
    %cst_160 = arith.constant dense<0.000000e+00> : vector<8x8xf32>
    %775 = tpu.matmul %774, %759, %cst_160 {dimension_numbers = #tpu.dot_dimension_numbers<[1], [0], [0], [1], [0, 0, 1, 1], [], []>} : vector<8x8xf32>, vector<8x8xf32>, vector<8x8xf32> -> vector<8x8xf32>
    %776 = vector.extract_strided_slice %703 {offsets = [16, 0], sizes = [8, 32], strides = [1, 1]} : vector<32x32xf32> to vector<8x32xf32>
    %cst_161 = arith.constant dense<0.000000e+00> : vector<8x32xf32>
    %777 = tpu.matmul %775, %776, %cst_161 {dimension_numbers = #tpu.dot_dimension_numbers<[1], [0], [0], [1], [0, 0, 1, 1], [], []>} : vector<8x8xf32>, vector<8x32xf32>, vector<8x32xf32> -> vector<8x32xf32>
    %778 = arith.addf %756, %777 : vector<8x32xf32>
    %779 = vector.extract_strided_slice %708 {offsets = [0, 24], sizes = [8, 8], strides = [1, 1]} : vector<8x32xf32> to vector<8x8xf32>
    %780 = vector.extract_strided_slice %709 {offsets = [0, 24], sizes = [8, 8], strides = [1, 1]} : vector<8x32xf32> to vector<8x8xf32>
    %781 = vector.extract_strided_slice %710 {offsets = [0, 24], sizes = [8, 8], strides = [1, 1]} : vector<8x32xf32> to vector<8x8xf32>
    %782 = tpu.transpose %780, [1, 0] : vector<8x8xf32> -> vector<8x8xf32>
    %cst_162 = arith.constant dense<0.000000e+00> : vector<8x8xf32>
    %783 = tpu.matmul %779, %782, %cst_162 {dimension_numbers = #tpu.dot_dimension_numbers<[1], [0], [0], [1], [0, 0, 1, 1], [], []>} : vector<8x8xf32>, vector<8x8xf32>, vector<8x8xf32> -> vector<8x8xf32>
    %cst_163 = arith.constant 0.353553385 : f32
    %784 = vector.broadcast %cst_163 : f32 to vector<8x8xf32>
    %785 = arith.mulf %783, %784 : vector<8x8xf32>
    %cst_164 = arith.constant -1.000000e+09 : f32
    %786 = vector.broadcast %cst_164 : f32 to vector<8x8xf32>
    %787 = arith.select %702, %785, %786 : vector<8x8xi1>, vector<8x8xf32>
    %cst_165 = arith.constant dense<0xFF800000> : vector<8xf32>
    %788 = vector.multi_reduction <maximumf>, %787, %cst_165 [1] : vector<8x8xf32> to vector<8xf32>
    %789 = vector.shape_cast %788 : vector<8xf32> to vector<8x1xf32>
    %790 = vector.broadcast %789 : vector<8x1xf32> to vector<8x8xf32>
    %791 = arith.subf %787, %790 : vector<8x8xf32>
    %792 = math.exp %791 : vector<8x8xf32>
    %cst_166 = arith.constant dense<0.000000e+00> : vector<8xf32>
    %793 = vector.multi_reduction <add>, %792, %cst_166 [1] : vector<8x8xf32> to vector<8xf32>
    %794 = vector.shape_cast %793 : vector<8xf32> to vector<8x1xf32>
    %795 = vector.broadcast %794 : vector<8x1xf32> to vector<8x8xf32>
    %796 = arith.divf %792, %795 : vector<8x8xf32>
    %cst_167 = arith.constant dense<0.000000e+00> : vector<8x8xf32>
    %797 = tpu.matmul %796, %781, %cst_167 {dimension_numbers = #tpu.dot_dimension_numbers<[1], [0], [0], [1], [0, 0, 1, 1], [], []>} : vector<8x8xf32>, vector<8x8xf32>, vector<8x8xf32> -> vector<8x8xf32>
    %798 = vector.extract_strided_slice %703 {offsets = [24, 0], sizes = [8, 32], strides = [1, 1]} : vector<32x32xf32> to vector<8x32xf32>
    %cst_168 = arith.constant dense<0.000000e+00> : vector<8x32xf32>
    %799 = tpu.matmul %797, %798, %cst_168 {dimension_numbers = #tpu.dot_dimension_numbers<[1], [0], [0], [1], [0, 0, 1, 1], [], []>} : vector<8x8xf32>, vector<8x32xf32>, vector<8x32xf32> -> vector<8x32xf32>
    %800 = arith.addf %778, %799 : vector<8x32xf32>
    %cst_169 = arith.constant dense<0.000000e+00> : vector<8xf32>
    %801 = vector.multi_reduction <add>, %800, %cst_169 [1] : vector<8x32xf32> to vector<8xf32>
    %802 = vector.shape_cast %801 : vector<8xf32> to vector<8x1xf32>
    %cst_170 = arith.constant 3.200000e+01 : f32
    %803 = vector.broadcast %cst_170 : f32 to vector<8x1xf32>
    %804 = arith.divf %802, %803 : vector<8x1xf32>
    %805 = vector.broadcast %804 : vector<8x1xf32> to vector<8x32xf32>
    %806 = arith.subf %800, %805 : vector<8x32xf32>
    %807 = arith.mulf %806, %806 : vector<8x32xf32>
    %cst_171 = arith.constant dense<0.000000e+00> : vector<8xf32>
    %808 = vector.multi_reduction <add>, %807, %cst_171 [1] : vector<8x32xf32> to vector<8xf32>
    %809 = vector.shape_cast %808 : vector<8xf32> to vector<8x1xf32>
    %cst_172 = arith.constant 3.200000e+01 : f32
    %810 = vector.broadcast %cst_172 : f32 to vector<8x1xf32>
    %811 = arith.divf %809, %810 : vector<8x1xf32>
    %812 = vector.broadcast %804 : vector<8x1xf32> to vector<8x32xf32>
    %813 = arith.subf %800, %812 : vector<8x32xf32>
    %cst_173 = arith.constant 9.99999997E-7 : f32
    %814 = vector.broadcast %cst_173 : f32 to vector<8x1xf32>
    %815 = arith.addf %811, %814 : vector<8x1xf32>
    %816 = math.rsqrt %815 : vector<8x1xf32>
    %817 = vector.broadcast %816 : vector<8x1xf32> to vector<8x32xf32>
    %818 = arith.mulf %813, %817 : vector<8x32xf32>
    %819 = vector.broadcast %705 : vector<1x32xf32> to vector<8x32xf32>
    %820 = arith.mulf %818, %819 : vector<8x32xf32>
    %821 = vector.broadcast %706 : vector<1x32xf32> to vector<8x32xf32>
    %822 = arith.addf %820, %821 : vector<8x32xf32>
    %823 = vector.extract_strided_slice %822 {offsets = [0, 0], sizes = [1, 8], strides = [1, 1]} : vector<8x32xf32> to vector<1x8xf32>
    %824 = vector.extract_strided_slice %822 {offsets = [1, 0], sizes = [1, 8], strides = [1, 1]} : vector<8x32xf32> to vector<1x8xf32>
    %825 = vector.extract_strided_slice %822 {offsets = [2, 0], sizes = [1, 8], strides = [1, 1]} : vector<8x32xf32> to vector<1x8xf32>
    %826 = vector.extract_strided_slice %822 {offsets = [3, 0], sizes = [1, 8], strides = [1, 1]} : vector<8x32xf32> to vector<1x8xf32>
    %827 = vector.extract_strided_slice %822 {offsets = [4, 0], sizes = [1, 8], strides = [1, 1]} : vector<8x32xf32> to vector<1x8xf32>
    %828 = vector.extract_strided_slice %822 {offsets = [5, 0], sizes = [1, 8], strides = [1, 1]} : vector<8x32xf32> to vector<1x8xf32>
    %829 = vector.extract_strided_slice %822 {offsets = [6, 0], sizes = [1, 8], strides = [1, 1]} : vector<8x32xf32> to vector<1x8xf32>
    %830 = vector.extract_strided_slice %822 {offsets = [7, 0], sizes = [1, 8], strides = [1, 1]} : vector<8x32xf32> to vector<1x8xf32>
    %831 = tpu.concatenate %823, %824, %825, %826, %827, %828, %829, %830 in 1 : vector<1x8xf32>, vector<1x8xf32>, vector<1x8xf32>, vector<1x8xf32>, vector<1x8xf32>, vector<1x8xf32>, vector<1x8xf32>, vector<1x8xf32> -> vector<1x64xf32>
    %832 = vector.extract_strided_slice %822 {offsets = [0, 8], sizes = [1, 8], strides = [1, 1]} : vector<8x32xf32> to vector<1x8xf32>
    %833 = vector.extract_strided_slice %822 {offsets = [1, 8], sizes = [1, 8], strides = [1, 1]} : vector<8x32xf32> to vector<1x8xf32>
    %834 = vector.extract_strided_slice %822 {offsets = [2, 8], sizes = [1, 8], strides = [1, 1]} : vector<8x32xf32> to vector<1x8xf32>
    %835 = vector.extract_strided_slice %822 {offsets = [3, 8], sizes = [1, 8], strides = [1, 1]} : vector<8x32xf32> to vector<1x8xf32>
    %836 = vector.extract_strided_slice %822 {offsets = [4, 8], sizes = [1, 8], strides = [1, 1]} : vector<8x32xf32> to vector<1x8xf32>
    %837 = vector.extract_strided_slice %822 {offsets = [5, 8], sizes = [1, 8], strides = [1, 1]} : vector<8x32xf32> to vector<1x8xf32>
    %838 = vector.extract_strided_slice %822 {offsets = [6, 8], sizes = [1, 8], strides = [1, 1]} : vector<8x32xf32> to vector<1x8xf32>
    %839 = vector.extract_strided_slice %822 {offsets = [7, 8], sizes = [1, 8], strides = [1, 1]} : vector<8x32xf32> to vector<1x8xf32>
    %840 = tpu.concatenate %832, %833, %834, %835, %836, %837, %838, %839 in 1 : vector<1x8xf32>, vector<1x8xf32>, vector<1x8xf32>, vector<1x8xf32>, vector<1x8xf32>, vector<1x8xf32>, vector<1x8xf32>, vector<1x8xf32> -> vector<1x64xf32>
    %841 = vector.extract_strided_slice %822 {offsets = [0, 16], sizes = [1, 8], strides = [1, 1]} : vector<8x32xf32> to vector<1x8xf32>
    %842 = vector.extract_strided_slice %822 {offsets = [1, 16], sizes = [1, 8], strides = [1, 1]} : vector<8x32xf32> to vector<1x8xf32>
    %843 = vector.extract_strided_slice %822 {offsets = [2, 16], sizes = [1, 8], strides = [1, 1]} : vector<8x32xf32> to vector<1x8xf32>
    %844 = vector.extract_strided_slice %822 {offsets = [3, 16], sizes = [1, 8], strides = [1, 1]} : vector<8x32xf32> to vector<1x8xf32>
    %845 = vector.extract_strided_slice %822 {offsets = [4, 16], sizes = [1, 8], strides = [1, 1]} : vector<8x32xf32> to vector<1x8xf32>
    %846 = vector.extract_strided_slice %822 {offsets = [5, 16], sizes = [1, 8], strides = [1, 1]} : vector<8x32xf32> to vector<1x8xf32>
    %847 = vector.extract_strided_slice %822 {offsets = [6, 16], sizes = [1, 8], strides = [1, 1]} : vector<8x32xf32> to vector<1x8xf32>
    %848 = vector.extract_strided_slice %822 {offsets = [7, 16], sizes = [1, 8], strides = [1, 1]} : vector<8x32xf32> to vector<1x8xf32>
    %849 = tpu.concatenate %841, %842, %843, %844, %845, %846, %847, %848 in 1 : vector<1x8xf32>, vector<1x8xf32>, vector<1x8xf32>, vector<1x8xf32>, vector<1x8xf32>, vector<1x8xf32>, vector<1x8xf32>, vector<1x8xf32> -> vector<1x64xf32>
    %850 = vector.extract_strided_slice %822 {offsets = [0, 24], sizes = [1, 8], strides = [1, 1]} : vector<8x32xf32> to vector<1x8xf32>
    %851 = vector.extract_strided_slice %822 {offsets = [1, 24], sizes = [1, 8], strides = [1, 1]} : vector<8x32xf32> to vector<1x8xf32>
    %852 = vector.extract_strided_slice %822 {offsets = [2, 24], sizes = [1, 8], strides = [1, 1]} : vector<8x32xf32> to vector<1x8xf32>
    %853 = vector.extract_strided_slice %822 {offsets = [3, 24], sizes = [1, 8], strides = [1, 1]} : vector<8x32xf32> to vector<1x8xf32>
    %854 = vector.extract_strided_slice %822 {offsets = [4, 24], sizes = [1, 8], strides = [1, 1]} : vector<8x32xf32> to vector<1x8xf32>
    %855 = vector.extract_strided_slice %822 {offsets = [5, 24], sizes = [1, 8], strides = [1, 1]} : vector<8x32xf32> to vector<1x8xf32>
    %856 = vector.extract_strided_slice %822 {offsets = [6, 24], sizes = [1, 8], strides = [1, 1]} : vector<8x32xf32> to vector<1x8xf32>
    %857 = vector.extract_strided_slice %822 {offsets = [7, 24], sizes = [1, 8], strides = [1, 1]} : vector<8x32xf32> to vector<1x8xf32>
    %858 = tpu.concatenate %850, %851, %852, %853, %854, %855, %856, %857 in 1 : vector<1x8xf32>, vector<1x8xf32>, vector<1x8xf32>, vector<1x8xf32>, vector<1x8xf32>, vector<1x8xf32>, vector<1x8xf32>, vector<1x8xf32> -> vector<1x64xf32>
    %859 = vector.extract_strided_slice %699 {offsets = [8, 0], sizes = [8, 96], strides = [1, 1]} : vector<16x96xf32> to vector<8x96xf32>
    %860 = vector.extract_strided_slice %859 {offsets = [0, 0], sizes = [8, 32], strides = [1, 1]} : vector<8x96xf32> to vector<8x32xf32>
    %861 = vector.extract_strided_slice %859 {offsets = [0, 32], sizes = [8, 32], strides = [1, 1]} : vector<8x96xf32> to vector<8x32xf32>
    %862 = vector.extract_strided_slice %859 {offsets = [0, 64], sizes = [8, 32], strides = [1, 1]} : vector<8x96xf32> to vector<8x32xf32>
    %863 = vector.broadcast %704 : vector<1x32xf32> to vector<8x32xf32>
    %864 = arith.addf %693, %863 : vector<8x32xf32>
    %865 = vector.extract_strided_slice %860 {offsets = [0, 0], sizes = [8, 8], strides = [1, 1]} : vector<8x32xf32> to vector<8x8xf32>
    %866 = vector.extract_strided_slice %861 {offsets = [0, 0], sizes = [8, 8], strides = [1, 1]} : vector<8x32xf32> to vector<8x8xf32>
    %867 = vector.extract_strided_slice %862 {offsets = [0, 0], sizes = [8, 8], strides = [1, 1]} : vector<8x32xf32> to vector<8x8xf32>
    %868 = tpu.transpose %866, [1, 0] : vector<8x8xf32> -> vector<8x8xf32>
    %cst_174 = arith.constant dense<0.000000e+00> : vector<8x8xf32>
    %869 = tpu.matmul %865, %868, %cst_174 {dimension_numbers = #tpu.dot_dimension_numbers<[1], [0], [0], [1], [0, 0, 1, 1], [], []>} : vector<8x8xf32>, vector<8x8xf32>, vector<8x8xf32> -> vector<8x8xf32>
    %cst_175 = arith.constant 0.353553385 : f32
    %870 = vector.broadcast %cst_175 : f32 to vector<8x8xf32>
    %871 = arith.mulf %869, %870 : vector<8x8xf32>
    %cst_176 = arith.constant -1.000000e+09 : f32
    %872 = vector.broadcast %cst_176 : f32 to vector<8x8xf32>
    %873 = arith.select %702, %871, %872 : vector<8x8xi1>, vector<8x8xf32>
    %cst_177 = arith.constant dense<0xFF800000> : vector<8xf32>
    %874 = vector.multi_reduction <maximumf>, %873, %cst_177 [1] : vector<8x8xf32> to vector<8xf32>
    %875 = vector.shape_cast %874 : vector<8xf32> to vector<8x1xf32>
    %876 = vector.broadcast %875 : vector<8x1xf32> to vector<8x8xf32>
    %877 = arith.subf %873, %876 : vector<8x8xf32>
    %878 = math.exp %877 : vector<8x8xf32>
    %cst_178 = arith.constant dense<0.000000e+00> : vector<8xf32>
    %879 = vector.multi_reduction <add>, %878, %cst_178 [1] : vector<8x8xf32> to vector<8xf32>
    %880 = vector.shape_cast %879 : vector<8xf32> to vector<8x1xf32>
    %881 = vector.broadcast %880 : vector<8x1xf32> to vector<8x8xf32>
    %882 = arith.divf %878, %881 : vector<8x8xf32>
    %cst_179 = arith.constant dense<0.000000e+00> : vector<8x8xf32>
    %883 = tpu.matmul %882, %867, %cst_179 {dimension_numbers = #tpu.dot_dimension_numbers<[1], [0], [0], [1], [0, 0, 1, 1], [], []>} : vector<8x8xf32>, vector<8x8xf32>, vector<8x8xf32> -> vector<8x8xf32>
    %884 = vector.extract_strided_slice %703 {offsets = [0, 0], sizes = [8, 32], strides = [1, 1]} : vector<32x32xf32> to vector<8x32xf32>
    %cst_180 = arith.constant dense<0.000000e+00> : vector<8x32xf32>
    %885 = tpu.matmul %883, %884, %cst_180 {dimension_numbers = #tpu.dot_dimension_numbers<[1], [0], [0], [1], [0, 0, 1, 1], [], []>} : vector<8x8xf32>, vector<8x32xf32>, vector<8x32xf32> -> vector<8x32xf32>
    %886 = arith.addf %864, %885 : vector<8x32xf32>
    %887 = vector.extract_strided_slice %860 {offsets = [0, 8], sizes = [8, 8], strides = [1, 1]} : vector<8x32xf32> to vector<8x8xf32>
    %888 = vector.extract_strided_slice %861 {offsets = [0, 8], sizes = [8, 8], strides = [1, 1]} : vector<8x32xf32> to vector<8x8xf32>
    %889 = vector.extract_strided_slice %862 {offsets = [0, 8], sizes = [8, 8], strides = [1, 1]} : vector<8x32xf32> to vector<8x8xf32>
    %890 = tpu.transpose %888, [1, 0] : vector<8x8xf32> -> vector<8x8xf32>
    %cst_181 = arith.constant dense<0.000000e+00> : vector<8x8xf32>
    %891 = tpu.matmul %887, %890, %cst_181 {dimension_numbers = #tpu.dot_dimension_numbers<[1], [0], [0], [1], [0, 0, 1, 1], [], []>} : vector<8x8xf32>, vector<8x8xf32>, vector<8x8xf32> -> vector<8x8xf32>
    %cst_182 = arith.constant 0.353553385 : f32
    %892 = vector.broadcast %cst_182 : f32 to vector<8x8xf32>
    %893 = arith.mulf %891, %892 : vector<8x8xf32>
    %cst_183 = arith.constant -1.000000e+09 : f32
    %894 = vector.broadcast %cst_183 : f32 to vector<8x8xf32>
    %895 = arith.select %702, %893, %894 : vector<8x8xi1>, vector<8x8xf32>
    %cst_184 = arith.constant dense<0xFF800000> : vector<8xf32>
    %896 = vector.multi_reduction <maximumf>, %895, %cst_184 [1] : vector<8x8xf32> to vector<8xf32>
    %897 = vector.shape_cast %896 : vector<8xf32> to vector<8x1xf32>
    %898 = vector.broadcast %897 : vector<8x1xf32> to vector<8x8xf32>
    %899 = arith.subf %895, %898 : vector<8x8xf32>
    %900 = math.exp %899 : vector<8x8xf32>
    %cst_185 = arith.constant dense<0.000000e+00> : vector<8xf32>
    %901 = vector.multi_reduction <add>, %900, %cst_185 [1] : vector<8x8xf32> to vector<8xf32>
    %902 = vector.shape_cast %901 : vector<8xf32> to vector<8x1xf32>
    %903 = vector.broadcast %902 : vector<8x1xf32> to vector<8x8xf32>
    %904 = arith.divf %900, %903 : vector<8x8xf32>
    %cst_186 = arith.constant dense<0.000000e+00> : vector<8x8xf32>
    %905 = tpu.matmul %904, %889, %cst_186 {dimension_numbers = #tpu.dot_dimension_numbers<[1], [0], [0], [1], [0, 0, 1, 1], [], []>} : vector<8x8xf32>, vector<8x8xf32>, vector<8x8xf32> -> vector<8x8xf32>
    %906 = vector.extract_strided_slice %703 {offsets = [8, 0], sizes = [8, 32], strides = [1, 1]} : vector<32x32xf32> to vector<8x32xf32>
    %cst_187 = arith.constant dense<0.000000e+00> : vector<8x32xf32>
    %907 = tpu.matmul %905, %906, %cst_187 {dimension_numbers = #tpu.dot_dimension_numbers<[1], [0], [0], [1], [0, 0, 1, 1], [], []>} : vector<8x8xf32>, vector<8x32xf32>, vector<8x32xf32> -> vector<8x32xf32>
    %908 = arith.addf %886, %907 : vector<8x32xf32>
    %909 = vector.extract_strided_slice %860 {offsets = [0, 16], sizes = [8, 8], strides = [1, 1]} : vector<8x32xf32> to vector<8x8xf32>
    %910 = vector.extract_strided_slice %861 {offsets = [0, 16], sizes = [8, 8], strides = [1, 1]} : vector<8x32xf32> to vector<8x8xf32>
    %911 = vector.extract_strided_slice %862 {offsets = [0, 16], sizes = [8, 8], strides = [1, 1]} : vector<8x32xf32> to vector<8x8xf32>
    %912 = tpu.transpose %910, [1, 0] : vector<8x8xf32> -> vector<8x8xf32>
    %cst_188 = arith.constant dense<0.000000e+00> : vector<8x8xf32>
    %913 = tpu.matmul %909, %912, %cst_188 {dimension_numbers = #tpu.dot_dimension_numbers<[1], [0], [0], [1], [0, 0, 1, 1], [], []>} : vector<8x8xf32>, vector<8x8xf32>, vector<8x8xf32> -> vector<8x8xf32>
    %cst_189 = arith.constant 0.353553385 : f32
    %914 = vector.broadcast %cst_189 : f32 to vector<8x8xf32>
    %915 = arith.mulf %913, %914 : vector<8x8xf32>
    %cst_190 = arith.constant -1.000000e+09 : f32
    %916 = vector.broadcast %cst_190 : f32 to vector<8x8xf32>
    %917 = arith.select %702, %915, %916 : vector<8x8xi1>, vector<8x8xf32>
    %cst_191 = arith.constant dense<0xFF800000> : vector<8xf32>
    %918 = vector.multi_reduction <maximumf>, %917, %cst_191 [1] : vector<8x8xf32> to vector<8xf32>
    %919 = vector.shape_cast %918 : vector<8xf32> to vector<8x1xf32>
    %920 = vector.broadcast %919 : vector<8x1xf32> to vector<8x8xf32>
    %921 = arith.subf %917, %920 : vector<8x8xf32>
    %922 = math.exp %921 : vector<8x8xf32>
    %cst_192 = arith.constant dense<0.000000e+00> : vector<8xf32>
    %923 = vector.multi_reduction <add>, %922, %cst_192 [1] : vector<8x8xf32> to vector<8xf32>
    %924 = vector.shape_cast %923 : vector<8xf32> to vector<8x1xf32>
    %925 = vector.broadcast %924 : vector<8x1xf32> to vector<8x8xf32>
    %926 = arith.divf %922, %925 : vector<8x8xf32>
    %cst_193 = arith.constant dense<0.000000e+00> : vector<8x8xf32>
    %927 = tpu.matmul %926, %911, %cst_193 {dimension_numbers = #tpu.dot_dimension_numbers<[1], [0], [0], [1], [0, 0, 1, 1], [], []>} : vector<8x8xf32>, vector<8x8xf32>, vector<8x8xf32> -> vector<8x8xf32>
    %928 = vector.extract_strided_slice %703 {offsets = [16, 0], sizes = [8, 32], strides = [1, 1]} : vector<32x32xf32> to vector<8x32xf32>
    %cst_194 = arith.constant dense<0.000000e+00> : vector<8x32xf32>
    %929 = tpu.matmul %927, %928, %cst_194 {dimension_numbers = #tpu.dot_dimension_numbers<[1], [0], [0], [1], [0, 0, 1, 1], [], []>} : vector<8x8xf32>, vector<8x32xf32>, vector<8x32xf32> -> vector<8x32xf32>
    %930 = arith.addf %908, %929 : vector<8x32xf32>
    %931 = vector.extract_strided_slice %860 {offsets = [0, 24], sizes = [8, 8], strides = [1, 1]} : vector<8x32xf32> to vector<8x8xf32>
    %932 = vector.extract_strided_slice %861 {offsets = [0, 24], sizes = [8, 8], strides = [1, 1]} : vector<8x32xf32> to vector<8x8xf32>
    %933 = vector.extract_strided_slice %862 {offsets = [0, 24], sizes = [8, 8], strides = [1, 1]} : vector<8x32xf32> to vector<8x8xf32>
    %934 = tpu.transpose %932, [1, 0] : vector<8x8xf32> -> vector<8x8xf32>
    %cst_195 = arith.constant dense<0.000000e+00> : vector<8x8xf32>
    %935 = tpu.matmul %931, %934, %cst_195 {dimension_numbers = #tpu.dot_dimension_numbers<[1], [0], [0], [1], [0, 0, 1, 1], [], []>} : vector<8x8xf32>, vector<8x8xf32>, vector<8x8xf32> -> vector<8x8xf32>
    %cst_196 = arith.constant 0.353553385 : f32
    %936 = vector.broadcast %cst_196 : f32 to vector<8x8xf32>
    %937 = arith.mulf %935, %936 : vector<8x8xf32>
    %cst_197 = arith.constant -1.000000e+09 : f32
    %938 = vector.broadcast %cst_197 : f32 to vector<8x8xf32>
    %939 = arith.select %702, %937, %938 : vector<8x8xi1>, vector<8x8xf32>
    %cst_198 = arith.constant dense<0xFF800000> : vector<8xf32>
    %940 = vector.multi_reduction <maximumf>, %939, %cst_198 [1] : vector<8x8xf32> to vector<8xf32>
    %941 = vector.shape_cast %940 : vector<8xf32> to vector<8x1xf32>
    %942 = vector.broadcast %941 : vector<8x1xf32> to vector<8x8xf32>
    %943 = arith.subf %939, %942 : vector<8x8xf32>
    %944 = math.exp %943 : vector<8x8xf32>
    %cst_199 = arith.constant dense<0.000000e+00> : vector<8xf32>
    %945 = vector.multi_reduction <add>, %944, %cst_199 [1] : vector<8x8xf32> to vector<8xf32>
    %946 = vector.shape_cast %945 : vector<8xf32> to vector<8x1xf32>
    %947 = vector.broadcast %946 : vector<8x1xf32> to vector<8x8xf32>
    %948 = arith.divf %944, %947 : vector<8x8xf32>
    %cst_200 = arith.constant dense<0.000000e+00> : vector<8x8xf32>
    %949 = tpu.matmul %948, %933, %cst_200 {dimension_numbers = #tpu.dot_dimension_numbers<[1], [0], [0], [1], [0, 0, 1, 1], [], []>} : vector<8x8xf32>, vector<8x8xf32>, vector<8x8xf32> -> vector<8x8xf32>
    %950 = vector.extract_strided_slice %703 {offsets = [24, 0], sizes = [8, 32], strides = [1, 1]} : vector<32x32xf32> to vector<8x32xf32>
    %cst_201 = arith.constant dense<0.000000e+00> : vector<8x32xf32>
    %951 = tpu.matmul %949, %950, %cst_201 {dimension_numbers = #tpu.dot_dimension_numbers<[1], [0], [0], [1], [0, 0, 1, 1], [], []>} : vector<8x8xf32>, vector<8x32xf32>, vector<8x32xf32> -> vector<8x32xf32>
    %952 = arith.addf %930, %951 : vector<8x32xf32>
    %cst_202 = arith.constant dense<0.000000e+00> : vector<8xf32>
    %953 = vector.multi_reduction <add>, %952, %cst_202 [1] : vector<8x32xf32> to vector<8xf32>
    %954 = vector.shape_cast %953 : vector<8xf32> to vector<8x1xf32>
    %cst_203 = arith.constant 3.200000e+01 : f32
    %955 = vector.broadcast %cst_203 : f32 to vector<8x1xf32>
    %956 = arith.divf %954, %955 : vector<8x1xf32>
    %957 = vector.broadcast %956 : vector<8x1xf32> to vector<8x32xf32>
    %958 = arith.subf %952, %957 : vector<8x32xf32>
    %959 = arith.mulf %958, %958 : vector<8x32xf32>
    %cst_204 = arith.constant dense<0.000000e+00> : vector<8xf32>
    %960 = vector.multi_reduction <add>, %959, %cst_204 [1] : vector<8x32xf32> to vector<8xf32>
    %961 = vector.shape_cast %960 : vector<8xf32> to vector<8x1xf32>
    %cst_205 = arith.constant 3.200000e+01 : f32
    %962 = vector.broadcast %cst_205 : f32 to vector<8x1xf32>
    %963 = arith.divf %961, %962 : vector<8x1xf32>
    %964 = vector.broadcast %956 : vector<8x1xf32> to vector<8x32xf32>
    %965 = arith.subf %952, %964 : vector<8x32xf32>
    %cst_206 = arith.constant 9.99999997E-7 : f32
    %966 = vector.broadcast %cst_206 : f32 to vector<8x1xf32>
    %967 = arith.addf %963, %966 : vector<8x1xf32>
    %968 = math.rsqrt %967 : vector<8x1xf32>
    %969 = vector.broadcast %968 : vector<8x1xf32> to vector<8x32xf32>
    %970 = arith.mulf %965, %969 : vector<8x32xf32>
    %971 = vector.broadcast %705 : vector<1x32xf32> to vector<8x32xf32>
    %972 = arith.mulf %970, %971 : vector<8x32xf32>
    %973 = vector.broadcast %706 : vector<1x32xf32> to vector<8x32xf32>
    %974 = arith.addf %972, %973 : vector<8x32xf32>
    %975 = vector.extract_strided_slice %974 {offsets = [0, 0], sizes = [1, 8], strides = [1, 1]} : vector<8x32xf32> to vector<1x8xf32>
    %976 = vector.extract_strided_slice %974 {offsets = [1, 0], sizes = [1, 8], strides = [1, 1]} : vector<8x32xf32> to vector<1x8xf32>
    %977 = vector.extract_strided_slice %974 {offsets = [2, 0], sizes = [1, 8], strides = [1, 1]} : vector<8x32xf32> to vector<1x8xf32>
    %978 = vector.extract_strided_slice %974 {offsets = [3, 0], sizes = [1, 8], strides = [1, 1]} : vector<8x32xf32> to vector<1x8xf32>
    %979 = vector.extract_strided_slice %974 {offsets = [4, 0], sizes = [1, 8], strides = [1, 1]} : vector<8x32xf32> to vector<1x8xf32>
    %980 = vector.extract_strided_slice %974 {offsets = [5, 0], sizes = [1, 8], strides = [1, 1]} : vector<8x32xf32> to vector<1x8xf32>
    %981 = vector.extract_strided_slice %974 {offsets = [6, 0], sizes = [1, 8], strides = [1, 1]} : vector<8x32xf32> to vector<1x8xf32>
    %982 = vector.extract_strided_slice %974 {offsets = [7, 0], sizes = [1, 8], strides = [1, 1]} : vector<8x32xf32> to vector<1x8xf32>
    %983 = tpu.concatenate %975, %976, %977, %978, %979, %980, %981, %982 in 1 : vector<1x8xf32>, vector<1x8xf32>, vector<1x8xf32>, vector<1x8xf32>, vector<1x8xf32>, vector<1x8xf32>, vector<1x8xf32>, vector<1x8xf32> -> vector<1x64xf32>
    %984 = vector.extract_strided_slice %974 {offsets = [0, 8], sizes = [1, 8], strides = [1, 1]} : vector<8x32xf32> to vector<1x8xf32>
    %985 = vector.extract_strided_slice %974 {offsets = [1, 8], sizes = [1, 8], strides = [1, 1]} : vector<8x32xf32> to vector<1x8xf32>
    %986 = vector.extract_strided_slice %974 {offsets = [2, 8], sizes = [1, 8], strides = [1, 1]} : vector<8x32xf32> to vector<1x8xf32>
    %987 = vector.extract_strided_slice %974 {offsets = [3, 8], sizes = [1, 8], strides = [1, 1]} : vector<8x32xf32> to vector<1x8xf32>
    %988 = vector.extract_strided_slice %974 {offsets = [4, 8], sizes = [1, 8], strides = [1, 1]} : vector<8x32xf32> to vector<1x8xf32>
    %989 = vector.extract_strided_slice %974 {offsets = [5, 8], sizes = [1, 8], strides = [1, 1]} : vector<8x32xf32> to vector<1x8xf32>
    %990 = vector.extract_strided_slice %974 {offsets = [6, 8], sizes = [1, 8], strides = [1, 1]} : vector<8x32xf32> to vector<1x8xf32>
    %991 = vector.extract_strided_slice %974 {offsets = [7, 8], sizes = [1, 8], strides = [1, 1]} : vector<8x32xf32> to vector<1x8xf32>
    %992 = tpu.concatenate %984, %985, %986, %987, %988, %989, %990, %991 in 1 : vector<1x8xf32>, vector<1x8xf32>, vector<1x8xf32>, vector<1x8xf32>, vector<1x8xf32>, vector<1x8xf32>, vector<1x8xf32>, vector<1x8xf32> -> vector<1x64xf32>
    %993 = vector.extract_strided_slice %974 {offsets = [0, 16], sizes = [1, 8], strides = [1, 1]} : vector<8x32xf32> to vector<1x8xf32>
    %994 = vector.extract_strided_slice %974 {offsets = [1, 16], sizes = [1, 8], strides = [1, 1]} : vector<8x32xf32> to vector<1x8xf32>
    %995 = vector.extract_strided_slice %974 {offsets = [2, 16], sizes = [1, 8], strides = [1, 1]} : vector<8x32xf32> to vector<1x8xf32>
    %996 = vector.extract_strided_slice %974 {offsets = [3, 16], sizes = [1, 8], strides = [1, 1]} : vector<8x32xf32> to vector<1x8xf32>
    %997 = vector.extract_strided_slice %974 {offsets = [4, 16], sizes = [1, 8], strides = [1, 1]} : vector<8x32xf32> to vector<1x8xf32>
    %998 = vector.extract_strided_slice %974 {offsets = [5, 16], sizes = [1, 8], strides = [1, 1]} : vector<8x32xf32> to vector<1x8xf32>
    %999 = vector.extract_strided_slice %974 {offsets = [6, 16], sizes = [1, 8], strides = [1, 1]} : vector<8x32xf32> to vector<1x8xf32>
    %1000 = vector.extract_strided_slice %974 {offsets = [7, 16], sizes = [1, 8], strides = [1, 1]} : vector<8x32xf32> to vector<1x8xf32>
    %1001 = tpu.concatenate %993, %994, %995, %996, %997, %998, %999, %1000 in 1 : vector<1x8xf32>, vector<1x8xf32>, vector<1x8xf32>, vector<1x8xf32>, vector<1x8xf32>, vector<1x8xf32>, vector<1x8xf32>, vector<1x8xf32> -> vector<1x64xf32>
    %1002 = vector.extract_strided_slice %974 {offsets = [0, 24], sizes = [1, 8], strides = [1, 1]} : vector<8x32xf32> to vector<1x8xf32>
    %1003 = vector.extract_strided_slice %974 {offsets = [1, 24], sizes = [1, 8], strides = [1, 1]} : vector<8x32xf32> to vector<1x8xf32>
    %1004 = vector.extract_strided_slice %974 {offsets = [2, 24], sizes = [1, 8], strides = [1, 1]} : vector<8x32xf32> to vector<1x8xf32>
    %1005 = vector.extract_strided_slice %974 {offsets = [3, 24], sizes = [1, 8], strides = [1, 1]} : vector<8x32xf32> to vector<1x8xf32>
    %1006 = vector.extract_strided_slice %974 {offsets = [4, 24], sizes = [1, 8], strides = [1, 1]} : vector<8x32xf32> to vector<1x8xf32>
    %1007 = vector.extract_strided_slice %974 {offsets = [5, 24], sizes = [1, 8], strides = [1, 1]} : vector<8x32xf32> to vector<1x8xf32>
    %1008 = vector.extract_strided_slice %974 {offsets = [6, 24], sizes = [1, 8], strides = [1, 1]} : vector<8x32xf32> to vector<1x8xf32>
    %1009 = vector.extract_strided_slice %974 {offsets = [7, 24], sizes = [1, 8], strides = [1, 1]} : vector<8x32xf32> to vector<1x8xf32>
    %1010 = tpu.concatenate %1002, %1003, %1004, %1005, %1006, %1007, %1008, %1009 in 1 : vector<1x8xf32>, vector<1x8xf32>, vector<1x8xf32>, vector<1x8xf32>, vector<1x8xf32>, vector<1x8xf32>, vector<1x8xf32>, vector<1x8xf32> -> vector<1x64xf32>
    %1011 = tpu.concatenate %831, %840, %849, %858, %983, %992, %1001, %1010 in 0 : vector<1x64xf32>, vector<1x64xf32>, vector<1x64xf32>, vector<1x64xf32>, vector<1x64xf32>, vector<1x64xf32>, vector<1x64xf32>, vector<1x64xf32> -> vector<8x64xf32>
    %c0_207 = arith.constant 0 : index
    %c0_208 = arith.constant 0 : index
    %1012 = vector.load %arg16[%c0_207, %c0_208] : memref<64x64xf32, #tpu.memory_space<vmem>>, vector<64x64xf32>
    %c0_209 = arith.constant 0 : index
    %c0_210 = arith.constant 0 : index
    %1013 = vector.load %arg17[%c0_209, %c0_210] : memref<64x64xf32, #tpu.memory_space<vmem>>, vector<64x64xf32>
    %c0_211 = arith.constant 0 : index
    %c0_212 = arith.constant 0 : index
    %c0_213 = arith.constant 0 : index
    %1014 = vector.load %arg18[%c0_211, %c0_212, %c0_213] : memref<2x8x8xf32, #tpu.memory_space<vmem>>, vector<2x8x8xf32>
    %c0_214 = arith.constant 0 : index
    %c0_215 = arith.constant 0 : index
    %c0_216 = arith.constant 0 : index
    %1015 = vector.load %arg19[%c0_214, %c0_215, %c0_216] : memref<2x8x8xf32, #tpu.memory_space<vmem>>, vector<2x8x8xf32>
    %c0_217 = arith.constant 0 : index
    %c0_218 = arith.constant 0 : index
    %1016 = vector.load %arg20[%c0_217, %c0_218] : memref<1x2xf32, #tpu.memory_space<vmem>>, vector<1x2xf32>
    %cst_219 = arith.constant dense<0.000000e+00> : vector<8x64xf32>
    %1017 = tpu.matmul %1011, %1012, %cst_219 {dimension_numbers = #tpu.dot_dimension_numbers<[1], [0], [0], [1], [0, 0, 1, 1], [], []>} : vector<8x64xf32>, vector<64x64xf32>, vector<8x64xf32> -> vector<8x64xf32>
    %cst_220 = arith.constant 0.000000e+00 : f32
    %1018 = vector.broadcast %cst_220 : f32 to vector<8x64xf32>
    %1019 = vector.extract_strided_slice %1014 {offsets = [0, 0, 0], sizes = [1, 8, 8], strides = [1, 1, 1]} : vector<2x8x8xf32> to vector<1x8x8xf32>
    %1020 = vector.shape_cast %1019 : vector<1x8x8xf32> to vector<8x8xf32>
    %cst_221 = arith.constant dense<0.000000e+00> : vector<8x64xf32>
    %1021 = tpu.matmul %1020, %1017, %cst_221 {dimension_numbers = #tpu.dot_dimension_numbers<[1], [0], [0], [1], [0, 0, 1, 1], [], []>} : vector<8x8xf32>, vector<8x64xf32>, vector<8x64xf32> -> vector<8x64xf32>
    %cst_222 = arith.constant 0.000000e+00 : f32
    %1022 = vector.broadcast %cst_222 : f32 to vector<8x64xf32>
    %1023 = arith.cmpf ogt, %1021, %1022 : vector<8x64xf32>
    %cst_223 = arith.constant 1.000000e-01 : f32
    %1024 = vector.broadcast %cst_223 : f32 to vector<8x64xf32>
    %1025 = arith.mulf %1024, %1021 : vector<8x64xf32>
    %1026 = arith.select %1023, %1021, %1025 : vector<8x64xi1>, vector<8x64xf32>
    %1027 = vector.extract_strided_slice %1015 {offsets = [0, 0, 0], sizes = [1, 8, 8], strides = [1, 1, 1]} : vector<2x8x8xf32> to vector<1x8x8xf32>
    %1028 = vector.shape_cast %1027 : vector<1x8x8xf32> to vector<8x8xf32>
    %cst_224 = arith.constant dense<0.000000e+00> : vector<8x64xf32>
    %1029 = tpu.matmul %1026, %1013, %cst_224 {dimension_numbers = #tpu.dot_dimension_numbers<[1], [0], [0], [1], [0, 0, 1, 1], [], []>} : vector<8x64xf32>, vector<64x64xf32>, vector<8x64xf32> -> vector<8x64xf32>
    %cst_225 = arith.constant dense<0.000000e+00> : vector<8x64xf32>
    %1030 = tpu.matmul %1028, %1029, %cst_225 {dimension_numbers = #tpu.dot_dimension_numbers<[1], [0], [0], [1], [0, 0, 1, 1], [], []>} : vector<8x8xf32>, vector<8x64xf32>, vector<8x64xf32> -> vector<8x64xf32>
    %cst_226 = arith.constant 0.000000e+00 : f32
    %1031 = vector.broadcast %cst_226 : f32 to vector<8x64xf32>
    %1032 = arith.cmpf ogt, %1030, %1031 : vector<8x64xf32>
    %cst_227 = arith.constant 1.000000e-01 : f32
    %1033 = vector.broadcast %cst_227 : f32 to vector<8x64xf32>
    %1034 = arith.mulf %1033, %1030 : vector<8x64xf32>
    %1035 = arith.select %1032, %1030, %1034 : vector<8x64xi1>, vector<8x64xf32>
    %1036 = vector.extract_strided_slice %1016 {offsets = [0, 0], sizes = [1, 1], strides = [1, 1]} : vector<1x2xf32> to vector<1x1xf32>
    %1037 = vector.broadcast %1036 : vector<1x1xf32> to vector<8x64xf32>
    %1038 = arith.mulf %1037, %1035 : vector<8x64xf32>
    %1039 = arith.addf %1018, %1038 : vector<8x64xf32>
    %1040 = vector.extract_strided_slice %1014 {offsets = [1, 0, 0], sizes = [1, 8, 8], strides = [1, 1, 1]} : vector<2x8x8xf32> to vector<1x8x8xf32>
    %1041 = vector.shape_cast %1040 : vector<1x8x8xf32> to vector<8x8xf32>
    %cst_228 = arith.constant dense<0.000000e+00> : vector<8x64xf32>
    %1042 = tpu.matmul %1041, %1017, %cst_228 {dimension_numbers = #tpu.dot_dimension_numbers<[1], [0], [0], [1], [0, 0, 1, 1], [], []>} : vector<8x8xf32>, vector<8x64xf32>, vector<8x64xf32> -> vector<8x64xf32>
    %cst_229 = arith.constant 0.000000e+00 : f32
    %1043 = vector.broadcast %cst_229 : f32 to vector<8x64xf32>
    %1044 = arith.cmpf ogt, %1042, %1043 : vector<8x64xf32>
    %cst_230 = arith.constant 1.000000e-01 : f32
    %1045 = vector.broadcast %cst_230 : f32 to vector<8x64xf32>
    %1046 = arith.mulf %1045, %1042 : vector<8x64xf32>
    %1047 = arith.select %1044, %1042, %1046 : vector<8x64xi1>, vector<8x64xf32>
    %1048 = vector.extract_strided_slice %1015 {offsets = [1, 0, 0], sizes = [1, 8, 8], strides = [1, 1, 1]} : vector<2x8x8xf32> to vector<1x8x8xf32>
    %1049 = vector.shape_cast %1048 : vector<1x8x8xf32> to vector<8x8xf32>
    %cst_231 = arith.constant dense<0.000000e+00> : vector<8x64xf32>
    %1050 = tpu.matmul %1047, %1013, %cst_231 {dimension_numbers = #tpu.dot_dimension_numbers<[1], [0], [0], [1], [0, 0, 1, 1], [], []>} : vector<8x64xf32>, vector<64x64xf32>, vector<8x64xf32> -> vector<8x64xf32>
    %cst_232 = arith.constant dense<0.000000e+00> : vector<8x64xf32>
    %1051 = tpu.matmul %1049, %1050, %cst_232 {dimension_numbers = #tpu.dot_dimension_numbers<[1], [0], [0], [1], [0, 0, 1, 1], [], []>} : vector<8x8xf32>, vector<8x64xf32>, vector<8x64xf32> -> vector<8x64xf32>
    %cst_233 = arith.constant 0.000000e+00 : f32
    %1052 = vector.broadcast %cst_233 : f32 to vector<8x64xf32>
    %1053 = arith.cmpf ogt, %1051, %1052 : vector<8x64xf32>
    %cst_234 = arith.constant 1.000000e-01 : f32
    %1054 = vector.broadcast %cst_234 : f32 to vector<8x64xf32>
    %1055 = arith.mulf %1054, %1051 : vector<8x64xf32>
    %1056 = arith.select %1053, %1051, %1055 : vector<8x64xi1>, vector<8x64xf32>
    %1057 = vector.extract_strided_slice %1016 {offsets = [0, 1], sizes = [1, 1], strides = [1, 1]} : vector<1x2xf32> to vector<1x1xf32>
    %1058 = vector.broadcast %1057 : vector<1x1xf32> to vector<8x64xf32>
    %1059 = arith.mulf %1058, %1056 : vector<8x64xf32>
    %1060 = arith.addf %1039, %1059 : vector<8x64xf32>
    %c0_235 = arith.constant 0 : index
    %c0_236 = arith.constant 0 : index
    %1061 = vector.load %arg21[%c0_235, %c0_236] : memref<64x128xf32, #tpu.memory_space<vmem>>, vector<64x128xf32>
    %cst_237 = arith.constant dense<0.000000e+00> : vector<8x128xf32>
    %1062 = tpu.matmul %1011, %1061, %cst_237 {dimension_numbers = #tpu.dot_dimension_numbers<[1], [0], [0], [1], [0, 0, 1, 1], [], []>} : vector<8x64xf32>, vector<64x128xf32>, vector<8x128xf32> -> vector<8x128xf32>
    %c0_238 = arith.constant 0 : index
    %c0_239 = arith.constant 0 : index
    %1063 = vector.load %arg22[%c0_238, %c0_239] : memref<64x128xf32, #tpu.memory_space<vmem>>, vector<64x128xf32>
    %cst_240 = arith.constant dense<0.000000e+00> : vector<8x128xf32>
    %1064 = tpu.matmul %1060, %1063, %cst_240 {dimension_numbers = #tpu.dot_dimension_numbers<[1], [0], [0], [1], [0, 0, 1, 1], [], []>} : vector<8x64xf32>, vector<64x128xf32>, vector<8x128xf32> -> vector<8x128xf32>
    %1065 = arith.addf %1062, %1064 : vector<8x128xf32>
    %c0_241 = arith.constant 0 : index
    %c0_242 = arith.constant 0 : index
    %1066 = vector.load %arg23[%c0_241, %c0_242] : memref<1x128xf32, #tpu.memory_space<vmem>>, vector<1x128xf32>
    %1067 = vector.broadcast %1066 : vector<1x128xf32> to vector<8x128xf32>
    %1068 = arith.addf %1065, %1067 : vector<8x128xf32>
    %cst_243 = arith.constant 0.000000e+00 : f32
    %1069 = vector.broadcast %cst_243 : f32 to vector<8x128xf32>
    %1070 = arith.maximumf %1068, %1069 : vector<8x128xf32>
    %c0_244 = arith.constant 0 : index
    %c0_245 = arith.constant 0 : index
    %1071 = vector.load %arg24[%c0_244, %c0_245] : memref<128x8xf32, #tpu.memory_space<vmem>>, vector<128x8xf32>
    %cst_246 = arith.constant dense<0.000000e+00> : vector<8x8xf32>
    %1072 = tpu.matmul %1070, %1071, %cst_246 {dimension_numbers = #tpu.dot_dimension_numbers<[1], [0], [0], [1], [0, 0, 1, 1], [], []>} : vector<8x128xf32>, vector<128x8xf32>, vector<8x8xf32> -> vector<8x8xf32>
    %c0_247 = arith.constant 0 : index
    %c0_248 = arith.constant 0 : index
    %1073 = vector.load %arg25[%c0_247, %c0_248] : memref<1x1xf32, #tpu.memory_space<vmem>>, vector<1x1xf32>
    %1074 = vector.broadcast %1073 : vector<1x1xf32> to vector<8x8xf32>
    %1075 = arith.addf %1072, %1074 : vector<8x8xf32>
    %1076 = vector.extract_strided_slice %1075 {offsets = [0, 0], sizes = [1, 8], strides = [1, 1]} : vector<8x8xf32> to vector<1x8xf32>
    %1077 = vector.extract_strided_slice %1075 {offsets = [1, 0], sizes = [1, 8], strides = [1, 1]} : vector<8x8xf32> to vector<1x8xf32>
    %1078 = vector.extract_strided_slice %1075 {offsets = [2, 0], sizes = [1, 8], strides = [1, 1]} : vector<8x8xf32> to vector<1x8xf32>
    %1079 = vector.extract_strided_slice %1075 {offsets = [3, 0], sizes = [1, 8], strides = [1, 1]} : vector<8x8xf32> to vector<1x8xf32>
    %1080 = tpu.concatenate %1076, %1077, %1078, %1079 in 1 : vector<1x8xf32>, vector<1x8xf32>, vector<1x8xf32>, vector<1x8xf32> -> vector<1x32xf32>
    %1081 = vector.extract_strided_slice %1075 {offsets = [4, 0], sizes = [1, 8], strides = [1, 1]} : vector<8x8xf32> to vector<1x8xf32>
    %1082 = vector.extract_strided_slice %1075 {offsets = [5, 0], sizes = [1, 8], strides = [1, 1]} : vector<8x8xf32> to vector<1x8xf32>
    %1083 = vector.extract_strided_slice %1075 {offsets = [6, 0], sizes = [1, 8], strides = [1, 1]} : vector<8x8xf32> to vector<1x8xf32>
    %1084 = vector.extract_strided_slice %1075 {offsets = [7, 0], sizes = [1, 8], strides = [1, 1]} : vector<8x8xf32> to vector<1x8xf32>
    %1085 = tpu.concatenate %1081, %1082, %1083, %1084 in 1 : vector<1x8xf32>, vector<1x8xf32>, vector<1x8xf32>, vector<1x8xf32> -> vector<1x32xf32>
    %1086 = tpu.concatenate %1080, %1085 in 0 : vector<1x32xf32>, vector<1x32xf32> -> vector<2x32xf32>
    %c0_249 = arith.constant 0 : index
    %c0_250 = arith.constant 0 : index
    %1087 = vector.load %arg26[%c0_249, %c0_250] : memref<2x32xf32, #tpu.memory_space<vmem>>, vector<2x32xf32>
    tpu.vector_store %arg26[%c0_249, %c0_250], %1086 {strides = array<i32>} : memref<2x32xf32, #tpu.memory_space<vmem>>, vector<2x32xf32>,
    return
  }
}

</mosaic_0001>

<bundles_post_ra>
// kernel: tile.19
= control target key start
LH: loop header
LB: loop body
LE: loop exit
PB: predicated region body
PF: predicated region fallthrough
CT: control target
= control target key end

     0   :  { %s67_s10 = smov 112   ;;  %s68_s11 = smov 80   ;;  %vm3_vm0 = vcmask 130048   ;;  %vm9_vm1 = vcmask 1048448   ;;  %vm15_vm2 = vcmask 917248   ;;  %vm21_vm3 = vcmask 786048   ;;  %s111_s0 = inlined_call_operand.vmem [shape: f32[8,16], index: 0, kind: input, shape index: {}]   ;;  %s112_s1 = inlined_call_operand.vmem [shape: f32[1,128], index: 1, kind: output, shape index: {}]  }
   0x1   :  { %v53_v0 = vld [vmem:[%s111_s0 + $0x7] sm:$0x1]   ;;  %v55_v1 = vld [vmem:[%s111_s0 + $0x5] sm:$0x1]   ;;  %v54_v2 = vld [vmem:[%s111_s0 + $0x6] sm:$0x1]  }
   0x2   :  { %7 = vrot.lane.b32.xlu0 %v53_v0, %s67_s10  ;;  %19 = vrot.lane.b32.xlu1 %v55_v1, %s68_s11  ;;  %v56_v3 = vld [vmem:[%s111_s0 + $0x4] sm:$0x1]   ;;  %v2_v4 = vld [vmem:[%s111_s0] sm:$0x1]   ;;  %s69_s18 = smov 96   ;;  %s70_s19 = smov 64  }
   0x3   :  { %4 = vst.msk [vmem:[#allocation0] sm:$0x1] %vm3_vm0, %v2_v4   ;;  %v57_v5 = vld [vmem:[%s111_s0 + $0x3] sm:$0x1]   ;;  %v58_v6 = vld [vmem:[%s111_s0 + $0x2] sm:$0x1]  }
   0x4   :  { %s71_s24 = smov 48   ;;  %s72_s25 = smov 32   ;;  %v59_v7 = vld [vmem:[%s111_s0 + $0x1] sm:$0x1]   ;;  %vm27_vm4 = vcmask 654848   ;;  %vm33_vm5 = vcmask 523648  }
   0x5   :  { %s73_s0 = smov 16   ;;  %vm39_vm6 = vcmask 392448   ;;  %vm45_vm7 = vcmask 261248  }
   0x6   :  { %13 = vrot.lane.b32.xlu0 %v54_v2, %s69_s18  ;;  %25 = vrot.lane.b32.xlu1 %v56_v3, %s70_s19 }
   0xa   :  { %31 = vrot.lane.b32.xlu0 %v57_v5, %s71_s24  ;;  %37 = vrot.lane.b32.xlu1 %v58_v6, %s72_s25 }
   0xe   :  { %43 = vrot.lane.b32.xlu0 %v59_v7, %s73_s0 }
  0x74   :  { %v8_v8 = vpop.permute.xlu0 %7   ;;  %v20_v9 = vpop.permute.xlu1 %19  }
  0x75   :  { %10 = vst.msk [vmem:[#allocation0] sm:$0x1] %vm9_vm1, %v8_v8  }
  0x78   :  { %v14_v10 = vpop.permute.xlu0 %13   ;;  %v26_v11 = vpop.permute.xlu1 %25  }
  0x79   :  { %16 = vst.msk [vmem:[#allocation0] sm:$0x1] %vm15_vm2, %v14_v10  }
  0x7a   :  { %22 = vst.msk [vmem:[#allocation0] sm:$0x1] %vm21_vm3, %v20_v9  }
  0x7b   :  { %28 = vst.msk [vmem:[#allocation0] sm:$0x1] %vm27_vm4, %v26_v11  }
  0x7c   :  { %v32_v12 = vpop.permute.xlu0 %31   ;;  %v38_v13 = vpop.permute.xlu1 %37  }
  0x7d   :  { %34 = vst.msk [vmem:[#allocation0] sm:$0x1] %vm33_vm5, %v32_v12  }
  0x7e   :  { %40 = vst.msk [vmem:[#allocation0] sm:$0x1] %vm39_vm6, %v38_v13  }
  0x80   :  { %v44_v14 = vpop.permute.xlu0 %43  }
  0x81   :  { %46 = vst.msk [vmem:[#allocation0] sm:$0x1] %vm45_vm7, %v44_v14  }
  0x88   :  { %v50_v15 = vld [vmem:[#allocation0] sm:$0x1] }
  0x89   :  { %52 = vst [vmem:[%s112_s1] sm:$0x1] %v50_v15 }

// kernel: tile.13
= control target key start
LH: loop header
LB: loop body
LE: loop exit
PB: predicated region body
PF: predicated region fallthrough
CT: control target
= control target key end

     0   :  { %s22_s0 = inlined_call_operand.vmem [shape: f32[16], index: 0, kind: input, shape index: {}]   ;;  %s23_s1 = inlined_call_operand.vmem [shape: f32[4,16], index: 1, kind: output, shape index: {}]  }
   0x1   :  { %v4_v0 = vld [vmem:[%s22_s0] ss:$0 sm:$0xff] }
   0x2   :  { %5 = vst [vmem:[%s23_s1] sm:$0xf] %v4_v0 }

// kernel: tile.14
= control target key start
LH: loop header
LB: loop body
LE: loop exit
PB: predicated region body
PF: predicated region fallthrough
CT: control target
= control target key end

     0   :  { %vm7_vm0 = vcmask 130048   ;;  %s37_s8 = smov 16   ;;  %s38_s9 = smov 32   ;;  %vm13_vm1 = vcmask 523648   ;;  %vm19_vm2 = vcmask 392448   ;;  %vm25_vm3 = vcmask 261248   ;;  %s55_s0 = inlined_call_operand.vmem [shape: f32[4,16], index: 0, kind: input, shape index: {}]   ;;  %s56_s1 = inlined_call_operand.vmem [shape: f32[1,64], index: 1, kind: output, shape index: {}]  }
   0x1   :  { %v4_v0 = vld [vmem:[%s55_s0] sm:$0xf]  ;;  %s36_s0 = smov 48  }
   0x2   :  { %5 = vst [vmem:[#allocation1] sm:$0xf] %v4_v0 }
   0x9   :  { %v10_v1 = vld [vmem:[#allocation1 + $0x3] sm:$0x1]   ;;  %v22_v2 = vld [vmem:[#allocation1 + $0x1] sm:$0x1]   ;;  %v6_v3 = vld [vmem:[#allocation1] sm:$0x1]  }
   0xa   :  { %11 = vrot.lane.b32.xlu0 %v10_v1, %s36_s0  ;;  %23 = vrot.lane.b32.xlu1 %v22_v2, %s37_s8  ;;  %v16_v4 = vld [vmem:[#allocation1 + $0x2] sm:$0x1]   ;;  %8 = vst.msk [vmem:[#allocation0] sm:$0x1] %vm7_vm0, %v6_v3  }
   0xe   :  { %17 = vrot.lane.b32.xlu0 %v16_v4, %s38_s9 }
  0x7c   :  { %v12_v5 = vpop.permute.xlu0 %11   ;;  %v24_v6 = vpop.permute.xlu1 %23  }
  0x7d   :  { %14 = vst.msk [vmem:[#allocation0] sm:$0x1] %vm13_vm1, %v12_v5  }
  0x80   :  { %v18_v7 = vpop.permute.xlu0 %17  }
  0x81   :  { %20 = vst.msk [vmem:[#allocation0] sm:$0x1] %vm19_vm2, %v18_v7  }
  0x82   :  { %26 = vst.msk [vmem:[#allocation0] sm:$0x1] %vm25_vm3, %v24_v6  }
  0x89   :  { %v30_v8 = vld [vmem:[#allocation0] sm:$0x1] }
  0x8a   :  { %32 = vst [vmem:[%s56_s1] sm:$0x1] %v30_v8 }

// kernel: model_forward.1
= control target key start
LH: loop header
LB: loop body
LE: loop exit
PB: predicated region body
PF: predicated region fallthrough
CT: control target
= control target key end

     0   :  { %vm97_vm0 = vcmask 195584   ;;  %vm207_vm1 = vcmask 523264   ;;  %s7996_s29 = smov 64   ;;  %vm511_vm2 = vcmask 517120   ;;  %vm7998_vm3 = vmmov 0   ;;  %s8002_s30 = smov 88   ;;  %s9724_s1 = inlined_call_operand.vmem [shape: f32[24,64], index: 1, kind: input, shape index: {}]   ;;  %s9725_s0 = inlined_call_operand.vmem [shape: f32[16,24], index: 0, kind: input, shape index: {}]   ;;  %s9726_s5 = inlined_call_operand.vmem [shape: f32[96,384], index: 5, kind: input, shape index: {}]   ;;  %s9727_s3 = inlined_call_operand.vmem [shape: f32[64,256], index: 3, kind: input, shape index: {}]   ;;  %s9728_s2 = inlined_call_operand.vmem [shape: f32[1,64], index: 2, kind: input, shape index: {}]   ;;  %s9729_s4 = inlined_call_operand.vmem [shape: f32[1,256], index: 4, kind: input, shape index: {}]   ;;  %s9730_s6 = inlined_call_operand.vmem [shape: f32[1,64], index: 6, kind: input, shape index: {}]   ;;  %s9731_s7 = inlined_call_operand.vmem [shape: f32[1,64], index: 7, kind: input, shape index: {}]   ;;  %s9732_s8 = inlined_call_operand.vmem [shape: f32[64,128], index: 8, kind: input, shape index: {}]   ;;  %s9733_s9 = inlined_call_operand.vmem [shape: f32[1,128], index: 9, kind: input, shape index: {}]   ;;  %s9734_s10 = inlined_call_operand.vmem [shape: f32[32,96], index: 10, kind: input, shape index: {}]   ;;  %s9735_s11 = inlined_call_operand.vmem [shape: f32[1,96], index: 11, kind: input, shape index: {}]   ;;  %s9736_s12 = inlined_call_operand.vmem [shape: f32[32,32], index: 12, kind: input, shape index: {}]   ;;  %s9737_s13 = inlined_call_operand.vmem [shape: f32[1,32], index: 13, kind: input, shape index: {}]   ;;  %s9738_s14 = inlined_call_operand.vmem [shape: f32[1,32], index: 14, kind: input, shape index: {}]   ;;  %s9739_s15 = inlined_call_operand.vmem [shape: f32[1,32], index: 15, kind: input, shape index: {}]   ;;  %s9740_s16 = inlined_call_operand.vmem [shape: f32[64,64], index: 16, kind: input, shape index: {}]   ;;  %s9741_s17 = inlined_call_operand.vmem [shape: f32[64,64], index: 17, kind: input, shape index: {}]   ;;  %s9742_s18 = inlined_call_operand.vmem [shape: f32[2,8,8], index: 18, kind: input, shape index: {}]   ;;  %s9743_s20 = inlined_call_operand.vmem [shape: f32[1,2], index: 20, kind: input, shape index: {}]   ;;  %s9744_s19 = inlined_call_operand.vmem [shape: f32[2,8,8], index: 19, kind: input, shape index: {}]   ;;  %s9745_s21 = inlined_call_operand.vmem [shape: f32[64,128], index: 21, kind: input, shape index: {}]   ;;  %s9746_s22 = inlined_call_operand.vmem [shape: f32[64,128], index: 22, kind: input, shape index: {}]   ;;  %s9747_s24 = inlined_call_operand.vmem [shape: f32[128,8], index: 24, kind: input, shape index: {}]   ;;  %s9748_s25 = inlined_call_operand.<no memory space> [shape: f32[1,1], index: 25, kind: input, shape index: {}]   ;;  %s9749_s23 = inlined_call_operand.vmem [shape: f32[1,128], index: 23, kind: input, shape index: {}]   ;;  %s9750_s26 = inlined_call_operand.vmem [shape: f32[2,32], index: 26, kind: output, shape index: {}]  }
   0x1   :  { %9758 = sst [smem:[#allocation3_spill]] %s9724_s1  ;;  %vm338_vm4 = vcmask 785408   ;;  %vm841_vm5 = vcmask 519170   ;;  %vm1151_vm6 = vcmask 521220   ;;  %vm2825_vm7 = vcmask 1040384  }
   0x2   :  { %9759 = sst [smem:[#allocation4_spill]] %s9725_s0  ;;  %vm2827_vm8 = vcmask 1041408   ;;  %vm1461_vm9 = vcmask 523270   ;;  %vm2829_vm10 = vcmask 1042432   ;;  %vm2831_vm11 = vcmask 1043456   ;;  %s8009_s0 = smov 40  }
   0x3   :  { %9760 = sst [smem:[#allocation5_spill]] %s9726_s5  ;;  %s9770_s1 = sld [smem:[#allocation4_spill]]  ;;  %vm2833_vm12 = vcmask 1044480   ;;  %vm2835_vm13 = vcmask 1045504   ;;  %vm2837_vm14 = vcmask 1046528   ;;  %vm2877_vm15 = vcmask 261120  }
   0x4   :  { %9761 = sst [smem:[#allocation6_spill]] %s9727_s3 }
   0x5   :  { %9762 = sst [smem:[#allocation7_spill]] %s9728_s2  ;;  %s9772_s5 = sld [smem:[#allocation6_spill]] }
   0x6   :  { %9763 = sst [smem:[#allocation8_spill]] %s9729_s4  ;;  %s9773_s28 = sld [smem:[#allocation7_spill]] }
   0x7   :  { %9764 = sst [smem:[#allocation9_spill]] %s9730_s6  ;;  %s9774_s2 = sld [smem:[#allocation8_spill]] }
   0x8   :  { %9765 = sst [smem:[#allocation10_spill]] %s9731_s7  ;;  %s9769_s7 = sld [smem:[#allocation3_spill]] }
   0x9   :  { %9766 = sst [smem:[#allocation11_spill]] %s9732_s8  ;;  %v85_v3 = vld [vmem:[%s9770_s1] sm:$0xff]  ;;  %v86_v17 = vld [vmem:[%s9770_s1 + $0x8] sm:$0xff]  ;;  %s9775_s4 = sld [smem:[#allocation9_spill]] }
   0xa   :  { %9767 = sst [smem:[#allocation12_spill]] %s9733_s9  ;;  %6563 = vmatprep.mubr.msk.f32.mxu0 %vm97_vm0, %v85_v3  ;;  %s9776_s27 = sld [smem:[#allocation10_spill]] }
   0xb   :  { %9768 = sst [smem:[#allocation13_spill]] %s9734_s10  ;;  %v180_v11 = vld [vmem:[%s9772_s5 + $0x8] sm:$0xff]  ;;  %v182_v12 = vld [vmem:[%s9772_s5 + $0x18] sm:$0xff]  ;;  %v179_v15 = vld [vmem:[%s9772_s5] sm:$0xff]  ;;  %s9777_s6 = sld [smem:[#allocation11_spill]] }
   0xc   :  { %s9771_s10 = sld [smem:[#allocation5_spill]]  ;;  %v7219_v14 = vpack.c.bf16 %v182_v12, %v180_v11  ;;  %v181_v16 = vld [vmem:[%s9772_s5 + $0x10] sm:$0xff]  ;;  %v184_v23 = vld [vmem:[%s9772_s5 + $0x28] sm:$0xff]  ;;  %v186_v24 = vld [vmem:[%s9772_s5 + $0x38] sm:$0xff]  ;;  %s9778_s8 = sld [smem:[#allocation12_spill]] }
   0xd   :  { %v7221_v21 = vpack.c.bf16 %v181_v16, %v179_v15  ;;  %v183_v25 = vld [vmem:[%s9772_s5 + $0x20] sm:$0xff]  ;;  %v7223_v28 = vpack.c.bf16 %v186_v24, %v184_v23  ;;  %v185_v29 = vld [vmem:[%s9772_s5 + $0x30] sm:$0xff]  ;;  %v188_v31 = vld [vmem:[%s9772_s5 + $0x48] sm:$0xff]  ;;  %s8005_s1 = smov 56  }
   0xe   :  { %v87_v0 = vld [vmem:[%s9769_s7] sm:$0xff]  ;;  %v88_v1 = vld [vmem:[%s9769_s7 + $0x8] sm:$0xff]  ;;  %v89_v4 = vld [vmem:[%s9769_s7 + $0x10] sm:$0xff]  ;;  %7220 = vmatprep.subr.bf16.mxu1 %v7219_v14  ;;  %v7225_v30 = vpack.c.bf16 %v185_v29, %v183_v25  ;;  %s7999_s7 = smov 32  }
   0xf   :  { %v7215_v2 = vpack.c.bf16 %v88_v1, %v87_v0  ;;  %7222 = vmatpush1.bf16.msra.mxu1 %v7221_v21  ;;  %v190_v33 = vld [vmem:[%s9772_s5 + $0x58] sm:$0xff]  ;;  %v187_v34 = vld [vmem:[%s9772_s5 + $0x40] sm:$0xff]  ;;  %v189_v35 = vld [vmem:[%s9772_s5 + $0x50] sm:$0xff] }
  0x10   :  { %7224 = vmatprep.subr.bf16.mxu1 %v7223_v28  ;;  %v7227_v39 = vpack.c.bf16 %v190_v33, %v188_v31  ;;  %v7229_v42 = vpack.c.bf16 %v189_v35, %v187_v34  ;;  %v192_v54 = vld [vmem:[%s9772_s5 + $0x68] sm:$0xff]  ;;  %v194_v55 = vld [vmem:[%s9772_s5 + $0x78] sm:$0xff]  ;;  %v191_v57 = vld [vmem:[%s9772_s5 + $0x60] sm:$0xff] }
  0x11   :  { %7216 = vmatprep.subr.bf16.mxu0 %v7215_v2  ;;  %v7231_v56 = vpack.c.bf16 %v194_v55, %v192_v54  ;;  %v193_v58 = vld [vmem:[%s9772_s5 + $0x70] sm:$0xff]  ;;  %v6148_v3 = vld [vmem:[%s9773_s28] ss:$0 sm:$0xff]  ;;  %s8007_s28 = smov 104  }
  0x12   :  { %v292_v5 = vld [vmem:[%s9771_s10 + $0x8] sm:$0xff]  ;;  %v295_v6 = vld [vmem:[%s9771_s10 + $0x20] sm:$0xff]  ;;  %v294_v8 = vld [vmem:[%s9771_s10 + $0x18] sm:$0xff]  ;;  %7218 = vmatpush3.bf16.msra.mxu0 %v7215_v2  ;;  %v7233_v60 = vpack.c.bf16 %v193_v58, %v191_v57  ;;  %v7995_v2 = vmov 0.0  }
  0x13   :  { %v291_v7 = vld [vmem:[%s9771_s10] sm:$0xff]  ;;  %v298_v9 = vld [vmem:[%s9771_s10 + $0x38] sm:$0xff]  ;;  %v301_v10 = vld [vmem:[%s9771_s10 + $0x50] sm:$0xff]  ;;  %6561 = vmatprep.subr.mxu0 %v89_v4  ;;  %v8187_v13 = vpack.c.bf16 %v295_v6, %v292_v5  ;;  %7226 = vmatpush1.bf16.msra.mxu1 %v7225_v30 }
  0x14   :  { %v8198_v18 = vpack.c.bf16 %v294_v8, %v291_v7  ;;  %v297_v19 = vld [vmem:[%s9771_s10 + $0x30] sm:$0xff]  ;;  %v300_v20 = vld [vmem:[%s9771_s10 + $0x48] sm:$0xff]  ;;  %v8206_v22 = vpack.c.bf16 %v301_v10, %v298_v9  ;;  %v307_v27 = vld [vmem:[%s9771_s10 + $0x80] sm:$0xff]  ;;  %7228 = vmatprep.subr.bf16.mxu1 %v7227_v39  ;;  %278 = vmatprep.mubr.f32.mxu1 %v7995_v2  ;;  %v197_v10 = vlaneseq }
  0x15   :  { %v304_v26 = vld [vmem:[%s9771_s10 + $0x68] sm:$0xff]  ;;  %v8232_v32 = vpack.c.bf16 %v300_v20, %v297_v19  ;;  %v303_v37 = vld [vmem:[%s9771_s10 + $0x60] sm:$0xff]  ;;  %v306_v38 = vld [vmem:[%s9771_s10 + $0x78] sm:$0xff] }
  0x16   :  { %6562 = vmatpush3.msra.mxu0 %v89_v4  ;;  %v8244_v36 = vpack.c.bf16 %v307_v27, %v304_v26  ;;  %v310_v40 = vld [vmem:[%s9771_s10 + $0x98] sm:$0xff]  ;;  %v313_v41 = vld [vmem:[%s9771_s10 + $0xb0] sm:$0xff]  ;;  %v8259_v43 = vpack.c.bf16 %v306_v38, %v303_v37  ;;  %v312_v46 = vld [vmem:[%s9771_s10 + $0xa8] sm:$0xff]  ;;  %v8333_v11 = vshrl.u32 %v197_v10, 7 }
  0x17   :  { %6564 = vmatmul.mubr.msk.f32.vlgmr.msra.gmra.mrb[0].mxu0 %vm97_vm0, %v86_v17  ;;  %7236 = vmatprep.subr.bf16.mxu0 %v8187_v13  ;;  %v8262_v44 = vpack.c.bf16 %v313_v41, %v310_v40  ;;  %v309_v45 = vld [vmem:[%s9771_s10 + $0x90] sm:$0xff]  ;;  %v316_v47 = vld [vmem:[%s9771_s10 + $0xc8] sm:$0xff]  ;;  %v319_v48 = vld [vmem:[%s9771_s10 + $0xe0] sm:$0xff] }
  0x18   :  { %7238 = vmatpush1.bf16.msra.mxu0 %v8198_v18  ;;  %7230 = vmatpush1.bf16.msra.mxu1 %v7229_v42  ;;  %v8277_v49 = vpack.c.bf16 %v312_v46, %v309_v45  ;;  %v8280_v50 = vpack.c.bf16 %v319_v48, %v316_v47  ;;  %v315_v51 = vld [vmem:[%s9771_s10 + $0xc0] sm:$0xff]  ;;  %v318_v52 = vld [vmem:[%s9771_s10 + $0xd8] sm:$0xff]  ;;  %v325_v61 = vld [vmem:[%s9771_s10 + $0x110] sm:$0xff]  ;;  %v199_v12 = vsub.s32 0, %v8333_v11  ;;  %v203_v17 = vsub.s32 1, %v8333_v11 }
  0x19   :  { %7240 = vmatprep.subr.bf16.mxu0 %v8206_v22  ;;  %v8289_v53 = vpack.c.bf16 %v318_v52, %v315_v51  ;;  %v322_v59 = vld [vmem:[%s9771_s10 + $0xf8] sm:$0xff]  ;;  %v321_v62 = vld [vmem:[%s9771_s10 + $0xf0] sm:$0xff]  ;;  %v324_v63 = vld [vmem:[%s9771_s10 + $0x108] sm:$0xff]  ;;  %7232 = vmatprep.subr.bf16.mxu1 %v7231_v56 }
  0x1a   :  { %v8317_v0 = vpack.c.bf16 %v325_v61, %v322_v59  ;;  %v8319_v1 = vpack.c.bf16 %v324_v63, %v321_v62  ;;  %406 = vmatprep.mubr.f32.mxu0 %v7995_v2  ;;  %v195_v14 = vld [vmem:[%s9774_s2] sm:$0x3]  ;;  %v293_v62 = vld [vmem:[%s9771_s10 + $0x10] sm:$0xff]  ;;  %v296_v63 = vld [vmem:[%s9771_s10 + $0x28] sm:$0xff]  ;;  %s8000_s2 = smov 96  }
  0x1b   :  { %v200_v15 = vrot.slane %v195_v14, %v199_v12  ;;  %v204_v23 = vrot.slane %v195_v14, %v203_v17  ;;  %v6155_v58 = vld [vmem:[%s9775_s4] ss:$0 sm:$0xff]  ;;  %v329_v14 = vld [vmem:[%s9777_s6 + $0x10] sm:$0xff]  ;;  %v308_v17 = vld [vmem:[%s9771_s10 + $0x88] sm:$0xff] }
  0x1c   :  { %7242 = vmatpush1.bf16.msra.mxu0 %v8232_v32  ;;  %7234 = vmatpush1.bf16.msra.mxu1 %v7233_v60  ;;  %v6156_v59 = vld [vmem:[%s9776_s27] ss:$0 sm:$0xff]  ;;  %s9779_s27 = sld [smem:[#allocation13_spill]] }
  0x1d   :  { %7244 = vmatprep.subr.bf16.mxu0 %v8244_v36 }
  0x20   :  { %7246 = vmatpush1.bf16.msra.mxu0 %v8259_v43 }
  0x21   :  { %7248 = vmatprep.subr.bf16.mxu0 %v8262_v44 }
  0x24   :  { %7250 = vmatpush1.bf16.msra.mxu0 %v8277_v49 }
  0x25   :  { %7252 = vmatprep.subr.bf16.mxu0 %v8280_v50 }
  0x28   :  { %7254 = vmatpush1.bf16.msra.mxu0 %v8289_v53 }
  0x29   :  { %7256 = vmatprep.subr.bf16.mxu0 %v8317_v0 }
  0x2c   :  { %7258 = vmatpush1.bf16.msra.mxu0 %v8319_v1 }
  0x2f   :  { %407 = vmatmul.mubr.f32.vlgmr.msra.gmra.mrb[2].mxu0 %v7995_v2 }
  0x30   :  { %6609 = vmatprep.mubr.msk.f32.mxu0 %vm7998_vm3, %v7995_v2 }
  0xea   :  { %v6565_v4 = vpop.f32.mrb[0].mxu0 }
  0xeb   :  { %v170_v5 = vpop.f32.mrb[1].mxu0  ;;  %v176_v7 = vadd.f32 %v6565_v4, %v6148_v3  ;;  %v7997_v4 = vmov 0.0|0.0  }
  0xec   :  { %v171_v6 = vadd.f32 %v6148_v3, %v170_v5  ;;  %v299_v3 = vld [vmem:[%s9771_s10 + $0x40] sm:$0xff]  ;;  %7259 = vmatprep.subr.bf16.mxu1 %v7997_v4  ;;  %v8383_v5 = vpack.c.bf16 %v296_v63, %v293_v62  ;;  %7277 = vmatprep.subr.bf16.mxu0 %v7997_v4 }
  0xee   :  { %6151 = vmatmul.mubr.msk.f32.vlgmr.msra.gmra.mrb[0].mxu1 %vm207_vm1, %v171_v6  ;;  %v302_v6 = vld [vmem:[%s9771_s10 + $0x58] sm:$0xff] }
  0xef   :  { %284 = vmatprep.mubr.f32.mxu1 %v7995_v2  ;;  %7261 = vmatpush3.bf16.msra.mxu1 %v8383_v5 }
  0xf0   :  { %7262 = vmatprep.subr.bf16.mxu1 %v7997_v4 }
  0xf2   :  { %6152 = vmatmul.mubr.msk.f32.gmra.mrb[2].mxu1 %vm207_vm1, %v176_v7  ;;  %v327_v7 = vld [vmem:[%s9777_s6] sm:$0xff] }
  0xf3   :  { %6590 = vmatprep.mubr.msk.f32.mxu1 %vm7998_vm3, %v7995_v2 }
 0x102   :  { %v408_v8 = vpop.f32.mrb[2].mxu0 }
 0x103   :  { %v410_v9 = vpop.f32.mrb[3].mxu0 }
 0x1c1   :  { %v280_v16 = vpop.f32.mrb[0].mxu1 }
 0x1c2   :  { %v8340_v19 = vadd.f32 %v280_v16, %v200_v15  ;;  %v282_v20 = vpop.f32.mrb[1].mxu1  ;;  %v305_v16 = vld [vmem:[%s9771_s10 + $0x70] sm:$0xff] }
 0x1c3   :  { %v8347_v29 = vadd.f32 %v282_v20, %v204_v23 }
 0x1c4   :  { %v483_v21 = vadd.f32 %v408_v8, %v8340_v19  ;;  %v328_v8 = vld [vmem:[%s9777_s6 + $0x8] sm:$0xff] }
 0x1c5   :  { %v286_v24 = vpop.f32.mrb[2].mxu1  ;;  %v484_v30 = vadd.f32 %v410_v9, %v8347_v29  ;;  %v8400_v9 = vpack.c.bf16 %v302_v6, %v299_v3  ;;  %v8402_v12 = vpack.c.bf16 %v328_v8, %v327_v7 }
 0x1c6   :  { %v6153_v25 = vmul.f32 -1.442695, %v483_v21  ;;  %v8343_v26 = vadd.f32 %v286_v24, %v200_v15  ;;  %v288_v27 = vpop.f32.mrb[3].mxu1  ;;  %v330_v15 = vld [vmem:[%s9777_s6 + $0x18] sm:$0xff]  ;;  %v331_v21 = vld [vmem:[%s9777_s6 + $0x20] sm:$0xff]  ;;  %v8428_v24 = vpack.c.bf16 %v308_v17, %v305_v16 }
 0x1c7   :  { %v8345_v28 = vadd.f32 %v288_v27, %v204_v23  ;;  %v6154_v38 = vmul.f32 -1.442695, %v484_v30  ;;  %7279 = vmatpush3.bf16.msra.mxu0 %v8402_v12  ;;  %v8418_v20 = vpack.c.bf16 %v330_v15, %v329_v14  ;;  %v332_v23 = vld [vmem:[%s9777_s6 + $0x28] sm:$0xff]  ;;  %7264 = vmatpush3.bf16.msra.mxu1 %v8400_v9  ;;  %v314_v27 = vld [vmem:[%s9771_s10 + $0xb8] sm:$0xff] }
 0x1c8   :  { %7782 = vpow2.f32 %v6153_v25  ;;  %7280 = vmatprep.subr.bf16.mxu0 %v7997_v4  ;;  %7265 = vmatprep.subr.bf16.mxu1 %v7997_v4  ;;  %v311_v25 = vld [vmem:[%s9771_s10 + $0xa0] sm:$0xff] }
 0x1c9   :  { %7784 = vtanh.f32 %v484_v30  ;;  %v8438_v30 = vpack.c.bf16 %v332_v23, %v331_v21 }
 0x1cb   :  { %7282 = vmatpush3.bf16.msra.mxu0 %v8418_v20  ;;  %7267 = vmatpush3.bf16.msra.mxu1 %v8428_v24 }
 0x1cc   :  { %7283 = vmatprep.subr.bf16.mxu0 %v7997_v4  ;;  %7268 = vmatprep.subr.bf16.mxu1 %v7997_v4 }
 0x1cf   :  { %7285 = vmatpush3.bf16.msra.mxu0 %v8438_v30 }
 0x1d0   :  { %7286 = vmatprep.subr.bf16.mxu0 %v7997_v4 }
 0x1d2   :  { %v7783_v31 = vpop.eup %7782 }
 0x1d3   :  { %v488_v33 = vadd.f32 1.0, %v7783_v31  ;;  %v7785_v34 = vpop.eup %7784  ;;  %v333_v31 = vld [vmem:[%s9777_s6 + $0x30] sm:$0xff] }
 0x1d5   :  { %7786 = vrcp.f32 %v488_v33  ;;  %v334_v33 = vld [vmem:[%s9777_s6 + $0x38] sm:$0xff]  ;;  %s8004_s6 = smov 112  }
 0x1d6   :  { %7788 = vpow2.f32 %v6154_v38  ;;  %v8458_v38 = vpack.c.bf16 %v334_v33, %v333_v31 }
 0x1d8   :  { %7288 = vmatpush3.bf16.msra.mxu0 %v8458_v38 }
 0x1d9   :  { %7313 = vmatprep.subr.bf16.mxu0 %v7997_v4 }
 0x1df   :  { %v7787_v35 = vpop.eup %7786 }
 0x1e0   :  { %v499_v37 = vmul.f32 %v7787_v35, %v7785_v34  ;;  %v7789_v39 = vpop.eup %7788  ;;  %v498_v41 = vmul.f32 0.0, %v7787_v35  ;;  %v8448_v34 = vpack.c.bf16 %v314_v27, %v311_v25  ;;  %v317_v35 = vld [vmem:[%s9771_s10 + $0xd0] sm:$0xff] }
 0x1e1   :  { %v495_v40 = vadd.f32 1.0, %v7789_v39 }
 0x1e2   :  { %501 = vrot.lane.b32.xlu0 %v499_v37, %s7996_s29  ;;  %v320_v37 = vld [vmem:[%s9771_s10 + $0xe8] sm:$0xff]  ;;  %7270 = vmatpush3.bf16.msra.mxu1 %v8448_v34 }
 0x1e3   :  { %7790 = vrcp.f32 %v495_v40  ;;  %v8462_v39 = vpack.c.bf16 %v320_v37, %v317_v35  ;;  %7271 = vmatprep.subr.bf16.mxu1 %v7997_v4  ;;  %v323_v40 = vld [vmem:[%s9771_s10 + $0x100] sm:$0xff] }
 0x1e6   :  { %7273 = vmatpush3.bf16.msra.mxu1 %v8462_v39 }
 0x1e7   :  { %7274 = vmatprep.subr.bf16.mxu1 %v7997_v4 }
 0x1ed   :  { %v7791_v46 = vpop.eup %7790 }
 0x254   :  { %v502_v42 = vpop.permute.xlu0 %501 }
 0x255   :  { %v8351_v45 = vadd.f32 %v502_v42, %v498_v41  ;;  %v326_v41 = vld [vmem:[%s9771_s10 + $0x118] sm:$0xff]  ;;  %s8006_s10 = smov 48  }
 0x256   :  { %v8474_v42 = vpack.c.bf16 %v326_v41, %v323_v40 }
 0x257   :  { %7792 = vtanh.f32 %v8351_v45 }
 0x258   :  { %7276 = vmatpush3.bf16.msra.mxu1 %v8474_v42 }
 0x259   :  { %7290 = vmatprep.subr.bf16.mxu1 %v8187_v13 }
 0x25b   :  { %6591 = vmatmul.mubr.f32.vlgmr.msra.gmra.mrb[4].mxu1 %v7995_v2 }
 0x25c   :  { %7292 = vmatpush1.bf16.msra.mxu1 %v8198_v18  ;;  %727 = vmatprep.mubr.f32.mxu1 %v7995_v2 }
 0x25d   :  { %7294 = vmatprep.subr.bf16.mxu1 %v8206_v22 }
 0x260   :  { %7296 = vmatpush1.bf16.msra.mxu1 %v8232_v32 }
 0x261   :  { %v7793_v47 = vpop.eup %7792  ;;  %7298 = vmatprep.subr.bf16.mxu1 %v8244_v36 }
 0x262   :  { %v506_v48 = vmul.f32 %v7793_v47, %v7791_v46 }
 0x264   :  { %508 = vrot.lane.b32.xlu0 %v506_v48, %s7996_s29  ;;  %7300 = vmatpush1.bf16.msra.mxu1 %v8259_v43 }
 0x265   :  { %7302 = vmatprep.subr.bf16.mxu1 %v8262_v44 }
 0x268   :  { %7304 = vmatpush1.bf16.msra.mxu1 %v8277_v49 }
 0x269   :  { %7306 = vmatprep.subr.bf16.mxu1 %v8280_v50 }
 0x26c   :  { %7308 = vmatpush1.bf16.msra.mxu1 %v8289_v53 }
 0x26d   :  { %7310 = vmatprep.subr.bf16.mxu1 %v8317_v0 }
 0x270   :  { %7312 = vmatpush1.bf16.msra.mxu1 %v8319_v1 }
 0x271   :  { %7331 = vmatprep.subr.bf16.mxu1 %v7997_v4 }
 0x2d6   :  { %v8355_v51 = vpop.permute.xlu0 %508 }
 0x2d7   :  { %v512_v52 = vsel %vm511_vm2, %v8355_v51, 0.0 }
 0x2d8   :  { %513 = vadd.xlane.f32.xlu1 %v512_v52 }
 0x365   :  { %v514_v54 = vpop.xlane.xlu1 %513 }
 0x366   :  { %v516_v55 = vmul.f32 0.015625, %v514_v54 }
 0x368   :  { %v8359_v56 = vsub.f32 %v506_v48, %v516_v55 }
 0x36a   :  { %v518_v57 = vmul.f32 %v8359_v56, %v8359_v56 }
 0x36c   :  { %520 = vrot.lane.b32.xlu1 %v518_v57, %s7996_s29 }
 0x370   :  { %535 = vrot.lane.b32.xlu1 %v6155_v58, %s7996_s29 }
 0x374   :  { %544 = vrot.lane.b32.xlu1 %v6156_v59, %s7996_s29 }
 0x3de   :  { %v521_v60 = vpop.permute.xlu1 %520 }
 0x3df   :  { %v523_v61 = vsel %vm511_vm2, %v521_v60, 0.0  ;;  %v479_v60 = vpop.f32.mrb[4].mxu1 }
 0x3e0   :  { %524 = vadd.xlane.f32.xlu0 %v523_v61  ;;  %v6592_v61 = vpop.f32.mrb[5].mxu1 }
 0x3e2   :  { %v8493_v52 = vpop.permute.xlu1 %535 }
 0x3e6   :  { %v8496_v57 = vpop.permute.xlu1 %544 }
 0x46d   :  { %v525_v46 = vpop.xlane.xlu0 %524 }
 0x46e   :  { %v526_v47 = vmul.f32 0.015625, %v525_v46 }
 0x470   :  { %v527_v48 = vadd.f32 1e-05, %v526_v47 }
 0x472   :  { %7794 = vrsqrt.f32 %v527_v48 }
 0x47c   :  { %v7795_v54 = vpop.eup %7794 }
 0x47d   :  { %v529_v55 = vmul.f32 %v7795_v54, %v8359_v56  ;;  %v8519_v56 = vld [vmem:[%s9778_s8] ss:$0 sm:$0xff] }
 0x47f   :  { %v538_v58 = vmul.f32 %v8493_v52, %v529_v55 }
 0x481   :  { %v547_v59 = vadd.f32 %v8496_v57, %v538_v58 }
 0x483   :  { %549 = vrot.lane.b32.xlu1 %v547_v59, %s7996_s29 }
 0x4f5   :  { %v550_v62 = vpop.permute.xlu1 %549 }
 0x4f6   :  { %6610 = vmatmul.mubr.msk.f32.vlgmr.msra.gmra.mrb[4].mxu0 %vm207_vm1, %v550_v62 }
 0x4f7   :  { %7315 = vmatpush3.bf16.msra.mxu0 %v8383_v5  ;;  %6636 = vmatprep.mubr.msk.f32.mxu0 %vm7998_vm3, %v7995_v2 }
 0x4f8   :  { %7316 = vmatprep.subr.bf16.mxu0 %v7997_v4 }
 0x4fb   :  { %7318 = vmatpush3.bf16.msra.mxu0 %v8400_v9 }
 0x4fc   :  { %7319 = vmatprep.subr.bf16.mxu0 %v7997_v4 }
 0x4ff   :  { %7321 = vmatpush3.bf16.msra.mxu0 %v8428_v24 }
 0x500   :  { %7322 = vmatprep.subr.bf16.mxu0 %v7997_v4 }
 0x503   :  { %7324 = vmatpush3.bf16.msra.mxu0 %v8448_v34 }
 0x504   :  { %7325 = vmatprep.subr.bf16.mxu0 %v7997_v4 }
 0x507   :  { %7327 = vmatpush3.bf16.msra.mxu0 %v8462_v39 }
 0x508   :  { %7328 = vmatprep.subr.bf16.mxu0 %v7997_v4 }
 0x50b   :  { %7330 = vmatpush3.bf16.msra.mxu0 %v8474_v42 }
 0x50c   :  { %7344 = vmatprep.subr.bf16.mxu0 %v8187_v13 }
 0x5c9   :  { %v619_v63 = vpop.f32.mrb[4].mxu0 }
 0x5ca   :  { %v623_v3 = vadd.f32 %v619_v63, %v479_v60  ;;  %v6611_v6 = vpop.f32.mrb[5].mxu0 }
 0x5cc   :  { %v630_v7 = vadd.f32 %v8519_v56, %v623_v3  ;;  %v826_v3 = vrot.slane %v8351_v45, 6 }
 0x5ce   :  { %7796 = vtanh.f32 %v630_v7  ;;  %v6159_v14 = vmul.f32 -1.442695, %v630_v7 }
 0x5d0   :  { %7798 = vpow2.f32 %v6159_v14 }
 0x5d8   :  { %v7797_v8 = vpop.eup %7796 }
 0x5d9   :  { %640 = vrot.lane.b32.xlu1 %v7797_v8, %s7996_s29 }
 0x5da   :  { %v7799_v15 = vpop.eup %7798 }
 0x5db   :  { %v634_v16 = vadd.f32 1.0, %v7799_v15 }
 0x5dd   :  { %7800 = vrcp.f32 %v634_v16 }
 0x5e7   :  { %v7801_v17 = vpop.eup %7800 }
 0x5e8   :  { %v638_v25 = vmul.f32 0.0, %v7801_v17 }
 0x64b   :  { %v641_v21 = vpop.permute.xlu1 %640 }
 0x64c   :  { %v643_v23 = vmul.f32 %v7801_v17, %v641_v21 }
 0x64e   :  { %645 = vrot.lane.b32.xlu1 %v643_v23, %s7999_s7 }
 0x6c0   :  { %v646_v27 = vpop.permute.xlu1 %645 }
 0x6c1   :  { %v8524_v31 = vadd.f32 %v646_v27, %v638_v25 }
 0x6c3   :  { %7802 = vtanh.f32 %v8524_v31 }
 0x6cd   :  { %v7803_v33 = vpop.eup %7802 }
 0x6ce   :  { %651 = vrot.lane.b32.xlu0 %v7803_v33, %s7996_s29 }
 0x740   :  { %v652_v35 = vpop.permute.xlu0 %651 }
 0x741   :  { %v8528_v37 = vmul.f32 %v7801_v17, %v652_v35 }
 0x743   :  { %656 = vrot.lane.b32.xlu1 %v8528_v37, %s8000_s2 }
 0x7b5   :  { %v657_v40 = vpop.permute.xlu1 %656 }
 0x7b6   :  { %v659_v41 = vsel %vm207_vm1, %v8355_v51, %v657_v40 }
 0x7b7   :  { %6160 = vmatmul.mubr.msk.f32.vlgmr.msra.gmra.mrb[6].mxu1 %vm338_vm4, %v659_v41  ;;  %6637 = vmatmul.mubr.msk.f32.vlgmr.msra.gmra.mrb[6].mxu0 %vm338_vm4, %v659_v41 }
 0x7b8   :  { %7333 = vmatpush3.bf16.msra.mxu1 %v8402_v12  ;;  %6655 = vmatprep.mubr.msk.f32.mxu1 %vm7998_vm3, %v7995_v2 }
 0x7b9   :  { %7334 = vmatprep.subr.bf16.mxu1 %v7997_v4  ;;  %7346 = vmatpush1.bf16.msra.mxu0 %v8198_v18 }
 0x7ba   :  { %7348 = vmatprep.subr.bf16.mxu0 %v8206_v22  ;;  %1037 = vmatprep.mubr.f32.mxu0 %v7995_v2 }
 0x7bc   :  { %7336 = vmatpush3.bf16.msra.mxu1 %v8418_v20 }
 0x7bd   :  { %7337 = vmatprep.subr.bf16.mxu1 %v7997_v4  ;;  %7350 = vmatpush1.bf16.msra.mxu0 %v8232_v32 }
 0x7be   :  { %7352 = vmatprep.subr.bf16.mxu0 %v8244_v36 }
 0x7c0   :  { %7339 = vmatpush3.bf16.msra.mxu1 %v8438_v30 }
 0x7c1   :  { %7340 = vmatprep.subr.bf16.mxu1 %v7997_v4  ;;  %7354 = vmatpush1.bf16.msra.mxu0 %v8259_v43 }
 0x7c2   :  { %7356 = vmatprep.subr.bf16.mxu0 %v8262_v44 }
 0x7c4   :  { %7342 = vmatpush3.bf16.msra.mxu1 %v8458_v38 }
 0x7c5   :  { %7367 = vmatprep.subr.bf16.mxu1 %v7997_v4  ;;  %7358 = vmatpush1.bf16.msra.mxu0 %v8277_v49 }
 0x7c6   :  { %7360 = vmatprep.subr.bf16.mxu0 %v8280_v50 }
 0x7c9   :  { %7362 = vmatpush1.bf16.msra.mxu0 %v8289_v53 }
 0x7ca   :  { %7364 = vmatprep.subr.bf16.mxu0 %v8317_v0 }
 0x7cd   :  { %7366 = vmatpush1.bf16.msra.mxu0 %v8319_v1 }
 0x7ce   :  { %7385 = vmatprep.subr.bf16.mxu0 %v7997_v4 }
 0x88a   :  { %v729_v51 = vpop.f32.mrb[6].mxu1  ;;  %v8559_v46 = vpop.f32.mrb[6].mxu0 }
 0x88b   :  { %v806_v47 = vrot.slane %v729_v51, 6  ;;  %v731_v48 = vpop.f32.mrb[7].mxu1  ;;  %v6638_v54 = vpop.f32.mrb[7].mxu0 }
 0x88c   :  { %v807_v59 = vrot.slane %v731_v48, 6 }
 0x88d   :  { %v810_v55 = vadd.f32 %v806_v47, %v8340_v19 }
 0x88e   :  { %v811_v60 = vadd.f32 %v807_v59, %v8347_v29 }
 0x88f   :  { %v6162_v58 = vmul.f32 -1.442695, %v810_v55 }
 0x890   :  { %v6163_v14 = vmul.f32 -1.442695, %v811_v60 }
 0x891   :  { %7804 = vpow2.f32 %v6162_v58 }
 0x892   :  { %7806 = vtanh.f32 %v811_v60 }
 0x89b   :  { %v7805_v61 = vpop.eup %7804 }
 0x89c   :  { %v815_v62 = vadd.f32 1.0, %v7805_v61  ;;  %v7807_v63 = vpop.eup %7806 }
 0x89e   :  { %7808 = vrcp.f32 %v815_v62 }
 0x89f   :  { %7810 = vpow2.f32 %v6163_v14 }
 0x8a8   :  { %v7809_v6 = vpop.eup %7808 }
 0x8a9   :  { %v829_v7 = vmul.f32 %v7809_v6, %v7807_v63  ;;  %v828_v8 = vmul.f32 %v7809_v6, %v826_v3  ;;  %v7811_v15 = vpop.eup %7810 }
 0x8aa   :  { %v822_v16 = vadd.f32 1.0, %v7811_v15 }
 0x8ab   :  { %831 = vrot.lane.b32.xlu1 %v829_v7, %s7996_s29 }
 0x8ac   :  { %7812 = vrcp.f32 %v822_v16 }
 0x8b6   :  { %v7813_v23 = vpop.eup %7812 }
 0x91d   :  { %v832_v17 = vpop.permute.xlu1 %831 }
 0x91e   :  { %v8565_v21 = vadd.f32 %v832_v17, %v828_v8 }
 0x920   :  { %7814 = vtanh.f32 %v8565_v21 }
 0x92a   :  { %v7815_v25 = vpop.eup %7814 }
 0x92b   :  { %v836_v27 = vmul.f32 %v7815_v25, %v7813_v23 }
 0x92d   :  { %838 = vrot.lane.b32.xlu1 %v836_v27, %s7996_s29 }
 0x99f   :  { %v8569_v45 = vpop.permute.xlu1 %838 }
 0x9a0   :  { %v842_v33 = vsel %vm841_vm5, %v8569_v45, 0.0 }
 0x9a1   :  { %843 = vadd.xlane.f32.xlu1 %v842_v33 }
 0xa2e   :  { %v844_v35 = vpop.xlane.xlu1 %843 }
 0xa2f   :  { %v845_v40 = vmul.f32 0.015625, %v844_v35 }
 0xa31   :  { %v846_v41 = vsub.f32 %v836_v27, %v845_v40 }
 0xa33   :  { %v847_v51 = vmul.f32 %v846_v41, %v846_v41 }
 0xa35   :  { %849 = vrot.lane.b32.xlu0 %v847_v51, %s7996_s29 }
 0xaa7   :  { %v850_v47 = vpop.permute.xlu0 %849 }
 0xaa8   :  { %v852_v48 = vsel %vm841_vm5, %v850_v47, 0.0 }
 0xaa9   :  { %853 = vadd.xlane.f32.xlu0 %v852_v48 }
 0xb36   :  { %v854_v54 = vpop.xlane.xlu0 %853 }
 0xb37   :  { %v855_v55 = vmul.f32 0.015625, %v854_v54 }
 0xb39   :  { %v856_v58 = vadd.f32 1e-05, %v855_v55 }
 0xb3b   :  { %7816 = vrsqrt.f32 %v856_v58 }
 0xb45   :  { %v7817_v59 = vpop.eup %7816 }
 0xb46   :  { %v858_v60 = vmul.f32 %v7817_v59, %v846_v41 }
 0xb48   :  { %v859_v61 = vmul.f32 %v858_v60, %v8493_v52 }
 0xb4a   :  { %v860_v62 = vadd.f32 %v859_v61, %v8496_v57 }
 0xb4c   :  { %v862_v63 = vrot.slane %v860_v62, 2 }
 0xb4e   :  { %863 = vrot.lane.b32.xlu1 %v862_v63, %s7996_s29 }
 0xbc0   :  { %v864_v3 = vpop.permute.xlu1 %863 }
 0xbc1   :  { %6656 = vmatmul.mubr.msk.f32.vlgmr.msra.gmra.mrb[8].mxu1 %vm207_vm1, %v864_v3 }
 0xbc2   :  { %7369 = vmatpush3.bf16.msra.mxu1 %v8383_v5  ;;  %6682 = vmatprep.mubr.msk.f32.mxu1 %vm7998_vm3, %v7995_v2 }
 0xbc3   :  { %7370 = vmatprep.subr.bf16.mxu1 %v7997_v4 }
 0xbc6   :  { %7372 = vmatpush3.bf16.msra.mxu1 %v8400_v9 }
 0xbc7   :  { %7373 = vmatprep.subr.bf16.mxu1 %v7997_v4 }
 0xbca   :  { %7375 = vmatpush3.bf16.msra.mxu1 %v8428_v24 }
 0xbcb   :  { %7376 = vmatprep.subr.bf16.mxu1 %v7997_v4 }
 0xbce   :  { %7378 = vmatpush3.bf16.msra.mxu1 %v8448_v34 }
 0xbcf   :  { %7379 = vmatprep.subr.bf16.mxu1 %v7997_v4 }
 0xbd2   :  { %7381 = vmatpush3.bf16.msra.mxu1 %v8462_v39 }
 0xbd3   :  { %7382 = vmatprep.subr.bf16.mxu1 %v7997_v4 }
 0xbd6   :  { %7384 = vmatpush3.bf16.msra.mxu1 %v8474_v42 }
 0xbd7   :  { %7398 = vmatprep.subr.bf16.mxu1 %v8187_v13 }
 0xc94   :  { %v933_v6 = vpop.f32.mrb[8].mxu1 }
 0xc95   :  { %v937_v7 = vadd.f32 %v933_v6, %v8559_v46  ;;  %v6657_v8 = vpop.f32.mrb[9].mxu1 }
 0xc97   :  { %v938_v14 = vadd.f32 %v8519_v56, %v937_v7 }
 0xc99   :  { %7818 = vtanh.f32 %v938_v14  ;;  %v6165_v16 = vmul.f32 -1.442695, %v938_v14 }
 0xc9b   :  { %7820 = vpow2.f32 %v6165_v16 }
 0xca3   :  { %v7819_v15 = vpop.eup %7818 }
 0xca4   :  { %948 = vrot.lane.b32.xlu0 %v7819_v15, %s7996_s29  ;;  %v1136_v15 = vrot.slane %v8565_v21, 6 }
 0xca5   :  { %v7821_v17 = vpop.eup %7820 }
 0xca6   :  { %v942_v23 = vadd.f32 1.0, %v7821_v17 }
 0xca8   :  { %7822 = vrcp.f32 %v942_v23 }
 0xcb2   :  { %v7823_v25 = vpop.eup %7822 }
 0xcb3   :  { %v946_v35 = vmul.f32 %v7823_v25, %v8524_v31 }
 0xd16   :  { %v949_v27 = vpop.permute.xlu0 %948 }
 0xd17   :  { %v951_v33 = vmul.f32 %v7823_v25, %v949_v27 }
 0xd19   :  { %953 = vrot.lane.b32.xlu1 %v951_v33, %s7999_s7 }
 0xd8b   :  { %v954_v46 = vpop.permute.xlu1 %953 }
 0xd8c   :  { %v8598_v40 = vadd.f32 %v954_v46, %v946_v35 }
 0xd8e   :  { %7824 = vtanh.f32 %v8598_v40 }
 0xd98   :  { %v7825_v41 = vpop.eup %7824 }
 0xd99   :  { %959 = vrot.lane.b32.xlu1 %v7825_v41, %s7996_s29 }
 0xe0b   :  { %v960_v51 = vpop.permute.xlu1 %959 }
 0xe0c   :  { %v8602_v47 = vmul.f32 %v7823_v25, %v960_v51 }
 0xe0e   :  { %v964_v48 = vrot.slane %v8602_v47, 6 }
 0xe10   :  { %965 = vrot.lane.b32.xlu1 %v964_v48, %s8000_s2 }
 0xe82   :  { %v966_v54 = vpop.permute.xlu1 %965 }
 0xe83   :  { %v968_v55 = vsel %vm207_vm1, %v8569_v45, %v966_v54 }
 0xe84   :  { %v970_v31 = vrot.slane %v968_v55, 2 }
 0xe86   :  { %6166 = vmatmul.mubr.msk.f32.vlgmr.msra.gmra.mrb[8].mxu0 %vm338_vm4, %v970_v31  ;;  %6683 = vmatmul.mubr.msk.f32.vlgmr.msra.gmra.mrb[10].mxu1 %vm338_vm4, %v970_v31 }
 0xe87   :  { %7387 = vmatpush3.bf16.msra.mxu0 %v8402_v12  ;;  %6701 = vmatprep.mubr.msk.f32.mxu0 %vm7998_vm3, %v7995_v2 }
 0xe88   :  { %7388 = vmatprep.subr.bf16.mxu0 %v7997_v4  ;;  %7400 = vmatpush1.bf16.msra.mxu1 %v8198_v18 }
 0xe89   :  { %7402 = vmatprep.subr.bf16.mxu1 %v8206_v22  ;;  %1347 = vmatprep.mubr.f32.mxu1 %v7995_v2 }
 0xe8b   :  { %7390 = vmatpush3.bf16.msra.mxu0 %v8418_v20 }
 0xe8c   :  { %7391 = vmatprep.subr.bf16.mxu0 %v7997_v4  ;;  %7404 = vmatpush1.bf16.msra.mxu1 %v8232_v32 }
 0xe8d   :  { %7406 = vmatprep.subr.bf16.mxu1 %v8244_v36 }
 0xe8f   :  { %7393 = vmatpush3.bf16.msra.mxu0 %v8438_v30 }
 0xe90   :  { %7394 = vmatprep.subr.bf16.mxu0 %v7997_v4  ;;  %7408 = vmatpush1.bf16.msra.mxu1 %v8259_v43 }
 0xe91   :  { %7410 = vmatprep.subr.bf16.mxu1 %v8262_v44 }
 0xe93   :  { %7396 = vmatpush3.bf16.msra.mxu0 %v8458_v38 }
 0xe94   :  { %7421 = vmatprep.subr.bf16.mxu0 %v7997_v4  ;;  %7412 = vmatpush1.bf16.msra.mxu1 %v8277_v49 }
 0xe95   :  { %7414 = vmatprep.subr.bf16.mxu1 %v8280_v50 }
 0xe98   :  { %7416 = vmatpush1.bf16.msra.mxu1 %v8289_v53 }
 0xe99   :  { %7418 = vmatprep.subr.bf16.mxu1 %v8317_v0 }
 0xe9c   :  { %7420 = vmatpush1.bf16.msra.mxu1 %v8319_v1 }
 0xe9d   :  { %7439 = vmatprep.subr.bf16.mxu1 %v7997_v4 }
 0xf59   :  { %v1039_v45 = vpop.f32.mrb[8].mxu0  ;;  %v8633_v58 = vpop.f32.mrb[10].mxu1 }
 0xf5a   :  { %v1116_v59 = vrot.slane %v1039_v45, 4  ;;  %v1041_v60 = vpop.f32.mrb[9].mxu0  ;;  %v6684_v61 = vpop.f32.mrb[11].mxu1 }
 0xf5b   :  { %v1117_v3 = vrot.slane %v1041_v60, 4 }
 0xf5c   :  { %v1120_v62 = vadd.f32 %v1116_v59, %v8340_v19 }
 0xf5d   :  { %v1121_v6 = vadd.f32 %v1117_v3, %v8347_v29 }
 0xf5e   :  { %v6168_v63 = vmul.f32 -1.442695, %v1120_v62 }
 0xf5f   :  { %v6169_v25 = vmul.f32 -1.442695, %v1121_v6 }
 0xf60   :  { %7826 = vpow2.f32 %v6168_v63 }
 0xf61   :  { %7828 = vtanh.f32 %v1121_v6 }
 0xf6a   :  { %v7827_v7 = vpop.eup %7826 }
 0xf6b   :  { %v1125_v8 = vadd.f32 1.0, %v7827_v7  ;;  %v7829_v14 = vpop.eup %7828 }
 0xf6d   :  { %7830 = vrcp.f32 %v1125_v8 }
 0xf6e   :  { %7832 = vpow2.f32 %v6169_v25 }
 0xf77   :  { %v7831_v16 = vpop.eup %7830 }
 0xf78   :  { %v1139_v17 = vmul.f32 %v7831_v16, %v7829_v14  ;;  %v1138_v23 = vmul.f32 %v7831_v16, %v1136_v15  ;;  %v7833_v27 = vpop.eup %7832 }
 0xf79   :  { %v1132_v33 = vadd.f32 1.0, %v7833_v27 }
 0xf7a   :  { %1141 = vrot.lane.b32.xlu0 %v1139_v17, %s7996_s29 }
 0xf7b   :  { %7834 = vrcp.f32 %v1132_v33 }
 0xf85   :  { %v7835_v41 = vpop.eup %7834 }
 0xfec   :  { %v1142_v35 = vpop.permute.xlu0 %1141 }
 0xfed   :  { %v8639_v46 = vadd.f32 %v1142_v35, %v1138_v23 }
 0xfef   :  { %7836 = vtanh.f32 %v8639_v46 }
 0xff9   :  { %v7837_v51 = vpop.eup %7836 }
 0xffa   :  { %v1146_v48 = vmul.f32 %v7837_v51, %v7835_v41 }
 0xffc   :  { %1148 = vrot.lane.b32.xlu1 %v1146_v48, %s7996_s29 }
0x106e   :  { %v8643_v21 = vpop.permute.xlu1 %1148 }
0x106f   :  { %v1152_v54 = vsel %vm1151_vm6, %v8643_v21, 0.0 }
0x1070   :  { %1153 = vadd.xlane.f32.xlu0 %v1152_v54 }
0x10fd   :  { %v1154_v55 = vpop.xlane.xlu0 %1153 }
0x10fe   :  { %v1155_v31 = vmul.f32 0.015625, %v1154_v55 }
0x1100   :  { %v1156_v45 = vsub.f32 %v1146_v48, %v1155_v31 }
0x1102   :  { %v1157_v59 = vmul.f32 %v1156_v45, %v1156_v45 }
0x1104   :  { %1159 = vrot.lane.b32.xlu1 %v1157_v59, %s7996_s29 }
0x1176   :  { %v1160_v60 = vpop.permute.xlu1 %1159 }
0x1177   :  { %v1162_v61 = vsel %vm1151_vm6, %v1160_v60, 0.0  ;;  %v2810_v60 = vrot.slane %v8602_v47, 7 }
0x1178   :  { %1163 = vadd.xlane.f32.xlu1 %v1162_v61 }
0x1205   :  { %v1164_v62 = vpop.xlane.xlu1 %1163 }
0x1206   :  { %v1165_v63 = vmul.f32 0.015625, %v1164_v62 }
0x1208   :  { %v1166_v3 = vadd.f32 1e-05, %v1165_v63  ;;  %v2839_v63 = vrot.slane %v8528_v37, 1 }
0x120a   :  { %7838 = vrsqrt.f32 %v1166_v3 }
0x1214   :  { %v7839_v6 = vpop.eup %7838 }
0x1215   :  { %v1168_v7 = vmul.f32 %v7839_v6, %v1156_v45 }
0x1217   :  { %v1169_v8 = vmul.f32 %v1168_v7, %v8493_v52 }
0x1219   :  { %v1170_v14 = vadd.f32 %v1169_v8, %v8496_v57  ;;  %v2853_v8 = vsel %vm2825_vm7, %v2839_v63, %v8602_v47 }
0x121b   :  { %v1172_v15 = vrot.slane %v1170_v14, 4 }
0x121d   :  { %1173 = vrot.lane.b32.xlu0 %v1172_v15, %s7996_s29 }
0x128f   :  { %v1174_v16 = vpop.permute.xlu0 %1173 }
0x1290   :  { %6702 = vmatmul.mubr.msk.f32.vlgmr.msra.gmra.mrb[10].mxu0 %vm207_vm1, %v1174_v16 }
0x1291   :  { %7423 = vmatpush3.bf16.msra.mxu0 %v8383_v5  ;;  %6728 = vmatprep.mubr.msk.f32.mxu0 %vm7998_vm3, %v7995_v2 }
0x1292   :  { %7424 = vmatprep.subr.bf16.mxu0 %v7997_v4 }
0x1295   :  { %7426 = vmatpush3.bf16.msra.mxu0 %v8400_v9 }
0x1296   :  { %7427 = vmatprep.subr.bf16.mxu0 %v7997_v4 }
0x1299   :  { %7429 = vmatpush3.bf16.msra.mxu0 %v8428_v24 }
0x129a   :  { %7430 = vmatprep.subr.bf16.mxu0 %v7997_v4 }
0x129d   :  { %7432 = vmatpush3.bf16.msra.mxu0 %v8448_v34 }
0x129e   :  { %7433 = vmatprep.subr.bf16.mxu0 %v7997_v4 }
0x12a1   :  { %7435 = vmatpush3.bf16.msra.mxu0 %v8462_v39 }
0x12a2   :  { %7436 = vmatprep.subr.bf16.mxu0 %v7997_v4 }
0x12a5   :  { %7438 = vmatpush3.bf16.msra.mxu0 %v8474_v42 }
0x12a6   :  { %7452 = vmatprep.subr.bf16.mxu0 %v8187_v13 }
0x1363   :  { %v1243_v17 = vpop.f32.mrb[10].mxu0 }
0x1364   :  { %v1247_v23 = vadd.f32 %v1243_v17, %v8633_v58  ;;  %v6703_v25 = vpop.f32.mrb[11].mxu0 }
0x1366   :  { %v1248_v27 = vadd.f32 %v8519_v56, %v1247_v23 }
0x1368   :  { %7840 = vtanh.f32 %v1248_v27  ;;  %v6171_v35 = vmul.f32 -1.442695, %v1248_v27 }
0x136a   :  { %7842 = vpow2.f32 %v6171_v35 }
0x1372   :  { %v7841_v33 = vpop.eup %7840 }
0x1373   :  { %1258 = vrot.lane.b32.xlu1 %v7841_v33, %s7996_s29 }
0x1374   :  { %v7843_v41 = vpop.eup %7842 }
0x1375   :  { %v1252_v51 = vadd.f32 1.0, %v7843_v41 }
0x1377   :  { %7844 = vrcp.f32 %v1252_v51 }
0x1381   :  { %v7845_v48 = vpop.eup %7844 }
0x1382   :  { %v1256_v31 = vmul.f32 %v7845_v48, %v8598_v40  ;;  %v2826_v40 = vsel %vm2825_vm7, %v8528_v37, %v2810_v60 }
0x13e5   :  { %v1259_v54 = vpop.permute.xlu1 %1258 }
0x13e6   :  { %v1261_v55 = vmul.f32 %v7845_v48, %v1259_v54 }
0x13e8   :  { %1263 = vrot.lane.b32.xlu0 %v1261_v55, %s7999_s7 }
0x145a   :  { %v1264_v58 = vpop.permute.xlu0 %1263 }
0x145b   :  { %v8672_v45 = vadd.f32 %v1264_v58, %v1256_v31  ;;  %v1446_v31 = vrot.slane %v8639_v46, 6 }
0x145d   :  { %7846 = vtanh.f32 %v8672_v45 }
0x1467   :  { %v7847_v59 = vpop.eup %7846 }
0x1468   :  { %1269 = vrot.lane.b32.xlu0 %v7847_v59, %s7996_s29 }
0x14da   :  { %v1270_v61 = vpop.permute.xlu0 %1269 }
0x14db   :  { %v1272_v62 = vmul.f32 %v7845_v48, %v1270_v61 }
0x14dd   :  { %v2812_v3 = vrot.slane %v1272_v62, 6  ;;  %v2841_v6 = vrot.slane %v1272_v62, 7  ;;  %v1274_v7 = vrot.slane %v1272_v62, 4 }
0x14df   :  { %v8683_v14 = vsel %vm2827_vm8, %v2826_v40, %v2812_v3  ;;  %v8686_v15 = vsel %vm2827_vm8, %v2853_v8, %v2841_v6  ;;  %1275 = vrot.lane.b32.xlu1 %v1274_v7, %s8000_s2 }
0x1551   :  { %v1276_v16 = vpop.permute.xlu1 %1275 }
0x1552   :  { %v1278_v17 = vsel %vm207_vm1, %v8643_v21, %v1276_v16 }
0x1553   :  { %v1280_v23 = vrot.slane %v1278_v17, 4 }
0x1555   :  { %6172 = vmatmul.mubr.msk.f32.vlgmr.msra.gmra.mrb[12].mxu1 %vm338_vm4, %v1280_v23  ;;  %6729 = vmatmul.mubr.msk.f32.vlgmr.msra.gmra.mrb[12].mxu0 %vm338_vm4, %v1280_v23 }
0x1556   :  { %7441 = vmatpush3.bf16.msra.mxu1 %v8402_v12  ;;  %6747 = vmatprep.mubr.msk.f32.mxu1 %vm7998_vm3, %v7995_v2 }
0x1557   :  { %7442 = vmatprep.subr.bf16.mxu1 %v7997_v4  ;;  %7454 = vmatpush1.bf16.msra.mxu0 %v8198_v18 }
0x1558   :  { %7456 = vmatprep.subr.bf16.mxu0 %v8206_v22  ;;  %1657 = vmatprep.mubr.f32.mxu0 %v7995_v2 }
0x155a   :  { %7444 = vmatpush3.bf16.msra.mxu1 %v8418_v20 }
0x155b   :  { %7445 = vmatprep.subr.bf16.mxu1 %v7997_v4  ;;  %7458 = vmatpush1.bf16.msra.mxu0 %v8232_v32 }
0x155c   :  { %7460 = vmatprep.subr.bf16.mxu0 %v8244_v36 }
0x155e   :  { %7447 = vmatpush3.bf16.msra.mxu1 %v8438_v30 }
0x155f   :  { %7448 = vmatprep.subr.bf16.mxu1 %v7997_v4  ;;  %7462 = vmatpush1.bf16.msra.mxu0 %v8259_v43 }
0x1560   :  { %7464 = vmatprep.subr.bf16.mxu0 %v8262_v44 }
0x1562   :  { %7450 = vmatpush3.bf16.msra.mxu1 %v8458_v38 }
0x1563   :  { %7475 = vmatprep.subr.bf16.mxu1 %v7997_v4  ;;  %7466 = vmatpush1.bf16.msra.mxu0 %v8277_v49 }
0x1564   :  { %7468 = vmatprep.subr.bf16.mxu0 %v8280_v50 }
0x1567   :  { %7470 = vmatpush1.bf16.msra.mxu0 %v8289_v53 }
0x1568   :  { %7472 = vmatprep.subr.bf16.mxu0 %v8317_v0 }
0x156b   :  { %7474 = vmatpush1.bf16.msra.mxu0 %v8319_v1 }
0x156c   :  { %7493 = vmatprep.subr.bf16.mxu0 %v7997_v4 }
0x1628   :  { %v1349_v37 = vpop.f32.mrb[12].mxu1  ;;  %v8716_v47 = vpop.f32.mrb[12].mxu0 }
0x1629   :  { %v1426_v21 = vrot.slane %v1349_v37, 2  ;;  %v1351_v25 = vpop.f32.mrb[13].mxu1  ;;  %v6730_v27 = vpop.f32.mrb[13].mxu0 }
0x162a   :  { %v1427_v41 = vrot.slane %v1351_v25, 2 }
0x162b   :  { %v1430_v33 = vadd.f32 %v1426_v21, %v8340_v19 }
0x162c   :  { %v1431_v51 = vadd.f32 %v1427_v41, %v8347_v29 }
0x162d   :  { %v6174_v35 = vmul.f32 -1.442695, %v1430_v33 }
0x162e   :  { %v6175_v61 = vmul.f32 -1.442695, %v1431_v51 }
0x162f   :  { %7848 = vpow2.f32 %v6174_v35 }
0x1630   :  { %7850 = vtanh.f32 %v1431_v51 }
0x1639   :  { %v7849_v48 = vpop.eup %7848 }
0x163a   :  { %v1435_v54 = vadd.f32 1.0, %v7849_v48  ;;  %v7851_v55 = vpop.eup %7850 }
0x163c   :  { %7852 = vrcp.f32 %v1435_v54 }
0x163d   :  { %7854 = vpow2.f32 %v6175_v61 }
0x1646   :  { %v7853_v58 = vpop.eup %7852 }
0x1647   :  { %v1449_v59 = vmul.f32 %v7853_v58, %v7851_v55  ;;  %v1448_v60 = vmul.f32 %v7853_v58, %v1446_v31  ;;  %v7855_v19 = vpop.eup %7854 }
0x1648   :  { %v1442_v62 = vadd.f32 1.0, %v7855_v19 }
0x1649   :  { %1451 = vrot.lane.b32.xlu0 %v1449_v59, %s7996_s29 }
0x164a   :  { %7856 = vrcp.f32 %v1442_v62 }
0x1654   :  { %v7857_v29 = vpop.eup %7856 }
0x16bb   :  { %v1452_v63 = vpop.permute.xlu0 %1451 }
0x16bc   :  { %v8722_v3 = vadd.f32 %v1452_v63, %v1448_v60 }
0x16be   :  { %7858 = vtanh.f32 %v8722_v3 }
0x16c8   :  { %v7859_v6 = vpop.eup %7858 }
0x16c9   :  { %v1456_v7 = vmul.f32 %v7859_v6, %v7857_v29 }
0x16cb   :  { %1458 = vrot.lane.b32.xlu1 %v1456_v7, %s7996_s29 }
0x173d   :  { %v8726_v46 = vpop.permute.xlu1 %1458 }
0x173e   :  { %v1462_v40 = vsel %vm1461_vm9, %v8726_v46, 0.0 }
0x173f   :  { %1463 = vadd.xlane.f32.xlu0 %v1462_v40 }
0x17cc   :  { %v1464_v8 = vpop.xlane.xlu0 %1463 }
0x17cd   :  { %v1465_v16 = vmul.f32 0.015625, %v1464_v8 }
0x17cf   :  { %v1466_v17 = vsub.f32 %v1456_v7, %v1465_v16 }
0x17d1   :  { %v1467_v23 = vmul.f32 %v1466_v17, %v1466_v17 }
0x17d3   :  { %1469 = vrot.lane.b32.xlu1 %v1467_v23, %s7996_s29 }
0x1845   :  { %v1470_v37 = vpop.permute.xlu1 %1469 }
0x1846   :  { %v1472_v21 = vsel %vm1461_vm9, %v1470_v37, 0.0 }
0x1847   :  { %1473 = vadd.xlane.f32.xlu1 %v1472_v21 }
0x18d4   :  { %v1474_v25 = vpop.xlane.xlu1 %1473 }
0x18d5   :  { %v1475_v27 = vmul.f32 0.015625, %v1474_v25 }
0x18d7   :  { %v1476_v33 = vadd.f32 1e-05, %v1475_v27 }
0x18d9   :  { %7860 = vrsqrt.f32 %v1476_v33 }
0x18e3   :  { %v7861_v35 = vpop.eup %7860 }
0x18e4   :  { %v1478_v41 = vmul.f32 %v7861_v35, %v1466_v17 }
0x18e6   :  { %v1479_v51 = vmul.f32 %v1478_v41, %v8493_v52 }
0x18e8   :  { %v1480_v48 = vadd.f32 %v1479_v51, %v8496_v57 }
0x18ea   :  { %v1482_v54 = vrot.slane %v1480_v48, 6 }
0x18ec   :  { %1483 = vrot.lane.b32.xlu0 %v1482_v54, %s7996_s29 }
0x195e   :  { %v1484_v55 = vpop.permute.xlu0 %1483 }
0x195f   :  { %6748 = vmatmul.mubr.msk.f32.vlgmr.msra.gmra.mrb[14].mxu1 %vm207_vm1, %v1484_v55 }
0x1960   :  { %7477 = vmatpush3.bf16.msra.mxu1 %v8383_v5  ;;  %6774 = vmatprep.mubr.msk.f32.mxu1 %vm7998_vm3, %v7995_v2 }
0x1961   :  { %7478 = vmatprep.subr.bf16.mxu1 %v7997_v4 }
0x1964   :  { %7480 = vmatpush3.bf16.msra.mxu1 %v8400_v9 }
0x1965   :  { %7481 = vmatprep.subr.bf16.mxu1 %v7997_v4 }
0x1968   :  { %7483 = vmatpush3.bf16.msra.mxu1 %v8428_v24 }
0x1969   :  { %7484 = vmatprep.subr.bf16.mxu1 %v7997_v4 }
0x196c   :  { %7486 = vmatpush3.bf16.msra.mxu1 %v8448_v34 }
0x196d   :  { %7487 = vmatprep.subr.bf16.mxu1 %v7997_v4 }
0x1970   :  { %7489 = vmatpush3.bf16.msra.mxu1 %v8462_v39 }
0x1971   :  { %7490 = vmatprep.subr.bf16.mxu1 %v7997_v4 }
0x1974   :  { %7492 = vmatpush3.bf16.msra.mxu1 %v8474_v42 }
0x1975   :  { %7506 = vmatprep.subr.bf16.mxu1 %v8187_v13 }
0x1a32   :  { %v1553_v31 = vpop.f32.mrb[14].mxu1 }
0x1a33   :  { %v1557_v58 = vadd.f32 %v1553_v31, %v8716_v47  ;;  %v6749_v59 = vpop.f32.mrb[15].mxu1 }
0x1a35   :  { %v1558_v60 = vadd.f32 %v8519_v56, %v1557_v58 }
0x1a37   :  { %7862 = vtanh.f32 %v1558_v60  ;;  %v6177_v19 = vmul.f32 -1.442695, %v1558_v60  ;;  %v1750_v60 = vrot.slane %v8722_v3, 6 }
0x1a39   :  { %7864 = vpow2.f32 %v6177_v19 }
0x1a41   :  { %v7863_v61 = vpop.eup %7862 }
0x1a42   :  { %1568 = vrot.lane.b32.xlu1 %v7863_v61, %s7996_s29 }
0x1a43   :  { %v7865_v62 = vpop.eup %7864 }
0x1a44   :  { %v1562_v63 = vadd.f32 1.0, %v7865_v62 }
0x1a46   :  { %7866 = vrcp.f32 %v1562_v63 }
0x1a50   :  { %v7867_v29 = vpop.eup %7866 }
0x1a51   :  { %v1566_v40 = vmul.f32 %v7867_v29, %v8672_v45 }
0x1ab4   :  { %v1569_v6 = vpop.permute.xlu1 %1568 }
0x1ab5   :  { %v1571_v7 = vmul.f32 %v7867_v29, %v1569_v6 }
0x1ab7   :  { %1573 = vrot.lane.b32.xlu0 %v1571_v7, %s7999_s7 }
0x1b29   :  { %v1574_v47 = vpop.permute.xlu0 %1573 }
0x1b2a   :  { %v8755_v8 = vadd.f32 %v1574_v47, %v1566_v40 }
0x1b2c   :  { %7868 = vtanh.f32 %v8755_v8 }
0x1b36   :  { %v7869_v16 = vpop.eup %7868 }
0x1b37   :  { %1579 = vrot.lane.b32.xlu0 %v7869_v16, %s7996_s29 }
0x1ba9   :  { %v1580_v17 = vpop.permute.xlu0 %1579 }
0x1baa   :  { %v1582_v23 = vmul.f32 %v7867_v29, %v1580_v17 }
0x1bac   :  { %v2814_v37 = vrot.slane %v1582_v23, 5  ;;  %v2843_v21 = vrot.slane %v1582_v23, 6  ;;  %v1584_v25 = vrot.slane %v1582_v23, 2 }
0x1bae   :  { %1585 = vrot.lane.b32.xlu1 %v1584_v25, %s8000_s2  ;;  %v8762_v27 = vsel %vm2829_vm10, %v8686_v15, %v2843_v21  ;;  %v8766_v45 = vsel %vm2829_vm10, %v8683_v14, %v2814_v37 }
0x1c20   :  { %v1586_v33 = vpop.permute.xlu1 %1585 }
0x1c21   :  { %v1588_v35 = vsel %vm207_vm1, %v8726_v46, %v1586_v33 }
0x1c22   :  { %v1590_v41 = vrot.slane %v1588_v35, 6 }
0x1c24   :  { %6178 = vmatmul.mubr.msk.f32.vlgmr.msra.gmra.mrb[14].mxu0 %vm338_vm4, %v1590_v41  ;;  %6775 = vmatmul.mubr.msk.f32.vlgmr.msra.gmra.mrb[16].mxu1 %vm338_vm4, %v1590_v41 }
0x1c25   :  { %7495 = vmatpush3.bf16.msra.mxu0 %v8402_v12  ;;  %6793 = vmatprep.mubr.msk.f32.mxu0 %vm7998_vm3, %v7995_v2 }
0x1c26   :  { %7496 = vmatprep.subr.bf16.mxu0 %v7997_v4  ;;  %7508 = vmatpush1.bf16.msra.mxu1 %v8198_v18 }
0x1c27   :  { %7510 = vmatprep.subr.bf16.mxu1 %v8206_v22  ;;  %1957 = vmatprep.mubr.f32.mxu1 %v7995_v2 }
0x1c29   :  { %7498 = vmatpush3.bf16.msra.mxu0 %v8418_v20 }
0x1c2a   :  { %7499 = vmatprep.subr.bf16.mxu0 %v7997_v4  ;;  %7512 = vmatpush1.bf16.msra.mxu1 %v8232_v32 }
0x1c2b   :  { %7514 = vmatprep.subr.bf16.mxu1 %v8244_v36 }
0x1c2d   :  { %7501 = vmatpush3.bf16.msra.mxu0 %v8438_v30 }
0x1c2e   :  { %7502 = vmatprep.subr.bf16.mxu0 %v7997_v4  ;;  %7516 = vmatpush1.bf16.msra.mxu1 %v8259_v43 }
0x1c2f   :  { %7518 = vmatprep.subr.bf16.mxu1 %v8262_v44 }
0x1c31   :  { %7504 = vmatpush3.bf16.msra.mxu0 %v8458_v38 }
0x1c32   :  { %7529 = vmatprep.subr.bf16.mxu0 %v7997_v4  ;;  %7520 = vmatpush1.bf16.msra.mxu1 %v8277_v49 }
0x1c33   :  { %7522 = vmatprep.subr.bf16.mxu1 %v8280_v50 }
0x1c36   :  { %7524 = vmatpush1.bf16.msra.mxu1 %v8289_v53 }
0x1c37   :  { %7526 = vmatprep.subr.bf16.mxu1 %v8317_v0 }
0x1c3a   :  { %7528 = vmatpush1.bf16.msra.mxu1 %v8319_v1 }
0x1c3b   :  { %7547 = vmatprep.subr.bf16.mxu1 %v7997_v4 }
0x1cf7   :  { %v1659_v14 = vpop.f32.mrb[14].mxu0  ;;  %v8795_v15 = vpop.f32.mrb[16].mxu1 }
0x1cf8   :  { %v1734_v46 = vadd.f32 %v1659_v14, %v8343_v26  ;;  %v1661_v51 = vpop.f32.mrb[15].mxu0  ;;  %v6776_v48 = vpop.f32.mrb[17].mxu1 }
0x1cf9   :  { %v1735_v55 = vadd.f32 %v1661_v51, %v8345_v28 }
0x1cfa   :  { %v6180_v54 = vmul.f32 -1.442695, %v1734_v46 }
0x1cfb   :  { %v6181_v63 = vmul.f32 -1.442695, %v1735_v55 }
0x1cfc   :  { %7870 = vpow2.f32 %v6180_v54 }
0x1cfd   :  { %7872 = vtanh.f32 %v1735_v55 }
0x1d06   :  { %v7871_v31 = vpop.eup %7870 }
0x1d07   :  { %v1739_v58 = vadd.f32 1.0, %v7871_v31  ;;  %v7873_v59 = vpop.eup %7872 }
0x1d09   :  { %7874 = vrcp.f32 %v1739_v58 }
0x1d0a   :  { %7876 = vpow2.f32 %v6181_v63 }
0x1d13   :  { %v7875_v61 = vpop.eup %7874 }
0x1d14   :  { %v1753_v19 = vmul.f32 %v7875_v61, %v7873_v59  ;;  %v1752_v62 = vmul.f32 %v7875_v61, %v1750_v60  ;;  %v7877_v29 = vpop.eup %7876 }
0x1d15   :  { %v1746_v6 = vadd.f32 1.0, %v7877_v29 }
0x1d16   :  { %1755 = vrot.lane.b32.xlu0 %v1753_v19, %s7996_s29 }
0x1d17   :  { %7878 = vrcp.f32 %v1746_v6 }
0x1d21   :  { %v7879_v47 = vpop.eup %7878 }
0x1d88   :  { %v1756_v7 = vpop.permute.xlu0 %1755 }
0x1d89   :  { %v8801_v40 = vadd.f32 %v1756_v7, %v1752_v62 }
0x1d8b   :  { %7880 = vtanh.f32 %v8801_v40 }
0x1d95   :  { %v7881_v16 = vpop.eup %7880 }
0x1d96   :  { %v1760_v17 = vmul.f32 %v7881_v16, %v7879_v47 }
0x1d98   :  { %1762 = vrot.lane.b32.xlu1 %v1760_v17, %s7996_s29 }
0x1e0a   :  { %v8805_v3 = vpop.permute.xlu1 %1762 }
0x1e0b   :  { %v1765_v23 = vsel %vm511_vm2, %v8805_v3, 0.0 }
0x1e0c   :  { %1766 = vadd.xlane.f32.xlu0 %v1765_v23 }
0x1e99   :  { %v1767_v37 = vpop.xlane.xlu0 %1766 }
0x1e9a   :  { %v1768_v21 = vmul.f32 0.015625, %v1767_v37 }
0x1e9c   :  { %v1769_v25 = vsub.f32 %v1760_v17, %v1768_v21 }
0x1e9e   :  { %v1770_v33 = vmul.f32 %v1769_v25, %v1769_v25 }
0x1ea0   :  { %1772 = vrot.lane.b32.xlu1 %v1770_v33, %s7996_s29 }
0x1f12   :  { %v1773_v35 = vpop.permute.xlu1 %1772 }
0x1f13   :  { %v1775_v41 = vsel %vm511_vm2, %v1773_v35, 0.0  ;;  %vm2981_vm2 = vcmask 64512  }
0x1f14   :  { %1776 = vadd.xlane.f32.xlu1 %v1775_v41 }
0x1fa1   :  { %v1777_v14 = vpop.xlane.xlu1 %1776 }
0x1fa2   :  { %v1778_v46 = vmul.f32 0.015625, %v1777_v14 }
0x1fa4   :  { %v1779_v51 = vadd.f32 1e-05, %v1778_v46 }
0x1fa6   :  { %7882 = vrsqrt.f32 %v1779_v51 }
0x1fb0   :  { %v7883_v48 = vpop.eup %7882 }
0x1fb1   :  { %v1781_v54 = vmul.f32 %v7883_v48, %v1769_v25 }
0x1fb3   :  { %v1782_v55 = vmul.f32 %v1781_v54, %v8493_v52 }
0x1fb5   :  { %v1783_v31 = vadd.f32 %v1782_v55, %v8496_v57 }
0x1fb7   :  { %1785 = vrot.lane.b32.xlu0 %v1783_v31, %s7996_s29 }
0x2029   :  { %v1786_v58 = vpop.permute.xlu0 %1785 }
0x202a   :  { %6794 = vmatmul.mubr.msk.f32.vlgmr.msra.gmra.mrb[16].mxu0 %vm207_vm1, %v1786_v58 }
0x202b   :  { %7531 = vmatpush3.bf16.msra.mxu0 %v8383_v5  ;;  %6820 = vmatprep.mubr.msk.f32.mxu0 %vm7998_vm3, %v7995_v2 }
0x202c   :  { %7532 = vmatprep.subr.bf16.mxu0 %v7997_v4 }
0x202f   :  { %7534 = vmatpush3.bf16.msra.mxu0 %v8400_v9 }
0x2030   :  { %7535 = vmatprep.subr.bf16.mxu0 %v7997_v4 }
0x2033   :  { %7537 = vmatpush3.bf16.msra.mxu0 %v8428_v24 }
0x2034   :  { %7538 = vmatprep.subr.bf16.mxu0 %v7997_v4 }
0x2037   :  { %7540 = vmatpush3.bf16.msra.mxu0 %v8448_v34 }
0x2038   :  { %7541 = vmatprep.subr.bf16.mxu0 %v7997_v4 }
0x203b   :  { %7543 = vmatpush3.bf16.msra.mxu0 %v8462_v39 }
0x203c   :  { %7544 = vmatprep.subr.bf16.mxu0 %v7997_v4 }
0x203f   :  { %7546 = vmatpush3.bf16.msra.mxu0 %v8474_v42 }
0x2040   :  { %7560 = vmatprep.subr.bf16.mxu0 %v8187_v13 }
0x20fd   :  { %v1855_v59 = vpop.f32.mrb[16].mxu0 }
0x20fe   :  { %v1859_v60 = vadd.f32 %v1855_v59, %v8795_v15  ;;  %v6795_v61 = vpop.f32.mrb[17].mxu0 }
0x20ff   :  { %v2056_v61 = vrot.slane %v8801_v40, 6 }
0x2100   :  { %v1860_v19 = vadd.f32 %v8519_v56, %v1859_v60 }
0x2102   :  { %7884 = vtanh.f32 %v1860_v19  ;;  %v6183_v63 = vmul.f32 -1.442695, %v1860_v19 }
0x2104   :  { %7886 = vpow2.f32 %v6183_v63 }
0x210c   :  { %v7885_v62 = vpop.eup %7884 }
0x210d   :  { %1870 = vrot.lane.b32.xlu1 %v7885_v62, %s7996_s29 }
0x210e   :  { %v7887_v29 = vpop.eup %7886 }
0x210f   :  { %v1864_v6 = vadd.f32 1.0, %v7887_v29 }
0x2111   :  { %7888 = vrcp.f32 %v1864_v6 }
0x211b   :  { %v7889_v7 = vpop.eup %7888 }
0x211c   :  { %v1868_v17 = vmul.f32 %v7889_v7, %v8755_v8 }
0x217f   :  { %v1871_v47 = vpop.permute.xlu1 %1870 }
0x2180   :  { %v1873_v16 = vmul.f32 %v7889_v7, %v1871_v47 }
0x2182   :  { %1875 = vrot.lane.b32.xlu0 %v1873_v16, %s7999_s7 }
0x21f4   :  { %v1876_v15 = vpop.permute.xlu0 %1875 }
0x21f5   :  { %v8834_v23 = vadd.f32 %v1876_v15, %v1868_v17 }
0x21f7   :  { %7890 = vtanh.f32 %v8834_v23 }
0x2201   :  { %v7891_v56 = vpop.eup %7890 }
0x2202   :  { %1881 = vrot.lane.b32.xlu0 %v7891_v56, %s7996_s29 }
0x2274   :  { %v1882_v37 = vpop.permute.xlu0 %1881 }
0x2275   :  { %v1884_v21 = vmul.f32 %v7889_v7, %v1882_v37 }
0x2277   :  { %v2816_v25 = vrot.slane %v1884_v21, 4  ;;  %v2845_v33 = vrot.slane %v1884_v21, 5  ;;  %1886 = vrot.lane.b32.xlu1 %v1884_v21, %s8000_s2 }
0x2279   :  { %v8841_v35 = vsel %vm2831_vm11, %v8762_v27, %v2845_v33  ;;  %v8845_v8 = vsel %vm2831_vm11, %v8766_v45, %v2816_v25 }
0x22e9   :  { %v1887_v41 = vpop.permute.xlu1 %1886 }
0x22ea   :  { %v1889_v14 = vsel %vm207_vm1, %v8805_v3, %v1887_v41 }
0x22eb   :  { %6184 = vmatmul.mubr.msk.f32.vlgmr.msra.gmra.mrb[18].mxu1 %vm338_vm4, %v1889_v14  ;;  %6821 = vmatmul.mubr.msk.f32.vlgmr.msra.gmra.mrb[18].mxu0 %vm338_vm4, %v1889_v14 }
0x22ec   :  { %7549 = vmatpush3.bf16.msra.mxu1 %v8402_v12  ;;  %6839 = vmatprep.mubr.msk.f32.mxu1 %vm7998_vm3, %v7995_v2 }
0x22ed   :  { %7550 = vmatprep.subr.bf16.mxu1 %v7997_v4  ;;  %7562 = vmatpush1.bf16.msra.mxu0 %v8198_v18 }
0x22ee   :  { %7564 = vmatprep.subr.bf16.mxu0 %v8206_v22  ;;  %2266 = vmatprep.mubr.f32.mxu0 %v7995_v2 }
0x22f0   :  { %7552 = vmatpush3.bf16.msra.mxu1 %v8418_v20 }
0x22f1   :  { %7553 = vmatprep.subr.bf16.mxu1 %v7997_v4  ;;  %7566 = vmatpush1.bf16.msra.mxu0 %v8232_v32 }
0x22f2   :  { %7568 = vmatprep.subr.bf16.mxu0 %v8244_v36 }
0x22f4   :  { %7555 = vmatpush3.bf16.msra.mxu1 %v8438_v30 }
0x22f5   :  { %7556 = vmatprep.subr.bf16.mxu1 %v7997_v4  ;;  %7570 = vmatpush1.bf16.msra.mxu0 %v8259_v43 }
0x22f6   :  { %7572 = vmatprep.subr.bf16.mxu0 %v8262_v44 }
0x22f8   :  { %7558 = vmatpush3.bf16.msra.mxu1 %v8458_v38 }
0x22f9   :  { %7583 = vmatprep.subr.bf16.mxu1 %v7997_v4  ;;  %7574 = vmatpush1.bf16.msra.mxu0 %v8277_v49 }
0x22fa   :  { %7576 = vmatprep.subr.bf16.mxu0 %v8280_v50 }
0x22fd   :  { %7578 = vmatpush1.bf16.msra.mxu0 %v8289_v53 }
0x22fe   :  { %7580 = vmatprep.subr.bf16.mxu0 %v8317_v0 }
0x2301   :  { %7582 = vmatpush1.bf16.msra.mxu0 %v8319_v1 }
0x2302   :  { %7601 = vmatprep.subr.bf16.mxu0 %v7997_v4 }
0x23be   :  { %v1959_v27 = vpop.f32.mrb[18].mxu1  ;;  %v8874_v45 = vpop.f32.mrb[18].mxu0 }
0x23bf   :  { %v2036_v3 = vrot.slane %v1959_v27, 6  ;;  %v1961_v46 = vpop.f32.mrb[19].mxu1  ;;  %v6822_v51 = vpop.f32.mrb[19].mxu0 }
0x23c0   :  { %v2037_v55 = vrot.slane %v1961_v46, 6 }
0x23c1   :  { %v2040_v48 = vadd.f32 %v2036_v3, %v8343_v26 }
0x23c2   :  { %v2041_v31 = vadd.f32 %v2037_v55, %v8345_v28 }
0x23c3   :  { %v6186_v54 = vmul.f32 -1.442695, %v2040_v48 }
0x23c4   :  { %v6187_v29 = vmul.f32 -1.442695, %v2041_v31 }
0x23c5   :  { %7892 = vpow2.f32 %v6186_v54 }
0x23c6   :  { %7894 = vtanh.f32 %v2041_v31 }
0x23cf   :  { %v7893_v58 = vpop.eup %7892 }
0x23d0   :  { %v2045_v59 = vadd.f32 1.0, %v7893_v58  ;;  %v7895_v60 = vpop.eup %7894 }
0x23d2   :  { %7896 = vrcp.f32 %v2045_v59 }
0x23d3   :  { %7898 = vpow2.f32 %v6187_v29 }
0x23dc   :  { %v7897_v19 = vpop.eup %7896 }
0x23dd   :  { %v2059_v62 = vmul.f32 %v7897_v19, %v7895_v60  ;;  %v2058_v63 = vmul.f32 %v7897_v19, %v2056_v61  ;;  %v7899_v6 = vpop.eup %7898 }
0x23de   :  { %v2052_v7 = vadd.f32 1.0, %v7899_v6 }
0x23df   :  { %2061 = vrot.lane.b32.xlu0 %v2059_v62, %s7996_s29  ;;  %v8912_v62 = vld [vmem:[%s9778_s8] ss:$0 sm:$0xff]  ;;  %s8008_s8 = smov 72  }
0x23e0   :  { %7900 = vrcp.f32 %v2052_v7 }
0x23ea   :  { %v7901_v17 = vpop.eup %7900 }
0x2451   :  { %v2062_v47 = vpop.permute.xlu0 %2061 }
0x2452   :  { %v8880_v16 = vadd.f32 %v2062_v47, %v2058_v63 }
0x2454   :  { %7902 = vtanh.f32 %v8880_v16 }
0x245e   :  { %v7903_v15 = vpop.eup %7902 }
0x245f   :  { %v2066_v56 = vmul.f32 %v7903_v15, %v7901_v17 }
0x2461   :  { %2068 = vrot.lane.b32.xlu1 %v2066_v56, %s7996_s29 }
0x24d3   :  { %v8884_v40 = vpop.permute.xlu1 %2068 }
0x24d4   :  { %v2071_v37 = vsel %vm841_vm5, %v8884_v40, 0.0 }
0x24d5   :  { %2072 = vadd.xlane.f32.xlu0 %v2071_v37 }
0x2562   :  { %v2073_v21 = vpop.xlane.xlu0 %2072 }
0x2563   :  { %v2074_v25 = vmul.f32 0.015625, %v2073_v21 }
0x2565   :  { %v2075_v33 = vsub.f32 %v2066_v56, %v2074_v25 }
0x2567   :  { %v2076_v41 = vmul.f32 %v2075_v33, %v2075_v33 }
0x2569   :  { %2078 = vrot.lane.b32.xlu1 %v2076_v41, %s7996_s29 }
0x25db   :  { %v2079_v14 = vpop.permute.xlu1 %2078 }
0x25dc   :  { %v2081_v27 = vsel %vm841_vm5, %v2079_v14, 0.0  ;;  %vm4031_vm5 = vcmask 130048  }
0x25dd   :  { %2082 = vadd.xlane.f32.xlu1 %v2081_v27 }
0x266a   :  { %v2083_v3 = vpop.xlane.xlu1 %2082 }
0x266b   :  { %v2084_v46 = vmul.f32 0.015625, %v2083_v3 }
0x266d   :  { %v2085_v51 = vadd.f32 1e-05, %v2084_v46 }
0x266f   :  { %7904 = vrsqrt.f32 %v2085_v51 }
0x2679   :  { %v7905_v48 = vpop.eup %7904 }
0x267a   :  { %v2087_v54 = vmul.f32 %v7905_v48, %v2075_v33 }
0x267c   :  { %v2088_v55 = vmul.f32 %v2087_v54, %v8493_v52 }
0x267e   :  { %v2089_v31 = vadd.f32 %v2088_v55, %v8496_v57 }
0x2680   :  { %v2091_v58 = vrot.slane %v2089_v31, 2 }
0x2682   :  { %2092 = vrot.lane.b32.xlu0 %v2091_v58, %s7996_s29 }
0x26f4   :  { %v2093_v59 = vpop.permute.xlu0 %2092 }
0x26f5   :  { %6840 = vmatmul.mubr.msk.f32.vlgmr.msra.gmra.mrb[20].mxu1 %vm207_vm1, %v2093_v59 }
0x26f6   :  { %7585 = vmatpush3.bf16.msra.mxu1 %v8383_v5  ;;  %6866 = vmatprep.mubr.msk.f32.mxu1 %vm7998_vm3, %v7995_v2 }
0x26f7   :  { %7586 = vmatprep.subr.bf16.mxu1 %v7997_v4 }
0x26fa   :  { %7588 = vmatpush3.bf16.msra.mxu1 %v8400_v9 }
0x26fb   :  { %7589 = vmatprep.subr.bf16.mxu1 %v7997_v4 }
0x26fe   :  { %7591 = vmatpush3.bf16.msra.mxu1 %v8428_v24 }
0x26ff   :  { %7592 = vmatprep.subr.bf16.mxu1 %v7997_v4 }
0x2702   :  { %7594 = vmatpush3.bf16.msra.mxu1 %v8448_v34 }
0x2703   :  { %7595 = vmatprep.subr.bf16.mxu1 %v7997_v4 }
0x2706   :  { %7597 = vmatpush3.bf16.msra.mxu1 %v8462_v39 }
0x2707   :  { %7598 = vmatprep.subr.bf16.mxu1 %v7997_v4 }
0x270a   :  { %7600 = vmatpush3.bf16.msra.mxu1 %v8474_v42 }
0x270b   :  { %7614 = vmatprep.subr.bf16.mxu1 %v8187_v13 }
0x27c8   :  { %v2162_v60 = vpop.f32.mrb[20].mxu1 }
0x27c9   :  { %v2166_v61 = vadd.f32 %v2162_v60, %v8874_v45  ;;  %v6841_v19 = vpop.f32.mrb[21].mxu1 }
0x27cb   :  { %v2167_v63 = vadd.f32 %v8912_v62, %v2166_v61 }
0x27cd   :  { %7906 = vtanh.f32 %v2167_v63  ;;  %v6189_v6 = vmul.f32 -1.442695, %v2167_v63 }
0x27cf   :  { %7908 = vpow2.f32 %v6189_v6 }
0x27d7   :  { %v7907_v29 = vpop.eup %7906 }
0x27d8   :  { %2177 = vrot.lane.b32.xlu1 %v7907_v29, %s7996_s29 }
0x27d9   :  { %v7909_v7 = vpop.eup %7908 }
0x27da   :  { %v2171_v47 = vadd.f32 1.0, %v7909_v7 }
0x27dc   :  { %7910 = vrcp.f32 %v2171_v47 }
0x27e6   :  { %v7911_v13 = vpop.eup %7910 }
0x27e7   :  { %v2175_v15 = vmul.f32 %v7911_v13, %v8834_v23 }
0x284a   :  { %v2178_v17 = vpop.permute.xlu1 %2177 }
0x284b   :  { %v2180_v45 = vmul.f32 %v7911_v13, %v2178_v17 }
0x284d   :  { %2182 = vrot.lane.b32.xlu0 %v2180_v45, %s7999_s7 }
0x28bf   :  { %v2183_v56 = vpop.permute.xlu0 %2182 }
0x28c0   :  { %v8918_v37 = vadd.f32 %v2183_v56, %v2175_v15 }
0x28c2   :  { %7912 = vtanh.f32 %v8918_v37 }
0x28cc   :  { %v7913_v21 = vpop.eup %7912 }
0x28cd   :  { %2188 = vrot.lane.b32.xlu0 %v7913_v21, %s7996_s29 }
0x293f   :  { %v2189_v25 = vpop.permute.xlu0 %2188 }
0x2940   :  { %v2191_v33 = vmul.f32 %v7911_v13, %v2189_v25 }
0x2942   :  { %v2818_v41 = vrot.slane %v2191_v33, 3  ;;  %v2847_v14 = vrot.slane %v2191_v33, 4  ;;  %v2193_v27 = vrot.slane %v2191_v33, 6 }
0x2944   :  { %2194 = vrot.lane.b32.xlu1 %v2193_v27, %s8000_s2  ;;  %v8925_v3 = vsel %vm2833_vm12, %v8841_v35, %v2847_v14  ;;  %v8929_v23 = vsel %vm2833_vm12, %v8845_v8, %v2818_v41 }
0x29b6   :  { %v2195_v46 = vpop.permute.xlu1 %2194 }
0x29b7   :  { %v2197_v51 = vsel %vm207_vm1, %v8884_v40, %v2195_v46 }
0x29b8   :  { %v2199_v48 = vrot.slane %v2197_v51, 2 }
0x29ba   :  { %6190 = vmatmul.mubr.msk.f32.vlgmr.msra.gmra.mrb[20].mxu0 %vm338_vm4, %v2199_v48  ;;  %6867 = vmatmul.mubr.msk.f32.vlgmr.msra.gmra.mrb[22].mxu1 %vm338_vm4, %v2199_v48 }
0x29bb   :  { %7603 = vmatpush3.bf16.msra.mxu0 %v8402_v12  ;;  %6885 = vmatprep.mubr.msk.f32.mxu0 %vm7998_vm3, %v7995_v2 }
0x29bc   :  { %7604 = vmatprep.subr.bf16.mxu0 %v7997_v4  ;;  %7616 = vmatpush1.bf16.msra.mxu1 %v8198_v18 }
0x29bd   :  { %7618 = vmatprep.subr.bf16.mxu1 %v8206_v22  ;;  %2575 = vmatprep.mubr.f32.mxu1 %v7995_v2 }
0x29bf   :  { %7606 = vmatpush3.bf16.msra.mxu0 %v8418_v20 }
0x29c0   :  { %7607 = vmatprep.subr.bf16.mxu0 %v7997_v4  ;;  %7620 = vmatpush1.bf16.msra.mxu1 %v8232_v32 }
0x29c1   :  { %7622 = vmatprep.subr.bf16.mxu1 %v8244_v36 }
0x29c3   :  { %7609 = vmatpush3.bf16.msra.mxu0 %v8438_v30 }
0x29c4   :  { %7610 = vmatprep.subr.bf16.mxu0 %v7997_v4  ;;  %7624 = vmatpush1.bf16.msra.mxu1 %v8259_v43 }
0x29c5   :  { %7626 = vmatprep.subr.bf16.mxu1 %v8262_v44 }
0x29c7   :  { %7612 = vmatpush3.bf16.msra.mxu0 %v8458_v38 }
0x29c8   :  { %7637 = vmatprep.subr.bf16.mxu0 %v7997_v4  ;;  %7628 = vmatpush1.bf16.msra.mxu1 %v8277_v49 }
0x29c9   :  { %7630 = vmatprep.subr.bf16.mxu1 %v8280_v50 }
0x29cc   :  { %7632 = vmatpush1.bf16.msra.mxu1 %v8289_v53 }
0x29cd   :  { %7634 = vmatprep.subr.bf16.mxu1 %v8317_v0 }
0x29d0   :  { %7636 = vmatpush1.bf16.msra.mxu1 %v8319_v1  ;;  %v2365_v1 = vrot.slane %v8880_v16, 6 }
0x29d1   :  { %7655 = vmatprep.subr.bf16.mxu1 %v7997_v4 }
0x2a8d   :  { %v2268_v18 = vpop.f32.mrb[20].mxu0  ;;  %v8958_v22 = vpop.f32.mrb[22].mxu1 }
0x2a8e   :  { %v2345_v32 = vrot.slane %v2268_v18, 4  ;;  %v2270_v36 = vpop.f32.mrb[21].mxu0  ;;  %v6868_v43 = vpop.f32.mrb[23].mxu1 }
0x2a8f   :  { %v2346_v49 = vrot.slane %v2270_v36, 4 }
0x2a90   :  { %v2349_v44 = vadd.f32 %v2345_v32, %v8343_v26 }
0x2a91   :  { %v2350_v50 = vadd.f32 %v2346_v49, %v8345_v28 }
0x2a92   :  { %v6192_v35 = vmul.f32 -1.442695, %v2349_v44 }
0x2a93   :  { %v6193_v31 = vmul.f32 -1.442695, %v2350_v50 }
0x2a94   :  { %7914 = vpow2.f32 %v6192_v35 }
0x2a95   :  { %7916 = vtanh.f32 %v2350_v50 }
0x2a9e   :  { %v7915_v53 = vpop.eup %7914 }
0x2a9f   :  { %v2354_v8 = vadd.f32 1.0, %v7915_v53  ;;  %v7917_v0 = vpop.eup %7916 }
0x2aa1   :  { %7918 = vrcp.f32 %v2354_v8 }
0x2aa2   :  { %7920 = vpow2.f32 %v6193_v31 }
0x2aab   :  { %v7919_v40 = vpop.eup %7918 }
0x2aac   :  { %v2368_v54 = vmul.f32 %v7919_v40, %v7917_v0  ;;  %v2367_v55 = vmul.f32 %v7919_v40, %v2365_v1  ;;  %v7921_v58 = vpop.eup %7920 }
0x2aad   :  { %v2361_v59 = vadd.f32 1.0, %v7921_v58 }
0x2aae   :  { %2370 = vrot.lane.b32.xlu0 %v2368_v54, %s7996_s29 }
0x2aaf   :  { %7922 = vrcp.f32 %v2361_v59 }
0x2ab9   :  { %v7923_v19 = vpop.eup %7922 }
0x2b20   :  { %v2371_v60 = vpop.permute.xlu0 %2370 }
0x2b21   :  { %v8964_v61 = vadd.f32 %v2371_v60, %v2367_v55 }
0x2b23   :  { %7924 = vtanh.f32 %v8964_v61 }
0x2b2d   :  { %v7925_v63 = vpop.eup %7924 }
0x2b2e   :  { %v2375_v29 = vmul.f32 %v7925_v63, %v7923_v19 }
0x2b30   :  { %2377 = vrot.lane.b32.xlu1 %v2375_v29, %s7996_s29 }
0x2ba2   :  { %v8968_v16 = vpop.permute.xlu1 %2377 }
0x2ba3   :  { %v2380_v6 = vsel %vm1151_vm6, %v8968_v16, 0.0 }
0x2ba4   :  { %2381 = vadd.xlane.f32.xlu0 %v2380_v6  ;;  %v2674_v6 = vrot.slane %v8964_v61, 6 }
0x2c31   :  { %v2382_v7 = vpop.xlane.xlu0 %2381 }
0x2c32   :  { %v2383_v47 = vmul.f32 0.015625, %v2382_v7 }
0x2c34   :  { %v2384_v13 = vsub.f32 %v2375_v29, %v2383_v47 }
0x2c36   :  { %v2385_v17 = vmul.f32 %v2384_v13, %v2384_v13 }
0x2c38   :  { %2387 = vrot.lane.b32.xlu1 %v2385_v17, %s7996_s29 }
0x2caa   :  { %v2388_v45 = vpop.permute.xlu1 %2387 }
0x2cab   :  { %v2390_v15 = vsel %vm1151_vm6, %v2388_v45, 0.0  ;;  %vm4035_vm6 = vcmask 326656  }
0x2cac   :  { %2391 = vadd.xlane.f32.xlu1 %v2390_v15 }
0x2d39   :  { %v2392_v56 = vpop.xlane.xlu1 %2391 }
0x2d3a   :  { %v2393_v21 = vmul.f32 0.015625, %v2392_v56 }
0x2d3c   :  { %v2394_v25 = vadd.f32 1e-05, %v2393_v21 }
0x2d3e   :  { %7926 = vrsqrt.f32 %v2394_v25 }
0x2d48   :  { %v7927_v33 = vpop.eup %7926 }
0x2d49   :  { %v2396_v41 = vmul.f32 %v7927_v33, %v2384_v13 }
0x2d4b   :  { %v2397_v14 = vmul.f32 %v2396_v41, %v8493_v52 }
0x2d4d   :  { %v2398_v27 = vadd.f32 %v2397_v14, %v8496_v57 }
0x2d4f   :  { %v2400_v46 = vrot.slane %v2398_v27, 4 }
0x2d51   :  { %2401 = vrot.lane.b32.xlu0 %v2400_v46, %s7996_s29 }
0x2dc3   :  { %v2402_v51 = vpop.permute.xlu0 %2401 }
0x2dc4   :  { %6886 = vmatmul.mubr.msk.f32.vlgmr.msra.gmra.mrb[22].mxu0 %vm207_vm1, %v2402_v51 }
0x2dc5   :  { %7639 = vmatpush3.bf16.msra.mxu0 %v8383_v5  ;;  %6912 = vmatprep.mubr.msk.f32.mxu0 %vm7998_vm3, %v7995_v2 }
0x2dc6   :  { %7640 = vmatprep.subr.bf16.mxu0 %v7997_v4 }
0x2dc9   :  { %7642 = vmatpush3.bf16.msra.mxu0 %v8400_v9 }
0x2dca   :  { %7643 = vmatprep.subr.bf16.mxu0 %v7997_v4 }
0x2dcd   :  { %7645 = vmatpush3.bf16.msra.mxu0 %v8428_v24 }
0x2dce   :  { %7646 = vmatprep.subr.bf16.mxu0 %v7997_v4 }
0x2dd1   :  { %7648 = vmatpush3.bf16.msra.mxu0 %v8448_v34 }
0x2dd2   :  { %7649 = vmatprep.subr.bf16.mxu0 %v7997_v4 }
0x2dd5   :  { %7651 = vmatpush3.bf16.msra.mxu0 %v8462_v39 }
0x2dd6   :  { %7652 = vmatprep.subr.bf16.mxu0 %v7997_v4 }
0x2dd9   :  { %7654 = vmatpush3.bf16.msra.mxu0 %v8474_v42 }
0x2dda   :  { %6955 = vmatprep.subr.mxu0 %v7995_v2 }
0x2e97   :  { %v2471_v5 = vpop.f32.mrb[22].mxu0 }
0x2e98   :  { %v2475_v9 = vadd.f32 %v2471_v5, %v8958_v22  ;;  %v6887_v48 = vpop.f32.mrb[23].mxu0 }
0x2e9a   :  { %v2476_v24 = vadd.f32 %v8912_v62, %v2475_v9 }
0x2e9c   :  { %7928 = vtanh.f32 %v2476_v24  ;;  %v6195_v34 = vmul.f32 -1.442695, %v2476_v24 }
0x2e9e   :  { %7930 = vpow2.f32 %v6195_v34 }
0x2ea6   :  { %v7929_v18 = vpop.eup %7928 }
0x2ea7   :  { %2486 = vrot.lane.b32.xlu1 %v7929_v18, %s7996_s29 }
0x2ea8   :  { %v7931_v32 = vpop.eup %7930 }
0x2ea9   :  { %v2480_v39 = vadd.f32 1.0, %v7931_v32 }
0x2eab   :  { %7932 = vrcp.f32 %v2480_v39 }
0x2eb5   :  { %v7933_v36 = vpop.eup %7932 }
0x2eb6   :  { %v2484_v44 = vmul.f32 %v7933_v36, %v8918_v37 }
0x2f19   :  { %v2487_v43 = vpop.permute.xlu1 %2486 }
0x2f1a   :  { %v2489_v42 = vmul.f32 %v7933_v36, %v2487_v43 }
0x2f1c   :  { %2491 = vrot.lane.b32.xlu0 %v2489_v42, %s7999_s7 }
0x2f8e   :  { %v2492_v22 = vpop.permute.xlu0 %2491 }
0x2f8f   :  { %v8997_v35 = vadd.f32 %v2492_v22, %v2484_v44 }
0x2f91   :  { %7934 = vtanh.f32 %v8997_v35 }
0x2f9b   :  { %v7935_v49 = vpop.eup %7934 }
0x2f9c   :  { %2497 = vrot.lane.b32.xlu0 %v7935_v49, %s7996_s29 }
0x300e   :  { %v2498_v50 = vpop.permute.xlu0 %2497 }
0x300f   :  { %v2500_v53 = vmul.f32 %v7933_v36, %v2498_v50 }
0x3011   :  { %v2820_v8 = vrot.slane %v2500_v53, 2  ;;  %v2849_v0 = vrot.slane %v2500_v53, 3  ;;  %v2502_v1 = vrot.slane %v2500_v53, 4 }
0x3013   :  { %2503 = vrot.lane.b32.xlu1 %v2502_v1, %s8000_s2  ;;  %v9004_v40 = vsel %vm2835_vm13, %v8925_v3, %v2849_v0  ;;  %v9008_v37 = vsel %vm2835_vm13, %v8929_v23, %v2820_v8 }
0x3085   :  { %v2504_v54 = vpop.permute.xlu1 %2503 }
0x3086   :  { %v2506_v55 = vsel %vm207_vm1, %v8968_v16, %v2504_v54 }
0x3087   :  { %v2508_v31 = vrot.slane %v2506_v55, 4 }
0x3089   :  { %6196 = vmatmul.mubr.msk.f32.vlgmr.msra.gmra.mrb[24].mxu1 %vm338_vm4, %v2508_v31  ;;  %6913 = vmatmul.mubr.msk.f32.vlgmr.msra.gmra.mrb[24].mxu0 %vm338_vm4, %v2508_v31  ;;  %v2861_v31 = vld [vmem:[%s9779_s27 + $0x8] sm:$0xff] }
0x308a   :  { %7657 = vmatpush3.bf16.msra.mxu1 %v8402_v12  ;;  %6931 = vmatprep.mubr.msk.f32.mxu1 %vm7998_vm3, %v7995_v2 }
0x308b   :  { %7658 = vmatprep.subr.bf16.mxu1 %v7997_v4  ;;  %6957 = vmatprep.mubr.msk.f32.mxu0 %vm7998_vm3, %v7995_v2 }
0x308e   :  { %7660 = vmatpush3.bf16.msra.mxu1 %v8418_v20 }
0x308f   :  { %7661 = vmatprep.subr.bf16.mxu1 %v7997_v4 }
0x3092   :  { %7663 = vmatpush3.bf16.msra.mxu1 %v8438_v30 }
0x3093   :  { %7664 = vmatprep.subr.bf16.mxu1 %v7997_v4 }
0x3096   :  { %7666 = vmatpush3.bf16.msra.mxu1 %v8458_v38 }
0x315c   :  { %v2577_v3 = vpop.f32.mrb[24].mxu1  ;;  %v2648_v12 = vpop.f32.mrb[24].mxu0 }
0x315d   :  { %v2654_v23 = vrot.slane %v2577_v3, 2  ;;  %v2579_v58 = vpop.f32.mrb[25].mxu1  ;;  %v6914_v59 = vpop.f32.mrb[25].mxu0  ;;  %v2862_v3 = vld [vmem:[%s9779_s27 + $0x10] sm:$0xff] }
0x315e   :  { %v2655_v63 = vrot.slane %v2579_v58, 2 }
0x315f   :  { %v2658_v60 = vadd.f32 %v2654_v23, %v8343_v26 }
0x3160   :  { %v2659_v20 = vadd.f32 %v2655_v63, %v8345_v28 }
0x3161   :  { %v6198_v19 = vmul.f32 -1.442695, %v2658_v60 }
0x3162   :  { %v6199_v13 = vmul.f32 -1.442695, %v2659_v20 }
0x3163   :  { %7936 = vpow2.f32 %v6198_v19 }
0x3164   :  { %7938 = vtanh.f32 %v2659_v20 }
0x316d   :  { %v7937_v29 = vpop.eup %7936 }
0x316e   :  { %v2663_v16 = vadd.f32 1.0, %v7937_v29  ;;  %v7939_v30 = vpop.eup %7938 }
0x3170   :  { %7940 = vrcp.f32 %v2663_v16 }
0x3171   :  { %7942 = vpow2.f32 %v6199_v13  ;;  %v2960_v13 = vand.u32 127, %v197_v10 }
0x3173   :  { %vm9088_vm4 = vcmp.le.s32.totalorder %v2960_v13, %v8333_v11 }
0x317a   :  { %v7941_v38 = vpop.eup %7940 }
0x317b   :  { %v2677_v7 = vmul.f32 %v7941_v38, %v7939_v30  ;;  %v2676_v47 = vmul.f32 %v7941_v38, %v2674_v6  ;;  %v7943_v26 = vpop.eup %7942 }
0x317c   :  { %v2670_v17 = vadd.f32 1.0, %v7943_v26 }
0x317d   :  { %2679 = vrot.lane.b32.xlu0 %v2677_v7, %s7996_s29 }
0x317e   :  { %7944 = vrcp.f32 %v2670_v17 }
0x3188   :  { %v7945_v28 = vpop.eup %7944 }
0x31ef   :  { %v2680_v45 = vpop.permute.xlu0 %2679 }
0x31f0   :  { %v2682_v15 = vadd.f32 %v2680_v45, %v2676_v47 }
0x31f2   :  { %7946 = vtanh.f32 %v2682_v15 }
0x31fc   :  { %v7947_v56 = vpop.eup %7946 }
0x31fd   :  { %v2684_v21 = vmul.f32 %v7947_v56, %v7945_v28 }
0x31ff   :  { %2686 = vrot.lane.b32.xlu1 %v2684_v21, %s7996_s29 }
0x3271   :  { %v2687_v25 = vpop.permute.xlu1 %2686 }
0x3272   :  { %v2689_v61 = vsel %vm1461_vm9, %v2687_v25, 0.0 }
0x3273   :  { %2690 = vadd.xlane.f32.xlu0 %v2689_v61 }
0x3300   :  { %v2691_v33 = vpop.xlane.xlu0 %2690 }
0x3301   :  { %v2692_v41 = vmul.f32 0.015625, %v2691_v33 }
0x3303   :  { %v2693_v14 = vsub.f32 %v2684_v21, %v2692_v41 }
0x3305   :  { %v2694_v27 = vmul.f32 %v2693_v14, %v2693_v14 }
0x3307   :  { %2696 = vrot.lane.b32.xlu1 %v2694_v27, %s7996_s29 }
0x3379   :  { %v2697_v46 = vpop.permute.xlu1 %2696 }
0x337a   :  { %v2699_v51 = vsel %vm1461_vm9, %v2697_v46, 0.0  ;;  %vm4037_vm9 = vcmask 392192  }
0x337b   :  { %2700 = vadd.xlane.f32.xlu1 %v2699_v51 }
0x3408   :  { %v2701_v5 = vpop.xlane.xlu1 %2700 }
0x3409   :  { %v2702_v9 = vmul.f32 0.015625, %v2701_v5  ;;  %v9114_v5 = vld [vmem:[%s9736_s12] sm:$0xff] }
0x340a   :  { %6956 = vmatpush3.msra.mxu0 %v9114_v5 }
0x340b   :  { %v2703_v48 = vadd.f32 1e-05, %v2702_v9  ;;  %6965 = vmatprep.subr.mxu0 %v7995_v2 }
0x340d   :  { %7948 = vrsqrt.f32 %v2703_v48 }
0x3417   :  { %v7949_v24 = vpop.eup %7948 }
0x3418   :  { %v2705_v18 = vmul.f32 %v7949_v24, %v2693_v14 }
0x341a   :  { %v2706_v34 = vmul.f32 %v2705_v18, %v8493_v52 }
0x341c   :  { %v2707_v32 = vadd.f32 %v2706_v34, %v8496_v57 }
0x341e   :  { %v2709_v39 = vrot.slane %v2707_v32, 6 }
0x3420   :  { %2710 = vrot.lane.b32.xlu0 %v2709_v39, %s7996_s29 }
0x3492   :  { %v2711_v36 = vpop.permute.xlu0 %2710 }
0x3493   :  { %6932 = vmatmul.mubr.msk.f32.vlgmr.msra.gmra.mrb[26].mxu1 %vm207_vm1, %v2711_v36 }
0x3566   :  { %v2780_v43 = vpop.f32.mrb[26].mxu1 }
0x3567   :  { %v2784_v42 = vadd.f32 %v2780_v43, %v2648_v12  ;;  %v6933_v44 = vpop.f32.mrb[27].mxu1 }
0x3569   :  { %v2785_v22 = vadd.f32 %v8912_v62, %v2784_v42  ;;  %v2860_v62 = vld [vmem:[%s9779_s27] sm:$0xff] }
0x356a   :  { %v7667_v12 = vpack.c.bf16 %v2861_v31, %v2860_v62 }
0x356b   :  { %7950 = vtanh.f32 %v2785_v22  ;;  %v6201_v50 = vmul.f32 -1.442695, %v2785_v22 }
0x356c   :  { %7668 = vmatprep.subr.bf16.mxu1 %v7667_v12 }
0x356d   :  { %7952 = vpow2.f32 %v6201_v50  ;;  %7670 = vmatpush3.bf16.msra.mxu1 %v7667_v12 }
0x3575   :  { %v7951_v49 = vpop.eup %7950 }
0x3576   :  { %2795 = vrot.lane.b32.xlu1 %v7951_v49, %s7996_s29 }
0x3577   :  { %v7953_v52 = vpop.eup %7952 }
0x3578   :  { %v2789_v53 = vadd.f32 1.0, %v7953_v52 }
0x357a   :  { %7954 = vrcp.f32 %v2789_v53 }
0x3584   :  { %v7955_v57 = vpop.eup %7954 }
0x3585   :  { %v2793_v1 = vmul.f32 %v7955_v57, %v8997_v35  ;;  %v2863_v35 = vld [vmem:[%s9779_s27 + $0x18] sm:$0xff]  ;;  %s8003_s27 = smov 80  }
0x3586   :  { %v7671_v23 = vpack.c.bf16 %v2863_v35, %v2862_v3 }
0x3588   :  { %7672 = vmatprep.subr.bf16.mxu1 %v7671_v23 }
0x3589   :  { %7674 = vmatpush3.bf16.msra.mxu1 %v7671_v23 }
0x358a   :  { %6945 = vmatprep.subr.mxu1 %v7995_v2 }
0x35e8   :  { %v2796_v8 = vpop.permute.xlu1 %2795 }
0x35e9   :  { %v2798_v0 = vmul.f32 %v7955_v57, %v2796_v8 }
0x35eb   :  { %2800 = vrot.lane.b32.xlu0 %v2798_v0, %s7999_s7 }
0x365d   :  { %v2801_v54 = vpop.permute.xlu0 %2800 }
0x365e   :  { %v2803_v55 = vadd.f32 %v2801_v54, %v2793_v1  ;;  %v9145_v54 = vld [vmem:[%s9736_s12 + $0x8] sm:$0xff] }
0x3660   :  { %7956 = vtanh.f32 %v2803_v55 }
0x366a   :  { %v7957_v58 = vpop.eup %7956 }
0x366b   :  { %2806 = vrot.lane.b32.xlu0 %v7957_v58, %s7996_s29 }
0x36dd   :  { %v2807_v59 = vpop.permute.xlu0 %2806 }
0x36de   :  { %v2809_v60 = vmul.f32 %v7955_v57, %v2807_v59 }
0x36e0   :  { %v2823_v19 = vrot.slane %v2809_v60, 1  ;;  %v2851_v63 = vrot.slane %v2809_v60, 2 }
0x36e2   :  { %v9057_v20 = vsel %vm2837_vm14, %v9004_v40, %v2851_v63  ;;  %v9061_v29 = vsel %vm2837_vm14, %v9008_v37, %v2823_v19  ;;  %v6202_v40 = vld [vmem:[%s9735_s11] ss:$0 sm:$0xff]  ;;  %s8001_s11 = smov 120  }
0x36e3   :  { %2875 = vrot.lane.b32.xlu0 %v9057_v20, %s7999_s7  ;;  %2873 = vrot.lane.b32.xlu1 %v9061_v29, %s7999_s7 }
0x3755   :  { %v2876_v16 = vpop.permute.xlu0 %2875  ;;  %v2874_v30 = vpop.permute.xlu1 %2873 }
0x3756   :  { %6942 = vmatprep.mubr.msk.f32.mxu1 %vm2877_vm15, %v2874_v30 }
0x3757   :  { %6943 = vmatmul.mubr.msk.f32.vlgmr.msra.gmra.mrb[28].mxu1 %vm2877_vm15, %v2876_v16 }
0x3758   :  { %6947 = vmatprep.mubr.msk.f32.mxu1 %vm7998_vm3, %v7995_v2 }
0x382a   :  { %v6944_v37 = vpop.f32.mrb[28].mxu1 }
0x382b   :  { %v9074_v6 = vadd.f32 %v6944_v37, %v6202_v40  ;;  %v2948_v38 = vpop.f32.mrb[29].mxu1 }
0x382c   :  { %v9076_v7 = vadd.f32 %v6202_v40, %v2948_v38 }
0x382e   :  { %2979 = vrot.lane.b32.xlu1 %v9076_v7, %s8000_s2 }
0x38a0   :  { %v2980_v47 = vpop.permute.xlu1 %2979 }
0x38a1   :  { %6946 = vmatpush3.xpose.msk.msra.mxu1 %vm2981_vm2, %v2980_v47 }
0x38a2   :  { %6950 = vmatprep.subr.mxu1 %v7995_v2 }
0x38a4   :  { %6948 = vmatmul.mubr.msk.f32.vlgmr.msra.gmra.mrb[30].mxu1 %vm2981_vm2, %v9076_v7 }
0x38a5   :  { %6952 = vmatprep.mubr.msk.f32.mxu1 %vm7998_vm3, %v7995_v2 }
0x3977   :  { %v3052_v17 = vpop.f32.mrb[30].mxu1 }
0x3978   :  { %v3056_v45 = vmul.f32 0.35355338, %v3052_v17  ;;  %v6949_v15 = vpop.f32.mrb[31].mxu1 }
0x397a   :  { %v3057_v28 = vsel %vm9088_vm4, %v3056_v45, -1e+09  ;;  %v9176_v45 = vld [vmem:[%s9736_s12 + $0x10] sm:$0xff] }
0x397b   :  { %v3058_v56 = vsel %vm2981_vm2, %v3057_v28, -inf }
0x397c   :  { %3059 = vmax.xlane.f32.xlu0 %v3058_v56 }
0x3992   :  { %3069 = vrot.lane.b32.xlu0 %v9076_v7, %s7996_s29 }
0x3996   :  { %3223 = vrot.lane.b32.xlu0 %v9076_v7, %s8001_s11 }
0x3a09   :  { %v3060_v10 = vpop.xlane.xlu0 %3059 }
0x3a0a   :  { %v3061_v11 = vsub.f32 %v3057_v28, %v3060_v10 }
0x3a0c   :  { %v3062_v21 = vmul.f32 1.442695, %v3061_v11 }
0x3a0d   :  { %v3070_v25 = vpop.permute.xlu0 %3069 }
0x3a0e   :  { %7958 = vpow2.f32 %v3062_v21  ;;  %6951 = vmatpush3.msra.mxu1 %v3070_v25 }
0x3a0f   :  { %6960 = vmatprep.subr.mxu1 %v7995_v2 }
0x3a11   :  { %v3224_v51 = vpop.permute.xlu0 %3223 }
0x3a18   :  { %v7959_v61 = vpop.eup %7958 }
0x3a19   :  { %v3064_v33 = vsel %vm2981_vm2, %v7959_v61, 0.0 }
0x3a1a   :  { %3065 = vadd.xlane.f32.xlu1 %v3064_v33 }
0x3a2b   :  { %3225 = vrot.lane.b32.xlu1 %v9076_v7, %s8002_s30 }
0x3aa7   :  { %v3066_v41 = vpop.xlane.xlu1 %3065 }
0x3aa8   :  { %7960 = vrcp.f32 %v3066_v41 }
0x3aab   :  { %v3226_v46 = vpop.permute.xlu1 %3225 }
0x3ab2   :  { %v7961_v14 = vpop.eup %7960 }
0x3ab3   :  { %v3068_v27 = vmul.f32 %v7961_v14, %v7959_v61 }
0x3ab5   :  { %6953 = vmatmul.mubr.msk.f32.vlgmr.msra.gmra.mrb[32].mxu1 %vm2981_vm2, %v3068_v27 }
0x3ab6   :  { %6961 = vmatpush3.xpose.msk.msra.mxu1 %vm2981_vm2, %v3226_v46  ;;  %6962 = vmatprep.mubr.msk.f32.mxu1 %vm7998_vm3, %v7995_v2 }
0x3ab7   :  { %6970 = vmatprep.subr.mxu1 %v7995_v2 }
0x3ab9   :  { %6963 = vmatmul.mubr.msk.f32.vlgmr.msra.gmra.mrb[34].mxu1 %vm2981_vm2, %v3224_v51 }
0x3aba   :  { %6972 = vmatprep.mubr.msk.f32.mxu1 %vm7998_vm3, %v7995_v2  ;;  %6971 = vmatpush3.msra.mxu1 %v9145_v54 }
0x3abb   :  { %6980 = vmatprep.subr.mxu1 %v7995_v2 }
0x3b88   :  { %v3141_v9 = vpop.f32.mrb[32].mxu1 }
0x3b89   :  { %v6954_v48 = vpop.f32.mrb[33].mxu1  ;;  %6958 = vmatmul.mubr.msk.f32.vlgmr.msra.gmra.mrb[26].mxu0 %vm2981_vm2, %v3141_v9 }
0x3b8a   :  { %6967 = vmatprep.mubr.msk.f32.mxu0 %vm7998_vm3, %v7995_v2 }
0x3b8c   :  { %v3297_v24 = vpop.f32.mrb[34].mxu1 }
0x3b8d   :  { %v3301_v18 = vmul.f32 0.35355338, %v3297_v24  ;;  %v6964_v34 = vpop.f32.mrb[35].mxu1 }
0x3b8f   :  { %v3302_v32 = vsel %vm9088_vm4, %v3301_v18, -1e+09 }
0x3b90   :  { %v3303_v39 = vsel %vm2981_vm2, %v3302_v32, -inf }
0x3b91   :  { %3304 = vmax.xlane.f32.xlu1 %v3303_v39 }
0x3ba2   :  { %3470 = vrot.lane.b32.xlu1 %v9076_v7, %s8003_s27 }
0x3ba6   :  { %3468 = vrot.lane.b32.xlu1 %v9076_v7, %s8004_s6 }
0x3c1e   :  { %v3305_v36 = vpop.xlane.xlu1 %3304 }
0x3c1f   :  { %v3306_v43 = vsub.f32 %v3302_v32, %v3305_v36 }
0x3c21   :  { %v3307_v42 = vmul.f32 1.442695, %v3306_v43 }
0x3c22   :  { %v3471_v8 = vpop.permute.xlu1 %3470 }
0x3c23   :  { %7962 = vpow2.f32 %v3307_v42 }
0x3c26   :  { %v3469_v1 = vpop.permute.xlu1 %3468 }
0x3c2d   :  { %v7963_v44 = vpop.eup %7962 }
0x3c2e   :  { %v3309_v22 = vsel %vm2981_vm2, %v7963_v44, 0.0 }
0x3c2f   :  { %3310 = vadd.xlane.f32.xlu0 %v3309_v22 }
0x3c45   :  { %3314 = vrot.lane.b32.xlu0 %v9076_v7, %s8005_s1 }
0x3c5c   :  { %v9131_v49 = vpop.f32.mrb[26].mxu0 }
0x3c5d   :  { %v6959_v50 = vpop.f32.mrb[27].mxu0 }
0x3cbc   :  { %v3311_v52 = vpop.xlane.xlu0 %3310 }
0x3cbd   :  { %7964 = vrcp.f32 %v3311_v52 }
0x3cc0   :  { %v3315_v53 = vpop.permute.xlu0 %3314 }
0x3cc1   :  { %6966 = vmatpush3.msra.mxu0 %v3315_v53 }
0x3cc2   :  { %6975 = vmatprep.subr.mxu0 %v7995_v2 }
0x3cc7   :  { %v7965_v57 = vpop.eup %7964 }
0x3cc8   :  { %v3313_v0 = vmul.f32 %v7965_v57, %v7963_v44 }
0x3cca   :  { %6968 = vmatmul.mubr.msk.f32.vlgmr.msra.gmra.mrb[28].mxu0 %vm2981_vm2, %v3313_v0 }
0x3ccb   :  { %6976 = vmatpush3.xpose.msk.msra.mxu0 %vm2981_vm2, %v3471_v8  ;;  %6977 = vmatprep.mubr.msk.f32.mxu0 %vm7998_vm3, %v7995_v2 }
0x3ccc   :  { %6985 = vmatprep.subr.mxu0 %v7995_v2 }
0x3cce   :  { %6978 = vmatmul.mubr.msk.f32.vlgmr.msra.gmra.mrb[30].mxu0 %vm2981_vm2, %v3469_v1 }
0x3ccf   :  { %6987 = vmatprep.mubr.msk.f32.mxu0 %vm7998_vm3, %v7995_v2  ;;  %6986 = vmatpush3.msra.mxu0 %v9176_v45 }
0x3cd0   :  { %6995 = vmatprep.subr.mxu0 %v7995_v2 }
0x3d9d   :  { %v3386_v55 = vpop.f32.mrb[28].mxu0 }
0x3d9e   :  { %v6969_v62 = vpop.f32.mrb[29].mxu0  ;;  %6973 = vmatmul.mubr.msk.f32.vlgmr.msra.gmra.mrb[36].mxu1 %vm2981_vm2, %v3386_v55 }
0x3d9f   :  { %6982 = vmatprep.mubr.msk.f32.mxu1 %vm7998_vm3, %v7995_v2 }
0x3da1   :  { %v3542_v31 = vpop.f32.mrb[30].mxu0 }
0x3da2   :  { %v3546_v3 = vmul.f32 0.35355338, %v3542_v31  ;;  %v6979_v12 = vpop.f32.mrb[31].mxu0 }
0x3da4   :  { %v3547_v35 = vsel %vm9088_vm4, %v3546_v3, -1e+09 }
0x3da5   :  { %v3548_v23 = vsel %vm2981_vm2, %v3547_v35, -inf }
0x3da6   :  { %3549 = vmax.xlane.f32.xlu0 %v3548_v23 }
0x3dbc   :  { %3559 = vrot.lane.b32.xlu0 %v9076_v7, %s8006_s10 }
0x3dc0   :  { %3713 = vrot.lane.b32.xlu0 %v9076_v7, %s8007_s28 }
0x3e33   :  { %v3550_v58 = vpop.xlane.xlu0 %3549 }
0x3e34   :  { %v3551_v59 = vsub.f32 %v3547_v35, %v3550_v58 }
0x3e36   :  { %v3552_v60 = vmul.f32 1.442695, %v3551_v59 }
0x3e37   :  { %v3560_v19 = vpop.permute.xlu0 %3559 }
0x3e38   :  { %7966 = vpow2.f32 %v3552_v60  ;;  %6981 = vmatpush3.msra.mxu1 %v3560_v19 }
0x3e39   :  { %6990 = vmatprep.subr.mxu1 %v7995_v2 }
0x3e3b   :  { %v3714_v17 = vpop.permute.xlu0 %3713 }
0x3e42   :  { %v7967_v63 = vpop.eup %7966 }
0x3e43   :  { %v3554_v16 = vsel %vm2981_vm2, %v7967_v63, 0.0 }
0x3e44   :  { %3555 = vadd.xlane.f32.xlu1 %v3554_v16 }
0x3e55   :  { %3715 = vrot.lane.b32.xlu1 %v9076_v7, %s8008_s8 }
0x3e71   :  { %v9163_v30 = vpop.f32.mrb[36].mxu1 }
0x3e72   :  { %v6974_v40 = vpop.f32.mrb[37].mxu1 }
0x3ed1   :  { %v3556_v37 = vpop.xlane.xlu1 %3555 }
0x3ed2   :  { %7968 = vrcp.f32 %v3556_v37 }
0x3ed5   :  { %v3716_v13 = vpop.permute.xlu1 %3715 }
0x3edc   :  { %v7969_v38 = vpop.eup %7968 }
0x3edd   :  { %v3558_v47 = vmul.f32 %v7969_v38, %v7967_v63 }
0x3edf   :  { %6983 = vmatmul.mubr.msk.f32.vlgmr.msra.gmra.mrb[38].mxu1 %vm2981_vm2, %v3558_v47 }
0x3ee0   :  { %6991 = vmatpush3.xpose.msk.msra.mxu1 %vm2981_vm2, %v3716_v13  ;;  %6992 = vmatprep.mubr.msk.f32.mxu1 %vm7998_vm3, %v7995_v2 }
0x3ee1   :  { %7000 = vmatprep.subr.mxu1 %v7995_v2 }
0x3ee3   :  { %6993 = vmatmul.mubr.msk.f32.vlgmr.msra.gmra.mrb[40].mxu1 %vm2981_vm2, %v3714_v17 }
0x3ee4   :  { %7002 = vmatprep.mubr.msk.f32.mxu1 %vm7998_vm3, %v7995_v2 }
0x3fb2   :  { %v3631_v15 = vpop.f32.mrb[38].mxu1 }
0x3fb3   :  { %v6984_v28 = vpop.f32.mrb[39].mxu1  ;;  %6988 = vmatmul.mubr.msk.f32.vlgmr.msra.gmra.mrb[32].mxu0 %vm2981_vm2, %v3631_v15 }
0x3fb4   :  { %6997 = vmatprep.mubr.msk.f32.mxu0 %vm7998_vm3, %v7995_v2 }
0x3fb6   :  { %v3787_v56 = vpop.f32.mrb[40].mxu1 }
0x3fb7   :  { %v3791_v10 = vmul.f32 0.35355338, %v3787_v56  ;;  %v6994_v11 = vpop.f32.mrb[41].mxu1 }
0x3fb9   :  { %v3792_v21 = vsel %vm9088_vm4, %v3791_v10, -1e+09 }
0x3fba   :  { %v3793_v25 = vsel %vm2981_vm2, %v3792_v21, -inf }
0x3fbb   :  { %3794 = vmax.xlane.f32.xlu1 %v3793_v25 }
0x3fcc   :  { %4136 = vrot.lane.b32.xlu1 %v9074_v6, %s8000_s2 }
0x4048   :  { %v3795_v61 = vpop.xlane.xlu1 %3794 }
0x4049   :  { %v3796_v33 = vsub.f32 %v3792_v21, %v3795_v61 }
0x404b   :  { %v3797_v41 = vmul.f32 1.442695, %v3796_v33 }
0x404c   :  { %v4137_v34 = vpop.permute.xlu1 %4136 }
0x404d   :  { %7970 = vpow2.f32 %v3797_v41 }
0x4057   :  { %v7971_v14 = vpop.eup %7970 }
0x4058   :  { %v3799_v27 = vsel %vm2981_vm2, %v7971_v14, 0.0 }
0x4059   :  { %3800 = vadd.xlane.f32.xlu0 %v3799_v27 }
0x406f   :  { %3804 = vrot.lane.b32.xlu0 %v9076_v7, %s8009_s0  ;;  %v9208_v7 = vld [vmem:[%s9736_s12 + $0x18] sm:$0xff] }
0x4070   :  { %7001 = vmatpush3.msra.mxu1 %v9208_v7 }
0x4071   :  { %7010 = vmatprep.subr.mxu1 %v7995_v2 }
0x4086   :  { %v9191_v46 = vpop.f32.mrb[32].mxu0 }
0x4087   :  { %v6989_v51 = vpop.f32.mrb[33].mxu0 }
0x40e6   :  { %v3801_v9 = vpop.xlane.xlu0 %3800 }
0x40e7   :  { %7972 = vrcp.f32 %v3801_v9 }
0x40ea   :  { %v3805_v48 = vpop.permute.xlu0 %3804 }
0x40eb   :  { %6996 = vmatpush3.msra.mxu0 %v3805_v48 }
0x40ec   :  { %7005 = vmatprep.subr.mxu0 %v7995_v2 }
0x40f1   :  { %v7973_v24 = vpop.eup %7972 }
0x40f2   :  { %v3803_v18 = vmul.f32 %v7973_v24, %v7971_v14 }
0x40f4   :  { %6998 = vmatmul.mubr.msk.f32.vlgmr.msra.gmra.mrb[34].mxu0 %vm2981_vm2, %v3803_v18 }
0x40f5   :  { %7006 = vmatpush3.xpose.msk.msra.mxu0 %vm2981_vm2, %v4137_v34  ;;  %7007 = vmatprep.mubr.msk.f32.mxu0 %vm7998_vm3, %v7995_v2 }
0x40f6   :  { %7015 = vmatprep.subr.mxu0 %v7995_v2 }
0x40f8   :  { %7008 = vmatmul.mubr.msk.f32.vlgmr.msra.gmra.mrb[36].mxu0 %vm2981_vm2, %v9074_v6 }
0x40f9   :  { %7016 = vmatpush3.msra.mxu0 %v9114_v5  ;;  %7017 = vmatprep.mubr.msk.f32.mxu0 %vm7998_vm3, %v7995_v2 }
0x40fa   :  { %7025 = vmatprep.subr.mxu0 %v7995_v2 }
0x41c7   :  { %v3876_v32 = vpop.f32.mrb[34].mxu0 }
0x41c8   :  { %v6999_v39 = vpop.f32.mrb[35].mxu0  ;;  %7003 = vmatmul.mubr.msk.f32.vlgmr.msra.gmra.mrb[42].mxu1 %vm2981_vm2, %v3876_v32 }
0x41c9   :  { %7012 = vmatprep.mubr.msk.f32.mxu1 %vm7998_vm3, %v7995_v2 }
0x41cb   :  { %v4208_v5 = vpop.f32.mrb[36].mxu0 }
0x41cc   :  { %v4212_v36 = vmul.f32 0.35355338, %v4208_v5  ;;  %v7009_v43 = vpop.f32.mrb[37].mxu0 }
0x41ce   :  { %v4213_v42 = vsel %vm9088_vm4, %v4212_v36, -1e+09 }
0x41cf   :  { %v4214_v44 = vsel %vm2981_vm2, %v4213_v42, -inf }
0x41d0   :  { %4215 = vmax.xlane.f32.xlu1 %v4214_v44 }
0x41e1   :  { %4381 = vrot.lane.b32.xlu1 %v9074_v6, %s8002_s30 }
0x41e5   :  { %4379 = vrot.lane.b32.xlu1 %v9074_v6, %s8001_s11 }
0x425d   :  { %v4216_v22 = vpop.xlane.xlu1 %4215 }
0x425e   :  { %v4217_v50 = vsub.f32 %v4213_v42, %v4216_v22 }
0x4260   :  { %v4218_v52 = vmul.f32 1.442695, %v4217_v50 }
0x4261   :  { %v4382_v31 = vpop.permute.xlu1 %4381 }
0x4262   :  { %7974 = vpow2.f32 %v4218_v52 }
0x4265   :  { %v4380_v12 = vpop.permute.xlu1 %4379 }
0x426c   :  { %v7975_v53 = vpop.eup %7974 }
0x426d   :  { %v4220_v57 = vsel %vm2981_vm2, %v7975_v53, 0.0 }
0x426e   :  { %4221 = vadd.xlane.f32.xlu0 %v4220_v57 }
0x4284   :  { %4225 = vrot.lane.b32.xlu0 %v9074_v6, %s7996_s29 }
0x429b   :  { %v9225_v8 = vpop.f32.mrb[42].mxu1 }
0x429c   :  { %v7004_v0 = vpop.f32.mrb[43].mxu1 }
0x42fb   :  { %v4222_v1 = vpop.xlane.xlu0 %4221 }
0x42fc   :  { %7976 = vrcp.f32 %v4222_v1 }
0x42ff   :  { %v4226_v55 = vpop.permute.xlu0 %4225 }
0x4300   :  { %7011 = vmatpush3.msra.mxu1 %v4226_v55 }
0x4301   :  { %7020 = vmatprep.subr.mxu1 %v7995_v2 }
0x4306   :  { %v7977_v62 = vpop.eup %7976 }
0x4307   :  { %v4224_v3 = vmul.f32 %v7977_v62, %v7975_v53 }
0x4309   :  { %7013 = vmatmul.mubr.msk.f32.vlgmr.msra.gmra.mrb[44].mxu1 %vm2981_vm2, %v4224_v3 }
0x430a   :  { %7021 = vmatpush3.xpose.msk.msra.mxu1 %vm2981_vm2, %v4382_v31  ;;  %7022 = vmatprep.mubr.msk.f32.mxu1 %vm7998_vm3, %v7995_v2 }
0x430b   :  { %7030 = vmatprep.subr.mxu1 %v7995_v2 }
0x430d   :  { %7023 = vmatmul.mubr.msk.f32.vlgmr.msra.gmra.mrb[46].mxu1 %vm2981_vm2, %v4380_v12 }
0x430e   :  { %7031 = vmatpush3.msra.mxu1 %v9145_v54  ;;  %7032 = vmatprep.mubr.msk.f32.mxu1 %vm7998_vm3, %v7995_v2 }
0x430f   :  { %7040 = vmatprep.subr.mxu1 %v7995_v2 }
0x43dc   :  { %v4297_v35 = vpop.f32.mrb[44].mxu1 }
0x43dd   :  { %v7014_v23 = vpop.f32.mrb[45].mxu1  ;;  %7018 = vmatmul.mubr.msk.f32.vlgmr.msra.gmra.mrb[38].mxu0 %vm2981_vm2, %v4297_v35 }
0x43de   :  { %7027 = vmatprep.mubr.msk.f32.mxu0 %vm7998_vm3, %v7995_v2 }
0x43e0   :  { %v4453_v58 = vpop.f32.mrb[46].mxu1 }
0x43e1   :  { %v4457_v59 = vmul.f32 0.35355338, %v4453_v58  ;;  %v7024_v60 = vpop.f32.mrb[47].mxu1 }
0x43e3   :  { %v4458_v19 = vsel %vm9088_vm4, %v4457_v59, -1e+09 }
0x43e4   :  { %v4459_v54 = vsel %vm2981_vm2, %v4458_v19, -inf }
0x43e5   :  { %4460 = vmax.xlane.f32.xlu0 %v4459_v54 }
0x43fb   :  { %4470 = vrot.lane.b32.xlu0 %v9074_v6, %s8005_s1 }
0x43ff   :  { %4624 = vrot.lane.b32.xlu0 %v9074_v6, %s8004_s6 }
0x4472   :  { %v4461_v63 = vpop.xlane.xlu0 %4460 }
0x4473   :  { %v4462_v16 = vsub.f32 %v4458_v19, %v4461_v63 }
0x4475   :  { %v4463_v40 = vmul.f32 1.442695, %v4462_v16 }
0x4476   :  { %v4471_v37 = vpop.permute.xlu0 %4470 }
0x4477   :  { %7978 = vpow2.f32 %v4463_v40  ;;  %7026 = vmatpush3.msra.mxu0 %v4471_v37 }
0x4478   :  { %7035 = vmatprep.subr.mxu0 %v7995_v2 }
0x447a   :  { %v4625_v11 = vpop.permute.xlu0 %4624 }
0x4481   :  { %v7979_v38 = vpop.eup %7978 }
0x4482   :  { %v4465_v47 = vsel %vm2981_vm2, %v7979_v38, 0.0 }
0x4483   :  { %4466 = vadd.xlane.f32.xlu1 %v4465_v47 }
0x4494   :  { %4626 = vrot.lane.b32.xlu1 %v9074_v6, %s8003_s27 }
0x44b0   :  { %v9252_v13 = vpop.f32.mrb[38].mxu0 }
0x44b1   :  { %v7019_v17 = vpop.f32.mrb[39].mxu0 }
0x4510   :  { %v4467_v15 = vpop.xlane.xlu1 %4466 }
0x4511   :  { %7980 = vrcp.f32 %v4467_v15 }
0x4514   :  { %v4627_v10 = vpop.permute.xlu1 %4626 }
0x451b   :  { %v7981_v28 = vpop.eup %7980 }
0x451c   :  { %v4469_v56 = vmul.f32 %v7981_v28, %v7979_v38 }
0x451e   :  { %7028 = vmatmul.mubr.msk.f32.vlgmr.msra.gmra.mrb[40].mxu0 %vm2981_vm2, %v4469_v56 }
0x451f   :  { %7036 = vmatpush3.xpose.msk.msra.mxu0 %vm2981_vm2, %v4627_v10  ;;  %7037 = vmatprep.mubr.msk.f32.mxu0 %vm7998_vm3, %v7995_v2 }
0x4520   :  { %7045 = vmatprep.subr.mxu0 %v7995_v2 }
0x4522   :  { %7038 = vmatmul.mubr.msk.f32.vlgmr.msra.gmra.mrb[42].mxu0 %vm2981_vm2, %v4625_v11 }
0x4523   :  { %7046 = vmatpush3.msra.mxu0 %v9176_v45  ;;  %7047 = vmatprep.mubr.msk.f32.mxu0 %vm7998_vm3, %v7995_v2 }
0x4524   :  { %7055 = vmatprep.subr.mxu0 %v7995_v2 }
0x45f1   :  { %v4542_v21 = vpop.f32.mrb[40].mxu0 }
0x45f2   :  { %v7029_v25 = vpop.f32.mrb[41].mxu0  ;;  %7033 = vmatmul.mubr.msk.f32.vlgmr.msra.gmra.mrb[48].mxu1 %vm2981_vm2, %v4542_v21 }
0x45f3   :  { %7042 = vmatprep.mubr.msk.f32.mxu1 %vm7998_vm3, %v7995_v2 }
0x45f5   :  { %v4698_v61 = vpop.f32.mrb[42].mxu0 }
0x45f6   :  { %v4702_v33 = vmul.f32 0.35355338, %v4698_v61  ;;  %v7039_v41 = vpop.f32.mrb[43].mxu0 }
0x45f8   :  { %v4703_v14 = vsel %vm9088_vm4, %v4702_v33, -1e+09  ;;  %v6222_v33 = vld [vmem:[%s9738_s14] ss:$0 sm:$0xff]  ;;  %s8010_s14 = smov 24  }
0x45f9   :  { %v4704_v45 = vsel %vm2981_vm2, %v4703_v14, -inf }
0x45fa   :  { %4705 = vmax.xlane.f32.xlu1 %v4704_v45 }
0x460b   :  { %4871 = vrot.lane.b32.xlu1 %v9074_v6, %s8008_s8 }
0x460f   :  { %4869 = vrot.lane.b32.xlu1 %v9074_v6, %s8007_s28 }
0x4687   :  { %v4706_v27 = vpop.xlane.xlu1 %4705 }
0x4688   :  { %v4707_v51 = vsub.f32 %v4703_v14, %v4706_v27 }
0x468a   :  { %v4708_v9 = vmul.f32 1.442695, %v4707_v51 }
0x468b   :  { %v4872_v36 = vpop.permute.xlu1 %4871 }
0x468c   :  { %7982 = vpow2.f32 %v4708_v9 }
0x468f   :  { %v4870_v42 = vpop.permute.xlu1 %4869 }
0x4696   :  { %v7983_v48 = vpop.eup %7982 }
0x4697   :  { %v4710_v24 = vsel %vm2981_vm2, %v7983_v48, 0.0 }
0x4698   :  { %4711 = vadd.xlane.f32.xlu0 %v4710_v24  ;;  %v6223_v24 = vld [vmem:[%s9739_s15] ss:$0 sm:$0xff]  ;;  %s8011_s15 = smov 16  }
0x46ae   :  { %4715 = vrot.lane.b32.xlu0 %v9074_v6, %s8006_s10 }
0x46c5   :  { %v4615_v18 = vpop.f32.mrb[48].mxu1 }
0x46c6   :  { %v7034_v34 = vpop.f32.mrb[49].mxu1 }
0x4725   :  { %v4712_v32 = vpop.xlane.xlu0 %4711 }
0x4726   :  { %7984 = vrcp.f32 %v4712_v32 }
0x4729   :  { %v4716_v39 = vpop.permute.xlu0 %4715 }
0x472a   :  { %7041 = vmatpush3.msra.mxu1 %v4716_v39 }
0x472b   :  { %7050 = vmatprep.subr.mxu1 %v7995_v2 }
0x4730   :  { %v7985_v5 = vpop.eup %7984 }
0x4731   :  { %v4714_v43 = vmul.f32 %v7985_v5, %v7983_v48 }
0x4733   :  { %7043 = vmatmul.mubr.msk.f32.vlgmr.msra.gmra.mrb[50].mxu1 %vm2981_vm2, %v4714_v43 }
0x4734   :  { %7051 = vmatpush3.xpose.msk.msra.mxu1 %vm2981_vm2, %v4872_v36  ;;  %7052 = vmatprep.mubr.msk.f32.mxu1 %vm7998_vm3, %v7995_v2 }
0x4735   :  { %7060 = vmatprep.subr.mxu1 %v7995_v2 }
0x4737   :  { %7053 = vmatmul.mubr.msk.f32.vlgmr.msra.gmra.mrb[52].mxu1 %vm2981_vm2, %v4870_v42 }
0x4738   :  { %7061 = vmatpush3.msra.mxu1 %v9208_v7  ;;  %7062 = vmatprep.mubr.msk.f32.mxu1 %vm7998_vm3, %v7995_v2 }
0x4739   :  { %7084 = vmatprep.subr.mxu1 %v7995_v2 }
0x4806   :  { %v4787_v44 = vpop.f32.mrb[50].mxu1 }
0x4807   :  { %v7044_v22 = vpop.f32.mrb[51].mxu1  ;;  %7048 = vmatmul.mubr.msk.f32.vlgmr.msra.gmra.mrb[44].mxu0 %vm2981_vm2, %v4787_v44 }
0x4808   :  { %7057 = vmatprep.mubr.msk.f32.mxu0 %vm7998_vm3, %v7995_v2 }
0x480a   :  { %v4943_v50 = vpop.f32.mrb[52].mxu1 }
0x480b   :  { %v4947_v52 = vmul.f32 0.35355338, %v4943_v50  ;;  %v7054_v53 = vpop.f32.mrb[53].mxu1 }
0x480d   :  { %v4948_v57 = vsel %vm9088_vm4, %v4947_v52, -1e+09  ;;  %vm4039_vm4 = vcmask 457728  }
0x480e   :  { %v4949_v7 = vsel %vm2981_vm2, %v4948_v57, -inf }
0x480f   :  { %4950 = vmax.xlane.f32.xlu0 %v4949_v7 }
0x4825   :  { %4960 = vrot.lane.b32.xlu0 %v9074_v6, %s8009_s0  ;;  %v6205_v6 = vld [vmem:[%s9737_s13] ss:$0 sm:$0xff] }
0x4829   :  { %3219 = vrot.lane.b32.xlu0 %v9131_v49, %s8000_s2 }
0x482d   :  { %4375 = vrot.lane.b32.xlu0 %v9252_v13, %s8000_s2 }
0x4831   :  { %4620 = vrot.lane.b32.xlu0 %v4615_v18, %s8000_s2 }
0x489c   :  { %v4951_v0 = vpop.xlane.xlu0 %4950 }
0x489d   :  { %v4952_v1 = vsub.f32 %v4948_v57, %v4951_v0 }
0x489f   :  { %v4953_v55 = vmul.f32 1.442695, %v4952_v1 }
0x48a0   :  { %v4961_v62 = vpop.permute.xlu0 %4960 }
0x48a1   :  { %7986 = vpow2.f32 %v4953_v55  ;;  %7056 = vmatpush3.msra.mxu0 %v4961_v62 }
0x48a2   :  { %7675 = vmatprep.subr.bf16.mxu0 %v7997_v4 }
0x48a4   :  { %v3220_v12 = vpop.permute.xlu0 %3219 }
0x48a8   :  { %v4376_v23 = vpop.permute.xlu0 %4375 }
0x48ab   :  { %v7987_v26 = vpop.eup %7986 }
0x48ac   :  { %v4955_v31 = vsel %vm2981_vm2, %v7987_v26, 0.0  ;;  %v4621_v19 = vpop.permute.xlu0 %4620 }
0x48ad   :  { %4956 = vadd.xlane.f32.xlu1 %v4955_v31 }
0x48be   :  { %2974 = vrot.lane.b32.xlu1 %v6205_v6, %s8000_s2 }
0x48c2   :  { %3464 = vrot.lane.b32.xlu1 %v9163_v30, %s8000_s2 }
0x48c6   :  { %3709 = vrot.lane.b32.xlu1 %v9191_v46, %s8000_s2 }
0x48ca   :  { %3954 = vrot.lane.b32.xlu1 %v9225_v8, %s8000_s2 }
0x48da   :  { %v4860_v49 = vpop.f32.mrb[44].mxu0 }
0x48db   :  { %4865 = vrot.lane.b32.xlu0 %v4860_v49, %s8000_s2  ;;  %v7049_v3 = vpop.f32.mrb[45].mxu0 }
0x493a   :  { %v4957_v35 = vpop.xlane.xlu1 %4956 }
0x493b   :  { %7988 = vrcp.f32 %v4957_v35 }
0x493e   :  { %v2975_v58 = vpop.permute.xlu1 %2974 }
0x493f   :  { %v2977_v59 = vadd.f32 %v2975_v58, %v9061_v29  ;;  %v4134_v60 = vadd.f32 %v2975_v58, %v9057_v20 }
0x4941   :  { %v4378_v30 = vadd.f32 %v4376_v23, %v4134_v60  ;;  %v3222_v46 = vadd.f32 %v3220_v12, %v2977_v59 }
0x4942   :  { %v3465_v54 = vpop.permute.xlu1 %3464 }
0x4943   :  { %v4623_v63 = vadd.f32 %v4621_v19, %v4378_v30  ;;  %v3467_v37 = vadd.f32 %v3465_v54, %v3222_v46 }
0x4945   :  { %v7989_v16 = vpop.eup %7988 }
0x4946   :  { %v4959_v8 = vmul.f32 %v7989_v16, %v7987_v26  ;;  %v3710_v40 = vpop.permute.xlu1 %3709 }
0x4947   :  { %v3712_v38 = vadd.f32 %v3710_v40, %v3467_v37 }
0x4948   :  { %7058 = vmatmul.mubr.msk.f32.vlgmr.msra.gmra.mrb[46].mxu0 %vm2981_vm2, %v4959_v8 }
0x4949   :  { %7081 = vmatprep.mubr.msk.f32.mxu0 %vm7998_vm3, %v7995_v2 }
0x494a   :  { %v3955_v47 = vpop.permute.xlu1 %3954 }
0x494b   :  { %v3957_v13 = vadd.f32 %v3955_v47, %v3712_v38 }
0x494d   :  { %3959 = vrot.lane.b32.xlu0 %v3957_v13, %s7999_s7  ;;  %v4866_v20 = vpop.permute.xlu0 %4865 }
0x494e   :  { %v4868_v45 = vadd.f32 %v4866_v20, %v4623_v63 }
0x49bf   :  { %v3960_v29 = vpop.permute.xlu0 %3959 }
0x49c0   :  { %v3962_v17 = vsel %vm2877_vm15, %v3960_v29, 0.0 }
0x49c1   :  { %3963 = vadd.xlane.f32.xlu0 %v3962_v17 }
0x4a1b   :  { %v5032_v15 = vpop.f32.mrb[46].mxu0 }
0x4a1c   :  { %v7059_v28 = vpop.f32.mrb[47].mxu0  ;;  %7063 = vmatmul.mubr.msk.f32.vlgmr.msra.gmra.mrb[54].mxu1 %vm2981_vm2, %v5032_v15 }
0x4a1d   :  { %7086 = vmatprep.mubr.msk.f32.mxu1 %vm7998_vm3, %v7995_v2 }
0x4a4e   :  { %v3964_v56 = vpop.xlane.xlu0 %3963 }
0x4a4f   :  { %v3966_v10 = vmul.f32 0.03125, %v3964_v56 }
0x4a51   :  { %v3967_v11 = vsub.f32 %v3957_v13, %v3966_v10 }
0x4a53   :  { %v3968_v21 = vmul.f32 %v3967_v11, %v3967_v11 }
0x4a55   :  { %3970 = vrot.lane.b32.xlu0 %v3968_v21, %s7999_s7 }
0x4ac7   :  { %v3971_v25 = vpop.permute.xlu0 %3970 }
0x4ac8   :  { %v3973_v61 = vsel %vm2877_vm15, %v3971_v25, 0.0 }
0x4ac9   :  { %3974 = vadd.xlane.f32.xlu0 %v3973_v61 }
0x4adf   :  { %3985 = vrot.lane.b32.xlu0 %v6222_v33, %s8000_s2 }
0x4aef   :  { %v5105_v41 = vpop.f32.mrb[54].mxu1 }
0x4af0   :  { %5110 = vrot.lane.b32.xlu1 %v5105_v41, %s8000_s2  ;;  %v7064_v14 = vpop.f32.mrb[55].mxu1 }
0x4b56   :  { %v3975_v18 = vpop.xlane.xlu0 %3974 }
0x4b57   :  { %v3976_v34 = vmul.f32 0.03125, %v3975_v18 }
0x4b59   :  { %v3977_v32 = vadd.f32 1e-06, %v3976_v34 }
0x4b5a   :  { %v9337_v36 = vpop.permute.xlu0 %3985 }
0x4b5b   :  { %7990 = vrsqrt.f32 %v3977_v32 }
0x4b62   :  { %v5111_v27 = vpop.permute.xlu1 %5110 }
0x4b63   :  { %v5113_v51 = vadd.f32 %v5111_v27, %v4868_v45 }
0x4b65   :  { %5115 = vrot.lane.b32.xlu1 %v5113_v51, %s7999_s7  ;;  %v7991_v39 = vpop.eup %7990 }
0x4b66   :  { %v3979_v5 = vmul.f32 %v7991_v39, %v3967_v11 }
0x4b68   :  { %v3988_v42 = vmul.f32 %v9337_v36, %v3979_v5 }
0x4bd7   :  { %v5116_v9 = vpop.permute.xlu1 %5115 }
0x4bd8   :  { %v5118_v48 = vsel %vm2877_vm15, %v5116_v9, 0.0 }
0x4bd9   :  { %5119 = vadd.xlane.f32.xlu1 %v5118_v48 }
0x4bea   :  { %3994 = vrot.lane.b32.xlu1 %v6223_v24, %s8000_s2  ;;  %s8012_s2 = smov 8  }
0x4c66   :  { %v5120_v43 = vpop.xlane.xlu1 %5119 }
0x4c67   :  { %v5121_v53 = vmul.f32 0.03125, %v5120_v43 }
0x4c69   :  { %v9347_v57 = vsub.f32 %v5113_v51, %v5121_v53 }
0x4c6a   :  { %v9340_v44 = vpop.permute.xlu1 %3994 }
0x4c6b   :  { %v3997_v22 = vadd.f32 %v9340_v44, %v3988_v42  ;;  %v5123_v7 = vmul.f32 %v9347_v57, %v9347_v57 }
0x4c6d   :  { %4041 = vrot.lane.b32.xlu0 %v3997_v22, %s8010_s14  ;;  %v4002_v50 = vrot.slane %v3997_v22, 1  ;;  %v4006_v52 = vrot.slane %v3997_v22, 2  ;;  %v4010_v0 = vrot.slane %v3997_v22, 3  ;;  %v4014_v1 = vrot.slane %v3997_v22, 4 }
0x4c6e   :  { %v4018_v55 = vrot.slane %v3997_v22, 5  ;;  %v4022_v62 = vrot.slane %v3997_v22, 6  ;;  %v4026_v26 = vrot.slane %v3997_v22, 7 }
0x4c6f   :  { %4044 = vrot.lane.b32.xlu1 %v4002_v50, %s7999_s7 }
0x4c71   :  { %4047 = vrot.lane.b32.xlu0 %v4006_v52, %s8009_s0 }
0x4c73   :  { %4072 = vrot.lane.b32.xlu1 %v3997_v22, %s8011_s15 }
0x4c75   :  { %4075 = vrot.lane.b32.xlu0 %v4002_v50, %s8010_s14 }
0x4c77   :  { %3999 = vrot.lane.b32.xlu1 %v3997_v22, %s7999_s7 }
0x4c79   :  { %4003 = vrot.lane.b32.xlu0 %v4002_v50, %s8009_s0 }
0x4c7b   :  { %5125 = vrot.lane.b32.xlu1 %v5123_v7, %s7999_s7 }
0x4c7d   :  { %4078 = vrot.lane.b32.xlu0 %v4006_v52, %s7999_s7 }
0x4c7f   :  { %4050 = vrot.lane.b32.xlu1 %v4010_v0, %s8006_s10 }
0x4c81   :  { %4106 = vrot.lane.b32.xlu0 %v4002_v50, %s8011_s15 }
0x4c83   :  { %4103 = vrot.lane.b32.xlu1 %v3997_v22, %s8012_s2 }
0x4c85   :  { %4053 = vrot.lane.b32.xlu0 %v4014_v1, %s8005_s1 }
0x4c87   :  { %4007 = vrot.lane.b32.xlu1 %v4006_v52, %s8006_s10 }
0x4c89   :  { %4109 = vrot.lane.b32.xlu0 %v4006_v52, %s8010_s14 }
0x4c8b   :  { %4081 = vrot.lane.b32.xlu1 %v4010_v0, %s8009_s0 }
0x4c8d   :  { %4056 = vrot.lane.b32.xlu0 %v4018_v55, %s7996_s29 }
0x4c8f   :  { %4011 = vrot.lane.b32.xlu1 %v4010_v0, %s8005_s1 }
0x4c91   :  { %4112 = vrot.lane.b32.xlu0 %v4010_v0, %s7999_s7 }
0x4c93   :  { %4084 = vrot.lane.b32.xlu1 %v4014_v1, %s8006_s10 }
0x4c95   :  { %4015 = vrot.lane.b32.xlu0 %v4014_v1, %s7996_s29 }
0x4c97   :  { %4059 = vrot.lane.b32.xlu1 %v4022_v62, %s8008_s8 }
0x4c99   :  { %4087 = vrot.lane.b32.xlu0 %v4018_v55, %s8005_s1 }
0x4c9b   :  { %4115 = vrot.lane.b32.xlu1 %v4014_v1, %s8009_s0 }
0x4c9d   :  { %4019 = vrot.lane.b32.xlu0 %v4018_v55, %s8008_s8 }
0x4c9f   :  { %4062 = vrot.lane.b32.xlu1 %v4026_v26, %s8003_s27 }
0x4ca1   :  { %4090 = vrot.lane.b32.xlu0 %v4022_v62, %s7996_s29 }
0x4ca3   :  { %4118 = vrot.lane.b32.xlu1 %v4018_v55, %s8006_s10 }
0x4ca5   :  { %4093 = vrot.lane.b32.xlu0 %v4026_v26, %s8008_s8 }
0x4ca7   :  { %4023 = vrot.lane.b32.xlu1 %v4022_v62, %s8003_s27 }
0x4ca9   :  { %4027 = vrot.lane.b32.xlu0 %v4026_v26, %s8002_s30 }
0x4cdf   :  { %v4042_v31 = vpop.permute.xlu0 %4041 }
0x4ce1   :  { %v4045_v6 = vpop.permute.xlu1 %4044 }
0x4ce2   :  { %v4065_v49 = vsel %vm2981_vm2, %v4042_v31, %v4045_v6 }
0x4ce3   :  { %v4048_v3 = vpop.permute.xlu0 %4047 }
0x4ce4   :  { %v4066_v12 = vsel %vm4031_vm5, %v4065_v49, %v4048_v3 }
0x4ce5   :  { %v4073_v35 = vpop.permute.xlu1 %4072 }
0x4ce7   :  { %v4076_v23 = vpop.permute.xlu0 %4075 }
0x4ce8   :  { %v4096_v58 = vsel %vm2981_vm2, %v4073_v35, %v4076_v23 }
0x4ce9   :  { %v4000_v59 = vpop.permute.xlu1 %3999 }
0x4ceb   :  { %v4004_v60 = vpop.permute.xlu0 %4003 }
0x4cec   :  { %v4030_v30 = vsel %vm2981_vm2, %v4000_v59, %v4004_v60 }
0x4ced   :  { %v5126_v19 = vpop.permute.xlu1 %5125 }
0x4cee   :  { %v5128_v54 = vsel %vm2877_vm15, %v5126_v19, 0.0 }
0x4cef   :  { %v4079_v46 = vpop.permute.xlu0 %4078  ;;  %5129 = vadd.xlane.f32.xlu1 %v5128_v54 }
0x4cf0   :  { %v4097_v63 = vsel %vm4031_vm5, %v4096_v58, %v4079_v46 }
0x4cf1   :  { %v4051_v16 = vpop.permute.xlu1 %4050 }
0x4cf2   :  { %v4067_v8 = vsel %vm97_vm0, %v4066_v12, %v4051_v16 }
0x4cf3   :  { %v4107_v40 = vpop.permute.xlu0 %4106 }
0x4cf5   :  { %v4104_v37 = vpop.permute.xlu1 %4103 }
0x4cf6   :  { %v4127_v38 = vsel %vm2981_vm2, %v4104_v37, %v4107_v40 }
0x4cf7   :  { %v4054_v47 = vpop.permute.xlu0 %4053 }
0x4cf8   :  { %v4068_v13 = vsel %vm2877_vm15, %v4067_v8, %v4054_v47  ;;  %v5298_v47 = vld [vmem:[%s9740_s16 + $0x8] sm:$0xff] }
0x4cf9   :  { %v4008_v20 = vpop.permute.xlu1 %4007 }
0x4cfa   :  { %v4032_v29 = vsel %vm4031_vm5, %v4030_v30, %v4008_v20  ;;  %v5299_v20 = vld [vmem:[%s9740_s16 + $0x10] sm:$0xff] }
0x4cfb   :  { %v4110_v17 = vpop.permute.xlu0 %4109 }
0x4cfc   :  { %v4128_v15 = vsel %vm4031_vm5, %v4127_v38, %v4110_v17  ;;  %v5297_v38 = vld [vmem:[%s9740_s16] sm:$0xff] }
0x4cfd   :  { %v4082_v28 = vpop.permute.xlu1 %4081 }
0x4cfe   :  { %v4098_v56 = vsel %vm97_vm0, %v4097_v63, %v4082_v28  ;;  %v5301_v28 = vld [vmem:[%s9740_s16 + $0x20] sm:$0xff] }
0x4cff   :  { %v4057_v10 = vpop.permute.xlu0 %4056 }
0x4d00   :  { %v4069_v11 = vsel %vm4035_vm6, %v4068_v13, %v4057_v10  ;;  %4121 = vrot.lane.b32.xlu1 %v4022_v62, %s8005_s1  ;;  %v7676_v13 = vpack.c.bf16 %v5298_v47, %v5297_v38 }
0x4d01   :  { %v4012_v21 = vpop.permute.xlu1 %4011 }
0x4d02   :  { %v4033_v25 = vsel %vm97_vm0, %v4032_v29, %v4012_v21  ;;  %7677 = vmatpush3.bf16.msra.mxu0 %v7676_v13  ;;  %v5300_v29 = vld [vmem:[%s9740_s16 + $0x18] sm:$0xff] }
0x4d03   :  { %v4113_v61 = vpop.permute.xlu0 %4112  ;;  %7678 = vmatprep.subr.bf16.mxu0 %v7997_v4  ;;  %v7679_v17 = vpack.c.bf16 %v5300_v29, %v5299_v20  ;;  %v5304_v21 = vld [vmem:[%s9740_s16 + $0x38] sm:$0xff] }
0x4d04   :  { %v4129_v33 = vsel %vm97_vm0, %v4128_v15, %v4113_v61  ;;  %4124 = vrot.lane.b32.xlu1 %v4026_v26, %s7996_s29 }
0x4d05   :  { %v4085_v41 = vpop.permute.xlu1 %4084 }
0x4d06   :  { %v4099_v14 = vsel %vm2877_vm15, %v4098_v56, %v4085_v41  ;;  %7680 = vmatpush3.bf16.msra.mxu0 %v7679_v17  ;;  %v5302_v56 = vld [vmem:[%s9740_s16 + $0x28] sm:$0xff] }
0x4d07   :  { %v4016_v45 = vpop.permute.xlu0 %4015  ;;  %7681 = vmatprep.subr.bf16.mxu0 %v7997_v4  ;;  %v7682_v10 = vpack.c.bf16 %v5302_v56, %v5301_v28 }
0x4d08   :  { %v4034_v27 = vsel %vm2877_vm15, %v4033_v25, %v4016_v45 }
0x4d09   :  { %v4060_v51 = vpop.permute.xlu1 %4059 }
0x4d0a   :  { %v4070_v9 = vsel %vm4037_vm9, %v4069_v11, %v4060_v51  ;;  %7683 = vmatpush3.bf16.msra.mxu0 %v7682_v10  ;;  %v5303_v11 = vld [vmem:[%s9740_s16 + $0x30] sm:$0xff] }
0x4d0b   :  { %v4088_v48 = vpop.permute.xlu0 %4087  ;;  %7684 = vmatprep.subr.bf16.mxu0 %v7997_v4  ;;  %v7685_v25 = vpack.c.bf16 %v5304_v21, %v5303_v11 }
0x4d0c   :  { %v4100_v24 = vsel %vm4035_vm6, %v4099_v14, %v4088_v48 }
0x4d0d   :  { %v4116_v18 = vpop.permute.xlu1 %4115 }
0x4d0e   :  { %v4130_v34 = vsel %vm2877_vm15, %v4129_v33, %v4116_v18  ;;  %7686 = vmatpush3.bf16.msra.mxu0 %v7685_v25 }
0x4d0f   :  { %v4020_v32 = vpop.permute.xlu0 %4019  ;;  %7108 = vmatprep.subr.mxu0 %v7995_v2 }
0x4d10   :  { %v4036_v39 = vsel %vm4035_vm6, %v4034_v27, %v4020_v32 }
0x4d11   :  { %v4063_v5 = vpop.permute.xlu1 %4062 }
0x4d12   :  { %v4071_v43 = vsel %vm4039_vm4, %v4070_v9, %v4063_v5 }
0x4d13   :  { %v4091_v42 = vpop.permute.xlu0 %4090  ;;  %v5270_v55 = vrot.slane %v4071_v43, 7 }
0x4d14   :  { %v4101_v22 = vsel %vm4037_vm9, %v4100_v24, %v4091_v42 }
0x4d15   :  { %v4119_v50 = vpop.permute.xlu1 %4118 }
0x4d16   :  { %v4131_v52 = vsel %vm4035_vm6, %v4130_v34, %v4119_v50 }
0x4d17   :  { %v4094_v53 = vpop.permute.xlu0 %4093 }
0x4d18   :  { %v4102_v7 = vsel %vm4039_vm4, %v4101_v22, %v4094_v53 }
0x4d19   :  { %v4024_v0 = vpop.permute.xlu1 %4023  ;;  %v5273_v26 = vrot.slane %v4102_v7, 6 }
0x4d1a   :  { %v4038_v1 = vsel %vm4037_vm9, %v4036_v39, %v4024_v0 }
0x4d1b   :  { %v4028_v62 = vpop.permute.xlu0 %4027 }
0x4d1c   :  { %v4040_v31 = vsel %vm4039_vm4, %v4038_v1, %v4028_v62 }
0x4d1d   :  { %v5290_v6 = vsel %vm2825_vm7, %v4040_v31, %v5270_v55 }
0x4d1e   :  { %v5291_v49 = vsel %vm2827_vm8, %v5290_v6, %v5273_v26 }
0x4d7c   :  { %v5130_v3 = vpop.xlane.xlu1 %5129 }
0x4d7d   :  { %v5131_v12 = vmul.f32 0.03125, %v5130_v3 }
0x4d7f   :  { %v5132_v35 = vadd.f32 1e-06, %v5131_v12 }
0x4d80   :  { %v4122_v23 = vpop.permute.xlu1 %4121 }
0x4d81   :  { %7992 = vrsqrt.f32 %v5132_v35  ;;  %v4132_v58 = vsel %vm4037_vm9, %v4131_v52, %v4122_v23 }
0x4d84   :  { %v4125_v59 = vpop.permute.xlu1 %4124 }
0x4d85   :  { %v4133_v60 = vsel %vm4039_vm4, %v4132_v58, %v4125_v59 }
0x4d86   :  { %v5276_v30 = vrot.slane %v4133_v60, 5 }
0x4d88   :  { %v9412_v19 = vsel %vm2829_vm10, %v5291_v49, %v5276_v30 }
0x4d8b   :  { %v7993_v54 = vpop.eup %7992 }
0x4d8c   :  { %v5134_v46 = vmul.f32 %v7993_v54, %v9347_v57 }
0x4d8e   :  { %v5135_v63 = vmul.f32 %v5134_v46, %v9337_v36 }
0x4d90   :  { %v5136_v16 = vadd.f32 %v5135_v63, %v9340_v44 }
0x4d92   :  { %5176 = vrot.lane.b32.xlu0 %v5136_v16, %s8010_s14  ;;  %5138 = vrot.lane.b32.xlu1 %v5136_v16, %s7999_s7  ;;  %v5145_v8 = vrot.slane %v5136_v16, 2  ;;  %v5141_v40 = vrot.slane %v5136_v16, 1  ;;  %v5149_v37 = vrot.slane %v5136_v16, 3  ;;  %v5153_v36 = vrot.slane %v5136_v16, 4 }
0x4d93   :  { %v5157_v44 = vrot.slane %v5136_v16, 5  ;;  %v5161_v57 = vrot.slane %v5136_v16, 6  ;;  %v5165_v15 = vrot.slane %v5136_v16, 7 }
0x4d96   :  { %5207 = vrot.lane.b32.xlu0 %v5136_v16, %s8011_s15  ;;  %5238 = vrot.lane.b32.xlu1 %v5136_v16, %s8012_s2 }
0x4d9a   :  { %5146 = vrot.lane.b32.xlu1 %v5145_v8, %s8006_s10  ;;  %5142 = vrot.lane.b32.xlu0 %v5141_v40, %s8009_s0 }
0x4d9e   :  { %5179 = vrot.lane.b32.xlu1 %v5141_v40, %s7999_s7  ;;  %5150 = vrot.lane.b32.xlu0 %v5149_v37, %s8005_s1 }
0x4da2   :  { %5182 = vrot.lane.b32.xlu1 %v5145_v8, %s8009_s0  ;;  %5154 = vrot.lane.b32.xlu0 %v5153_v36, %s7996_s29 }
0x4da6   :  { %5210 = vrot.lane.b32.xlu1 %v5141_v40, %s8010_s14  ;;  %5213 = vrot.lane.b32.xlu0 %v5145_v8, %s7999_s7 }
0x4daa   :  { %5185 = vrot.lane.b32.xlu1 %v5149_v37, %s8006_s10  ;;  %5241 = vrot.lane.b32.xlu0 %v5141_v40, %s8011_s15 }
0x4dae   :  { %5188 = vrot.lane.b32.xlu1 %v5153_v36, %s8005_s1  ;;  %5158 = vrot.lane.b32.xlu0 %v5157_v44, %s8008_s8 }
0x4db2   :  { %5244 = vrot.lane.b32.xlu1 %v5145_v8, %s8010_s14  ;;  %5216 = vrot.lane.b32.xlu0 %v5149_v37, %s8009_s0 }
0x4db6   :  { %5191 = vrot.lane.b32.xlu1 %v5157_v44, %s7996_s29  ;;  %5162 = vrot.lane.b32.xlu0 %v5161_v57, %s8003_s27 }
0x4dba   :  { %5247 = vrot.lane.b32.xlu1 %v5149_v37, %s7999_s7  ;;  %5219 = vrot.lane.b32.xlu0 %v5153_v36, %s8006_s10 }
0x4dbe   :  { %5194 = vrot.lane.b32.xlu1 %v5161_v57, %s8008_s8  ;;  %5166 = vrot.lane.b32.xlu0 %v5165_v15, %s8002_s30 }
0x4dc2   :  { %5250 = vrot.lane.b32.xlu1 %v5153_v36, %s8009_s0  ;;  %5222 = vrot.lane.b32.xlu0 %v5157_v44, %s8005_s1 }
0x4dc6   :  { %5225 = vrot.lane.b32.xlu1 %v5161_v57, %s7996_s29  ;;  %5197 = vrot.lane.b32.xlu0 %v5165_v15, %s8003_s27 }
0x4dca   :  { %5228 = vrot.lane.b32.xlu1 %v5165_v15, %s8008_s8  ;;  %5253 = vrot.lane.b32.xlu0 %v5157_v44, %s8006_s10 }
0x4dce   :  { %5259 = vrot.lane.b32.xlu1 %v5165_v15, %s7996_s29  ;;  %5256 = vrot.lane.b32.xlu0 %v5161_v57, %s8005_s1 }
0x4e04   :  { %v5177_v61 = vpop.permute.xlu0 %5176  ;;  %v5139_v33 = vpop.permute.xlu1 %5138 }
0x4e08   :  { %v5208_v41 = vpop.permute.xlu0 %5207  ;;  %v5239_v14 = vpop.permute.xlu1 %5238 }
0x4e0c   :  { %v5143_v45 = vpop.permute.xlu0 %5142  ;;  %v5147_v27 = vpop.permute.xlu1 %5146 }
0x4e0d   :  { %v5169_v55 = vsel %vm2981_vm2, %v5139_v33, %v5143_v45 }
0x4e0e   :  { %v5170_v6 = vsel %vm4031_vm5, %v5169_v55, %v5147_v27 }
0x4e10   :  { %v5151_v51 = vpop.permute.xlu0 %5150  ;;  %v5180_v9 = vpop.permute.xlu1 %5179 }
0x4e11   :  { %v5200_v49 = vsel %vm2981_vm2, %v5177_v61, %v5180_v9  ;;  %v5171_v3 = vsel %vm97_vm0, %v5170_v6, %v5151_v51  ;;  %v5306_v9 = vld [vmem:[%s9741_s17 + $0x8] sm:$0xff] }
0x4e14   :  { %v5155_v48 = vpop.permute.xlu0 %5154  ;;  %v5183_v24 = vpop.permute.xlu1 %5182 }
0x4e15   :  { %v5201_v12 = vsel %vm4031_vm5, %v5200_v49, %v5183_v24  ;;  %v5172_v35 = vsel %vm2877_vm15, %v5171_v3, %v5155_v48  ;;  %v5313_v48 = vld [vmem:[%s9742_s18] sm:$0xff]  ;;  %v5314_v3 = vld [vmem:[%s9742_s18 + $0x8] sm:$0xff] }
0x4e18   :  { %v5214_v18 = vpop.permute.xlu0 %5213  ;;  %v5211_v34 = vpop.permute.xlu1 %5210 }
0x4e19   :  { %v5231_v31 = vsel %vm2981_vm2, %v5208_v41, %v5211_v34  ;;  %v5307_v34 = vld [vmem:[%s9741_s17 + $0x10] sm:$0xff] }
0x4e1a   :  { %v5232_v58 = vsel %vm4031_vm5, %v5231_v31, %v5214_v18  ;;  %v5315_v31 = vld [vmem:[%s9744_s19] sm:$0xff] }
0x4e1c   :  { %v5242_v32 = vpop.permute.xlu0 %5241  ;;  %v5186_v39 = vpop.permute.xlu1 %5185 }
0x4e1d   :  { %v5202_v23 = vsel %vm97_vm0, %v5201_v12, %v5186_v39  ;;  %v5262_v44 = vsel %vm2981_vm2, %v5239_v14, %v5242_v32  ;;  %v5308_v32 = vld [vmem:[%s9741_s17 + $0x18] sm:$0xff] }
0x4e20   :  { %v5159_v5 = vpop.permute.xlu0 %5158  ;;  %v5189_v43 = vpop.permute.xlu1 %5188 }
0x4e21   :  { %v5173_v30 = vsel %vm4035_vm6, %v5172_v35, %v5159_v5  ;;  %v5203_v54 = vsel %vm2877_vm15, %v5202_v23, %v5189_v43  ;;  %v7691_v5 = vpack.c.bf16 %v5308_v32, %v5307_v34  ;;  %v5309_v43 = vld [vmem:[%s9741_s17 + $0x20] sm:$0xff] }
0x4e22   :  { %v5858_v23 = vld [vmem:[%s9745_s21] sm:$0xff] }
0x4e23   :  { %v6026_v32 = vld [vmem:[%s9747_s24] sm:$0xff] }
0x4e24   :  { %v5217_v42 = vpop.permute.xlu0 %5216  ;;  %v5245_v22 = vpop.permute.xlu1 %5244 }
0x4e25   :  { %v5233_v46 = vsel %vm97_vm0, %v5232_v58, %v5217_v42  ;;  %v5263_v20 = vsel %vm4031_vm5, %v5262_v44, %v5245_v22  ;;  %v5310_v42 = vld [vmem:[%s9741_s17 + $0x28] sm:$0xff]  ;;  %v5864_v44 = vld [vmem:[%s9745_s21 + $0x30] sm:$0xff] }
0x4e26   :  { %v7694_v22 = vpack.c.bf16 %v5310_v42, %v5309_v43  ;;  %v5859_v58 = vld [vmem:[%s9745_s21 + $0x8] sm:$0xff] }
0x4e28   :  { %v5163_v50 = vpop.permute.xlu0 %5162  ;;  %v5192_v52 = vpop.permute.xlu1 %5191 }
0x4e29   :  { %v5174_v63 = vsel %vm4037_vm9, %v5173_v30, %v5163_v50  ;;  %v5204_v16 = vsel %vm4035_vm6, %v5203_v54, %v5192_v52  ;;  %v5311_v50 = vld [vmem:[%s9741_s17 + $0x30] sm:$0xff]  ;;  %v5312_v52 = vld [vmem:[%s9741_s17 + $0x38] sm:$0xff]  ;;  %v7724_v54 = vpack.c.bf16 %v5859_v58, %v5858_v23  ;;  %v6038_v23 = vld [vmem:[%s9747_s24 + $0x60] sm:$0xff] }
0x4e2a   :  { %v6039_v58 = vld [vmem:[%s9747_s24 + $0x68] sm:$0xff] }
0x4e2c   :  { %v5220_v53 = vpop.permute.xlu0 %5219  ;;  %v5248_v7 = vpop.permute.xlu1 %5247 }
0x4e2d   :  { %v5234_v8 = vsel %vm2877_vm15, %v5233_v46, %v5220_v53  ;;  %v5264_v17 = vsel %vm97_vm0, %v5263_v20, %v5248_v7  ;;  %v7697_v53 = vpack.c.bf16 %v5312_v52, %v5311_v50  ;;  %v5860_v46 = vld [vmem:[%s9745_s21 + $0x10] sm:$0xff]  ;;  %v5867_v20 = vld [vmem:[%s9746_s22 + $0x8] sm:$0xff] }
0x4e2e   :  { %v6028_v52 = vld [vmem:[%s9747_s24 + $0x10] sm:$0xff] }
0x4e30   :  { %v5167_v0 = vpop.permute.xlu0 %5166  ;;  %v5195_v1 = vpop.permute.xlu1 %5194 }
0x4e31   :  { %v5175_v40 = vsel %vm4039_vm4, %v5174_v63, %v5167_v0  ;;  %v5205_v37 = vsel %vm4037_vm9, %v5204_v16, %v5195_v1  ;;  %v5861_v63 = vld [vmem:[%s9745_s21 + $0x18] sm:$0xff] }
0x4e32   :  { %v5279_v15 = vrot.slane %v5175_v40, 4  ;;  %v5862_v40 = vld [vmem:[%s9745_s21 + $0x20] sm:$0xff] }
0x4e34   :  { %v5223_v62 = vpop.permute.xlu0 %5222  ;;  %v5251_v26 = vpop.permute.xlu1 %5250  ;;  %v5293_v33 = vsel %vm2831_vm11, %v9412_v19, %v5279_v15  ;;  %v5305_v19 = vld [vmem:[%s9741_s17] sm:$0xff] }
0x4e35   :  { %v5235_v36 = vsel %vm4035_vm6, %v5234_v8, %v5223_v62  ;;  %v5265_v28 = vsel %vm2877_vm15, %v5264_v17, %v5251_v26  ;;  %v7688_v24 = vpack.c.bf16 %v5306_v9, %v5305_v19  ;;  %v8013_v62 = vmov 0   ;;  %v6244_v26 = vld [vmem:[%s9743_s20] ss:$0 sm:$0xff] }
0x4e36   :  { %7779 = vset.pattern.permute.xlu0 %v8013_v62  ;;  %v7727_v8 = vpack.c.bf16 %v5861_v63, %v5860_v46  ;;  %v31_v46 = vstv %s9748_s25 }
0x4e37   :  { %5622 = vperm.xlu0 %7779, %v6244_v26   ;;  %32 = vst [vmem:[#allocation2] sm:$0x1] %v31_v46 }
0x4e38   :  { %v5198_v59 = vpop.permute.xlu0 %5197  ;;  %v5226_v60 = vpop.permute.xlu1 %5225 }
0x4e39   :  { %v5206_v57 = vsel %vm4039_vm4, %v5205_v37, %v5198_v59  ;;  %v5236_v38 = vsel %vm4037_vm9, %v5235_v36, %v5226_v60  ;;  %v5863_v37 = vld [vmem:[%s9745_s21 + $0x28] sm:$0xff] }
0x4e3a   :  { %v5282_v56 = vrot.slane %v5206_v57, 3  ;;  %v7730_v36 = vpack.c.bf16 %v5863_v37, %v5862_v40  ;;  %v5865_v57 = vld [vmem:[%s9745_s21 + $0x38] sm:$0xff] }
0x4e3c   :  { %v5254_v47 = vpop.permute.xlu0 %5253  ;;  %v5229_v13 = vpop.permute.xlu1 %5228  ;;  %v5294_v14 = vsel %vm2833_vm12, %v5293_v33, %v5282_v56  ;;  %v5869_v56 = vld [vmem:[%s9746_s22 + $0x18] sm:$0xff]  ;;  %v5871_v33 = vld [vmem:[%s9746_s22 + $0x28] sm:$0xff] }
0x4e3d   :  { %v5237_v29 = vsel %vm4039_vm4, %v5236_v38, %v5229_v13  ;;  %v5266_v10 = vsel %vm4035_vm6, %v5265_v28, %v5254_v47  ;;  %v7733_v38 = vpack.c.bf16 %v5865_v57, %v5864_v44  ;;  %v8014_v47 = vmov 1   ;;  %v5866_v13 = vld [vmem:[%s9746_s22] sm:$0xff]  ;;  %v5868_v28 = vld [vmem:[%s9746_s22 + $0x10] sm:$0xff] }
0x4e3e   :  { %v5285_v11 = vrot.slane %v5237_v29, 2  ;;  %7780 = vset.pattern.permute.xlu1 %v8014_v47  ;;  %v5316_v29 = vld [vmem:[%s9744_s19 + $0x8] sm:$0xff]  ;;  %v7712_v17 = vpack.c.bf16 %v5867_v20, %v5866_v13  ;;  %v6251_v63 = vld [vmem:[#allocation2] ss:$0 sm:$0xff] }
0x4e3f   :  { %5853 = vperm.xlu1 %7780, %v6244_v26  }
0x4e40   :  { %v5257_v21 = vpop.permute.xlu0 %5256  ;;  %v5260_v25 = vpop.permute.xlu1 %5259  ;;  %v5295_v27 = vsel %vm2835_vm13, %v5294_v14, %v5285_v11  ;;  %v7715_v11 = vpack.c.bf16 %v5869_v56, %v5868_v28  ;;  %v5872_v14 = vld [vmem:[%s9746_s22 + $0x30] sm:$0xff] }
0x4e41   :  { %v5267_v61 = vsel %vm4037_vm9, %v5266_v10, %v5257_v21 }
0x4e42   :  { %v5268_v41 = vsel %vm4039_vm4, %v5267_v61, %v5260_v25  ;;  %v5870_v61 = vld [vmem:[%s9746_s22 + $0x20] sm:$0xff] }
0x4e43   :  { %v5288_v45 = vrot.slane %v5268_v41, 1  ;;  %7781 = vset.pattern.permute.xlu1 %v8013_v62  ;;  %v7718_v41 = vpack.c.bf16 %v5871_v33, %v5870_v61  ;;  %v6032_v62 = vld [vmem:[%s9747_s24 + $0x30] sm:$0xff] }
0x4e44   :  { %6049 = vperm.xlu1 %7781, %v6251_v63  }
0x4e45   :  { %v9510_v51 = vsel %vm2837_vm14, %v5295_v27, %v5288_v45  ;;  %v5873_v45 = vld [vmem:[%s9746_s22 + $0x38] sm:$0xff] }
0x4e46   :  { %7082 = vmatmul.mubr.msk.f32.vlgmr.msra.gmra.mrb[48].mxu0 %vm207_vm1, %v9510_v51  ;;  %v7721_v27 = vpack.c.bf16 %v5873_v45, %v5872_v14 }
0x4e47   :  { %7110 = vmatprep.mubr.msk.f32.mxu0 %vm7998_vm3, %v7995_v2 }
0x4eb6   :  { %v5623_v19 = vpop.permute.xlu0 %5622 }
0x4f19   :  { %v5387_v18 = vpop.f32.mrb[48].mxu0 }
0x4f1a   :  { %v7083_v39 = vpop.f32.mrb[49].mxu0  ;;  %7085 = vmatpush3.msra.mxu1 %v5387_v18 }
0x4f1b   :  { %7087 = vmatmul.mubr.msk.f32.vlgmr.msra.gmra.mrb[56].mxu1 %vm2981_vm2, %v5313_v48  ;;  %7687 = vmatprep.subr.bf16.mxu1 %v7997_v4  ;;  %v6027_v39 = vld [vmem:[%s9747_s24 + $0x8] sm:$0xff] }
0x4f1c   :  { %7689 = vmatpush3.bf16.msra.mxu1 %v7688_v24  ;;  %7105 = vmatprep.mubr.msk.f32.mxu1 %vm7998_vm3, %v7995_v2 }
0x4f1d   :  { %7690 = vmatprep.subr.bf16.mxu1 %v7997_v4 }
0x4f20   :  { %7692 = vmatpush3.bf16.msra.mxu1 %v7691_v5 }
0x4f21   :  { %7693 = vmatprep.subr.bf16.mxu1 %v7997_v4 }
0x4f24   :  { %7695 = vmatpush3.bf16.msra.mxu1 %v7694_v22 }
0x4f25   :  { %7696 = vmatprep.subr.bf16.mxu1 %v7997_v4 }
0x4f28   :  { %7698 = vmatpush3.bf16.msra.mxu1 %v7697_v53 }
0x4f29   :  { %7699 = vmatprep.subr.bf16.mxu1 %v7997_v4 }
0x4fee   :  { %v5460_v7 = vpop.f32.mrb[56].mxu1 }
0x4fef   :  { %vm5464_vm8 = vcmp.gt.f32.partialorder %v5460_v7, 0.0  ;;  %v5465_v0 = vmul.f32 0.1, %v5460_v7  ;;  %v7088_v1 = vpop.f32.mrb[57].mxu1 }
0x4ff0   :  { %v6031_v1 = vld [vmem:[%s9747_s24 + $0x28] sm:$0xff] }
0x4ff1   :  { %v5466_v55 = vsel %vm5464_vm8, %v5460_v7, %v5465_v0  ;;  %v6030_v0 = vld [vmem:[%s9747_s24 + $0x20] sm:$0xff] }
0x4ff2   :  { %7106 = vmatmul.mubr.msk.f32.vlgmr.msra.gmra.mrb[58].mxu1 %vm207_vm1, %v5466_v55  ;;  %v7742_v55 = vpack.c.bf16 %v6031_v1, %v6030_v0 }
0x4ff3   :  { %7701 = vmatpush3.bf16.msra.mxu1 %v7688_v24  ;;  %7134 = vmatprep.mubr.msk.f32.mxu1 %vm7998_vm3, %v7995_v2 }
0x4ff4   :  { %7702 = vmatprep.subr.bf16.mxu1 %v7997_v4 }
0x4ff7   :  { %7704 = vmatpush3.bf16.msra.mxu1 %v7691_v5 }
0x4ff8   :  { %7705 = vmatprep.subr.bf16.mxu1 %v7997_v4 }
0x4ffb   :  { %7707 = vmatpush3.bf16.msra.mxu1 %v7694_v22  ;;  %v7736_v22 = vpack.c.bf16 %v6027_v39, %v6026_v32 }
0x4ffc   :  { %7708 = vmatprep.subr.bf16.mxu1 %v7997_v4 }
0x4fff   :  { %7710 = vmatpush3.bf16.msra.mxu1 %v7697_v53  ;;  %v6029_v53 = vld [vmem:[%s9747_s24 + $0x18] sm:$0xff] }
0x5000   :  { %7723 = vmatprep.subr.bf16.mxu1 %v7997_v4  ;;  %v7739_v7 = vpack.c.bf16 %v6029_v53, %v6028_v52 }
0x50c5   :  { %v5536_v6 = vpop.f32.mrb[58].mxu1 }
0x50c6   :  { %v7107_v49 = vpop.f32.mrb[59].mxu1  ;;  %7109 = vmatpush3.msra.mxu0 %v5536_v6  ;;  %v6035_v6 = vld [vmem:[%s9747_s24 + $0x48] sm:$0xff] }
0x50c7   :  { %7111 = vmatmul.mubr.msk.f32.vlgmr.msra.gmra.mrb[50].mxu0 %vm2981_vm2, %v5315_v31  ;;  %7113 = vmatprep.subr.mxu0 %v7995_v2  ;;  %v6034_v31 = vld [vmem:[%s9747_s24 + $0x40] sm:$0xff] }
0x50c8   :  { %7114 = vmatpush3.msra.mxu0 %v5387_v18  ;;  %7115 = vmatprep.mubr.msk.f32.mxu0 %vm7998_vm3, %v7995_v2  ;;  %v5854_v18 = vpop.permute.xlu1 %5853  ;;  %v7748_v49 = vpack.c.bf16 %v6035_v6, %v6034_v31 }
0x50c9   :  { %7137 = vmatprep.subr.mxu0 %v7995_v2 }
0x50cb   :  { %7116 = vmatmul.mubr.msk.f32.vlgmr.msra.gmra.mrb[52].mxu0 %vm2981_vm2, %v5314_v3  ;;  %v6036_v3 = vld [vmem:[%s9747_s24 + $0x50] sm:$0xff] }
0x50cc   :  { %7139 = vmatprep.mubr.msk.f32.mxu0 %vm7998_vm3, %v7995_v2  ;;  %v6050_v44 = vpop.permute.xlu1 %6049 }
0x519a   :  { %v9575_v12 = vpop.f32.mrb[50].mxu0 }
0x519b   :  { %v7112_v35 = vpop.f32.mrb[51].mxu0  ;;  %vm5613_vm11 = vcmp.gt.f32.partialorder %v9575_v12, 0.0 }
0x519e   :  { %v5696_v59 = vpop.f32.mrb[52].mxu0 }
0x519f   :  { %vm5700_vm10 = vcmp.gt.f32.partialorder %v5696_v59, 0.0  ;;  %v5701_v60 = vmul.f32 0.1, %v5696_v59  ;;  %v7117_v30 = vpop.f32.mrb[53].mxu0 }
0x51a0   :  { %v6041_v30 = vld [vmem:[%s9747_s24 + $0x78] sm:$0xff] }
0x51a1   :  { %v5702_v16 = vsel %vm5700_vm10, %v5696_v59, %v5701_v60  ;;  %v7754_v59 = vpack.c.bf16 %v6039_v58, %v6038_v23  ;;  %v6040_v60 = vld [vmem:[%s9747_s24 + $0x70] sm:$0xff] }
0x51a2   :  { %7135 = vmatmul.mubr.msk.f32.vlgmr.msra.gmra.mrb[60].mxu1 %vm207_vm1, %v5702_v16 }
0x51a3   :  { %7725 = vmatpush3.bf16.msra.mxu1 %v7724_v54  ;;  %7177 = vmatprep.mubr.msk.f32.mxu1 %vm7998_vm3, %v7995_v2  ;;  %v7757_v54 = vpack.c.bf16 %v6041_v30, %v6040_v60 }
0x51a4   :  { %7726 = vmatprep.subr.bf16.mxu1 %v7997_v4 }
0x51a7   :  { %7728 = vmatpush3.bf16.msra.mxu1 %v7727_v8 }
0x51a8   :  { %7729 = vmatprep.subr.bf16.mxu1 %v7997_v4 }
0x51ab   :  { %7731 = vmatpush3.bf16.msra.mxu1 %v7730_v36 }
0x51ac   :  { %7732 = vmatprep.subr.bf16.mxu1 %v7997_v4 }
0x51af   :  { %7734 = vmatpush3.bf16.msra.mxu1 %v7733_v38 }
0x51b2   :  { %7178 = vmatmul.mubr.msk.f32.vlgmr.msra.gmra.mrb[62].mxu1 %vm207_vm1, %v9510_v51  ;;  %v5614_v51 = vmul.f32 0.1, %v9575_v12 }
0x51b4   :  { %v5615_v48 = vsel %vm5613_vm11, %v9575_v12, %v5614_v51  ;;  %v6037_v12 = vld [vmem:[%s9747_s24 + $0x58] sm:$0xff] }
0x51b5   :  { %v5625_v43 = vmul.f32 %v5623_v19, %v5615_v48  ;;  %v7751_v35 = vpack.c.bf16 %v6037_v12, %v6036_v3 }
0x5275   :  { %v5772_v15 = vpop.f32.mrb[60].mxu1 }
0x5276   :  { %v7136_v10 = vpop.f32.mrb[61].mxu1  ;;  %7138 = vmatpush3.msra.mxu0 %v5772_v15 }
0x5277   :  { %7140 = vmatmul.mubr.msk.f32.vlgmr.msra.gmra.mrb[54].mxu0 %vm2981_vm2, %v5316_v29  ;;  %7711 = vmatprep.subr.bf16.mxu0 %v7997_v4 }
0x5278   :  { %7713 = vmatpush3.bf16.msra.mxu0 %v7712_v17  ;;  %7158 = vmatprep.mubr.msk.f32.mxu0 %vm7998_vm3, %v7995_v2 }
0x5279   :  { %7714 = vmatprep.subr.bf16.mxu0 %v7997_v4 }
0x527c   :  { %7716 = vmatpush3.bf16.msra.mxu0 %v7715_v11 }
0x527d   :  { %7717 = vmatprep.subr.bf16.mxu0 %v7997_v4 }
0x5280   :  { %7719 = vmatpush3.bf16.msra.mxu0 %v7718_v41 }
0x5281   :  { %7720 = vmatprep.subr.bf16.mxu0 %v7997_v4 }
0x5284   :  { %7722 = vmatpush3.bf16.msra.mxu0 %v7721_v27 }
0x5285   :  { %v9630_v21 = vpop.f32.mrb[62].mxu1  ;;  %7735 = vmatprep.subr.bf16.mxu0 %v7997_v4 }
0x5286   :  { %v7179_v25 = vpop.f32.mrb[63].mxu1 }
0x534a   :  { %v5845_v9 = vpop.f32.mrb[54].mxu0 }
0x534b   :  { %vm5849_vm12 = vcmp.gt.f32.partialorder %v5845_v9, 0.0  ;;  %v5850_v24 = vmul.f32 0.1, %v5845_v9  ;;  %v7141_v34 = vpop.f32.mrb[55].mxu0 }
0x534d   :  { %v5851_v5 = vsel %vm5849_vm12, %v5845_v9, %v5850_v24 }
0x534e   :  { %v5856_v42 = vmul.f32 %v5854_v18, %v5851_v5 }
0x5350   :  { %v5857_v50 = vadd.f32 %v5856_v42, %v5625_v43 }
0x5352   :  { %7159 = vmatmul.mubr.msk.f32.vlgmr.msra.gmra.mrb[56].mxu0 %vm207_vm1, %v5857_v50  ;;  %vm6142_vm1 = vcmask 254976  }
0x5353   :  { %7737 = vmatpush3.bf16.msra.mxu0 %v7736_v22  ;;  %7212 = vmatprep.mubr.msk.f32.mxu0 %vm7998_vm3, %v7995_v2  ;;  %v6033_v2 = vld [vmem:[%s9747_s24 + $0x38] sm:$0xff] }
0x5354   :  { %7738 = vmatprep.subr.bf16.mxu0 %v7997_v4  ;;  %v7745_v26 = vpack.c.bf16 %v6033_v2, %v6032_v62 }
0x5357   :  { %7740 = vmatpush3.bf16.msra.mxu0 %v7739_v7 }
0x5358   :  { %7741 = vmatprep.subr.bf16.mxu0 %v7997_v4 }
0x535b   :  { %7743 = vmatpush3.bf16.msra.mxu0 %v7742_v55 }
0x535c   :  { %7744 = vmatprep.subr.bf16.mxu0 %v7997_v4 }
0x535f   :  { %7746 = vmatpush3.bf16.msra.mxu0 %v7745_v26 }
0x5360   :  { %7747 = vmatprep.subr.bf16.mxu0 %v7997_v4 }
0x5363   :  { %7749 = vmatpush3.bf16.msra.mxu0 %v7748_v49 }
0x5364   :  { %7750 = vmatprep.subr.bf16.mxu0 %v7997_v4 }
0x5367   :  { %7752 = vmatpush3.bf16.msra.mxu0 %v7751_v35 }
0x5368   :  { %7753 = vmatprep.subr.bf16.mxu0 %v7997_v4 }
0x536b   :  { %7755 = vmatpush3.bf16.msra.mxu0 %v7754_v59 }
0x536c   :  { %7756 = vmatprep.subr.bf16.mxu0 %v7997_v4  ;;  %v6250_v4 = vld [vmem:[%s9749_s23] ss:$0 sm:$0xff] }
0x536f   :  { %7758 = vmatpush3.bf16.msra.mxu0 %v7757_v54 }
0x5425   :  { %v5943_v16 = vpop.f32.mrb[56].mxu0 }
0x5426   :  { %v6014_v8 = vadd.f32 %v9630_v21, %v5943_v16  ;;  %v7160_v40 = vpop.f32.mrb[57].mxu0 }
0x5428   :  { %v6024_v37 = vadd.f32 %v6250_v4, %v6014_v8 }
0x542a   :  { %v6025_v36 = vmax.f32 %v6024_v37, 0.0 }
0x542c   :  { %7213 = vmatmul.mubr.f32.vlgmr.msra.gmra.mrb[58].mxu0 %v6025_v36 }
0x54ff   :  { %v6118_v57 = vpop.f32.mrb[58].mxu0 }
0x5500   :  { %v6119_v38 = vadd.f32 %v6118_v57, %v6050_v44  ;;  %v7214_v47 = vpop.f32.mrb[59].mxu0 }
0x5502   :  { %v6127_v13 = vrot.slane %v6119_v38, 2  ;;  %v6123_v20 = vrot.slane %v6119_v38, 1  ;;  %v6131_v29 = vrot.slane %v6119_v38, 3 }
0x5504   :  { %6128 = vrot.lane.b32.xlu1 %v6127_v13, %s8011_s15  ;;  %6124 = vrot.lane.b32.xlu0 %v6123_v20, %s8012_s2 }
0x5508   :  { %6132 = vrot.lane.b32.xlu0 %v6131_v29, %s8010_s14 }
0x5576   :  { %v6125_v17 = vpop.permute.xlu0 %6124  ;;  %v6129_v15 = vpop.permute.xlu1 %6128 }
0x5577   :  { %v6135_v28 = vsel %vm2981_vm2, %v6119_v38, %v6125_v17 }
0x5578   :  { %v6136_v56 = vsel %vm4031_vm5, %v6135_v28, %v6129_v15 }
0x557a   :  { %v6133_v10 = vpop.permute.xlu0 %6132 }
0x557b   :  { %v6137_v11 = vsel %vm97_vm0, %v6136_v56, %v6133_v10 }
0x557c   :  { %v6139_v21 = vrot.slane %v6137_v11, 3 }
0x557e   :  { %v6141_v25 = vsel %vm2825_vm7, %v6137_v11, %v6139_v21 }
0x557f   :  { %6143 = vst.msk [vmem:[%s9750_s26] sm:$0x3] %vm6142_vm1, %v6141_v25 }

</bundles_post_ra>
